<compile_context>
chip_gen: v6e
topology: v6e:2x2x1
jax: 0.10.0
libtpu: 0.0.40
codegen_flags: <defaults>
</compile_context>

<pallas_src>
import math

import jax
import jax.numpy as jnp
from jax import lax
from jax.experimental import pallas as pl
from jax.experimental.pallas import tpu as pltpu

LANE = 128


def _round_up(x, m):
    return (x + m - 1) // m * m


def _const_index_map(ndim):
    def idx(b):
        return (0,) * ndim
    return idx


# ----------------------------------------------------------------------------
# Static description of one EncoderConvBlock (integer stride_t path).
# ----------------------------------------------------------------------------
def _level_ops(cin, width, output_emb_width, down_t, stride_t, depth, m_conv,
               dilation_growth_rate, dilation_cycle):
    assert isinstance(stride_t, int) and down_t > 0
    filter_t, pad_t = stride_t * 2, stride_t // 2
    n_state = int(m_conv * width)
    ops = []
    cur = cin
    for _i in range(down_t):
        ops.append(dict(kind="conv", k=filter_t, s=stride_t, p=pad_t, d=1,
                        cin=cur, cout=width))
        cur = width
        for dep in range(depth):
            dd = dep if dilation_cycle is None else dep % dilation_cycle
            ops.append(dict(kind="res", dil=dilation_growth_rate ** dd,
                            width=width, n_state=n_state))
    ops.append(dict(kind="conv", k=3, s=1, p=1, d=1, cin=width, cout=output_emb_width))
    return ops


def _time_plan(ops, t_in):
    """Static time-length evolution + max padded length (for scratch sizing)."""
    t, max_tp = t_in, t_in
    for op in ops:
        if op["kind"] == "conv":
            max_tp = max(max_tp, t + 2 * op["p"])
            t = (t + 2 * op["p"] - op["d"] * (op["k"] - 1) - 1) // op["s"] + 1
        else:
            max_tp = max(max_tp, t + 2 * op["dil"])
    return t, max_tp


# ----------------------------------------------------------------------------
# Fused per-level Pallas kernel.
# ----------------------------------------------------------------------------
def _make_level_kernel(ops, t_in, cin, cout, cpad, res_scale, n_w):

    def conv_apply(h, t, w_ref, b_ref, k, s, p, d, scr):
        """Conv1d(k, stride=s, pad=p, dilation=d) on lane-padded (t, cpad) activation."""
        t_out = (t + 2 * p - d * (k - 1) - 1) // s + 1
        if k == 1 and s == 1 and p == 0:                  # 1x1 conv: plain matmul
            acc = jnp.dot(h.astype(jnp.bfloat16), w_ref[0],
                          preferred_element_type=jnp.float32)
            return acc + b_ref[...], t_out
        # Zero-padded activation lives in VMEM scratch (halo handled in-kernel).
        if p > 0:
            scr[0:p, :] = jnp.zeros((p, cpad), jnp.float32)
            scr[p + t:p + t + p, :] = jnp.zeros((p, cpad), jnp.float32)
        scr[p:p + t, :] = h
        acc = None
        for tap in range(k):
            start = tap * d
            if s == 1:
                xs = scr[start:start + t_out, :]
            else:                                          # strided downsampling read
                xs = scr[pl.ds(start, t_out, stride=s), :]
            part = jnp.dot(xs.astype(jnp.bfloat16), w_ref[tap],
                           preferred_element_type=jnp.float32)
            acc = part if acc is None else acc + part
        return acc + b_ref[...], t_out

    def kernel(*args):
        x_ref = args[0]
        w_refs = args[1:1 + n_w]
        o_ref = args[1 + n_w]
        scr = args[2 + n_w]

        # NCL -> time-major, lane-padded (t, cpad) compute layout (all in-kernel).
        scr[0:t_in, :] = jnp.zeros((t_in, cpad), jnp.float32)
        scr[0:t_in, 0:cin] = jnp.transpose(x_ref[0], (1, 0))
        h = scr[0:t_in, :]

        t, wi = t_in, 0
        for op in ops:
            if op["kind"] == "conv":
                h, t = conv_apply(h, t, w_refs[wi], w_refs[wi + 1],
                                  op["k"], op["s"], op["p"], op["d"], scr)
                wi += 2
            else:                                          # Jukebox ResConv1DBlock
                dil = op["dil"]
                u = jnp.maximum(h, 0.0)
                u, _ = conv_apply(u, t, w_refs[wi], w_refs[wi + 1], 3, 1, dil, dil, scr)
                u = jnp.maximum(u, 0.0)
                u, _ = conv_apply(u, t, w_refs[wi + 2], w_refs[wi + 3], 1, 1, 0, 1, scr)
                h = h + res_scale * u
                wi += 4

        # Final conv of the block has no activation; emit channel-major output directly.
        o_ref[0] = jnp.transpose(h[:, 0:cout], (1, 0)).astype(o_ref.dtype)

    return kernel


def _run_level(x, meta, weights):
    """x: (B, cin, T) f32 -> (B, cout, T_out) f32, one fused pallas_call."""
    ops, cin, cout, cpad, res_scale = (meta["ops"], meta["cin"], meta["cout"],
                                       meta["cpad"], meta["res_scale"])
    B, cin_x, t_in = x.shape
    assert cin_x == cin
    t_out, max_tp = _time_plan(ops, t_in)
    n_w = len(weights)

    kernel = _make_level_kernel(ops, t_in, cin, cout, cpad, res_scale, n_w)

    x_spec = pl.BlockSpec((1, cin, t_in), lambda b: (b, 0, 0))
    w_specs = [pl.BlockSpec(tuple(w.shape), _const_index_map(w.ndim)) for w in weights]
    out_spec = pl.BlockSpec((1, cout, t_out), lambda b: (b, 0, 0))

    return pl.pallas_call(
        kernel,
        out_shape=jax.ShapeDtypeStruct((B, cout, t_out), jnp.float32),
        grid_spec=pltpu.PrefetchScalarGridSpec(
            num_scalar_prefetch=0,
            grid=(B,),
            in_specs=[x_spec] + w_specs,
            out_specs=out_spec,
            scratch_shapes=[pltpu.VMEM((_round_up(max_tp, 8), cpad), jnp.float32)],
        ),
        compiler_params=pltpu.CompilerParams(
            dimension_semantics=("parallel",),
        ),
    )(x, *weights)


def build_encoder(metas):
    def forward(x, level_weights):
        xs, h = [], x
        for meta, w in zip(metas, level_weights):
            h = _run_level(h, meta, w)
            xs.append(h)
        return tuple(xs)
    return jax.jit(forward)


# ----------------------------------------------------------------------------
# Deterministic parameter construction (weights pre-padded to 128 lanes, bf16).
# ----------------------------------------------------------------------------
def init_params(key, cfg):
    cpad = _round_up(max(cfg["input_emb_width"], cfg["output_emb_width"],
                         cfg["width"], int(cfg["m_conv"] * cfg["width"])), LANE)
    res_scale_val = 1.0 if not cfg["res_scale"] else 1.0 / math.sqrt(cfg["depth"])
    metas, weights_pad, weights_real = [], [], []
    level_keys = jax.random.split(key, cfg["levels"])

    for level in range(cfg["levels"]):
        cin = cfg["input_emb_width"] if level == 0 else cfg["output_emb_width"]
        ops = _level_ops(cin, cfg["width"], cfg["output_emb_width"],
                         cfg["downs_t"][level], cfg["strides_t"][level],
                         cfg["depth"], cfg["m_conv"],
                         cfg["dilation_growth_rate"], cfg["dilation_cycle"])
        n_convs = sum(1 if op["kind"] == "conv" else 2 for op in ops)
        conv_keys = iter(jax.random.split(level_keys[level], n_convs))
        w_pad, w_real = [], []

        def add_conv(k, ci, co, zero=False):
            kw, kb = jax.random.split(next(conv_keys))
            if zero:
                w = jnp.zeros((k, ci, co), jnp.float32)
                b = jnp.zeros((co,), jnp.float32)
            else:
                w = jax.random.normal(kw, (k, ci, co), jnp.float32) / math.sqrt(k * ci)
                b = 0.05 * jax.random.normal(kb, (co,), jnp.float32)
            wp = jnp.zeros((k, cpad, cpad), jnp.float32).at[:, :ci, :co].set(w)
            bp = jnp.zeros((1, cpad), jnp.float32).at[0, :co].set(b)
            w_real.extend([w, b])
            w_pad.extend([wp.astype(jnp.bfloat16), bp])

        for op in ops:
            if op["kind"] == "conv":
                add_conv(op["k"], op["cin"], op["cout"])
            else:
                add_conv(3, op["width"], op["n_state"])
                add_conv(1, op["n_state"], op["width"], zero=cfg["zero_out"])

        metas.append(dict(ops=ops, cin=cin, cout=cfg["output_emb_width"],
                          cpad=cpad, res_scale=res_scale_val))
        weights_pad.append(tuple(w_pad))
        weights_real.append(tuple(w_real))
    return metas, tuple(weights_pad), tuple(weights_real)


# ----------------------------------------------------------------------------
# Pure-JAX f32 reference (mirrors PyTorch Conv1d semantics) for validation.
# ----------------------------------------------------------------------------
def _ref_conv1d(x, w, b, stride, pad, dil):
    # x: (B, T, ci) f32 ; w: (k, ci, co) == torch weight.permute(2,1,0) ; b: (co,)
    k, ci, co = w.shape
    B_, T_, _ = x.shape
    t_out = (T_ + 2 * pad - dil * (k - 1) - 1) // stride + 1
    xp = jnp.pad(x, ((0, 0), (pad, pad), (0, 0)))
    acc = jnp.zeros((B_, t_out, co), jnp.float32)
    for tap in range(k):
        start = tap * dil
        sl = lax.slice(xp, (0, start, 0),
                       (B_, start + stride * (t_out - 1) + 1, ci),
                       (1, stride, 1))
        acc = acc + jnp.einsum("btc,cd->btd", sl, w[tap])
    return acc + b[None, None, :]


def _ref_level(x_bct, meta, weights_real):
    ops, res_scale = meta["ops"], meta["res_scale"]
    h = jnp.transpose(x_bct, (0, 2, 1)).astype(jnp.float32)
    wi = 0
    for op in ops:
        if op["kind"] == "conv":
            h = _ref_conv1d(h, weights_real[wi], weights_real[wi + 1],
                            op["s"], op["p"], op["d"])
            wi += 2
        else:
            dil = op["dil"]
            u = jnp.maximum(h, 0.0)
            u = _ref_conv1d(u, weights_real[wi], weights_real[wi + 1], 1, dil, dil)
            u = jnp.maximum(u, 0.0)
            u = _ref_conv1d(u, weights_real[wi + 2], weights_real[wi + 3], 1, 0, 1)
            h = h + res_scale * u
            wi += 4
    return jnp.transpose(h, (0, 2, 1))


if __name__ == "__main__":
    cfg = dict(input_emb_width=4, output_emb_width=32, levels=2,
               downs_t=(2, 1), strides_t=(2, 2), width=32, depth=2,
               m_conv=1.0, dilation_growth_rate=2, dilation_cycle=None,
               zero_out=False, res_scale=False)
    B, T = 2, 64

    key = jax.random.PRNGKey(0)
    k_x, k_p = jax.random.split(key)
    x = jax.random.normal(k_x, (B, cfg["input_emb_width"], T), dtype=jnp.float32)

    metas, weights_pad, weights_real = init_params(k_p, cfg)
    encoder = build_encoder(metas)
    xs = jax.block_until_ready(encoder(x, weights_pad))

    # Shape check (matches Encoder.forward's assert_shape chain).
    t = T
    for level, out in enumerate(xs):
        t = t // (cfg["strides_t"][level] ** cfg["downs_t"][level])
        assert out.shape == (B, cfg["output_emb_width"], t), out.shape
        assert bool(jnp.all(jnp.isfinite(out)))

    # Numerical check vs pure-JAX f32 reference (kernel uses bf16 MXU operands).
    ref = x
    for level, out in enumerate(xs):
        ref = _ref_level(ref, metas[level], weights_real[level])
        err = float(jnp.max(jnp.abs(out.astype(jnp.float32) - ref)))
        scale = float(jnp.max(jnp.abs(ref)))
        assert err <= 5e-2 * scale + 5e-2, (level, err, scale)

    print("KERNEL_OK")
</pallas_src>

<mosaic_0001>
module attributes {stable_mosaic.version = 11 : i64} {
  func.func @kernel(%arg0: i32, %arg1: memref<1x4x64xf32, #tpu.memory_space<vmem>>, %arg2: memref<4x128x128xbf16, #tpu.memory_space<vmem>>, %arg3: memref<1x128xf32, #tpu.memory_space<vmem>>, %arg4: memref<3x128x128xbf16, #tpu.memory_space<vmem>>, %arg5: memref<1x128xf32, #tpu.memory_space<vmem>>, %arg6: memref<1x128x128xbf16, #tpu.memory_space<vmem>>, %arg7: memref<1x128xf32, #tpu.memory_space<vmem>>, %arg8: memref<3x128x128xbf16, #tpu.memory_space<vmem>>, %arg9: memref<1x128xf32, #tpu.memory_space<vmem>>, %arg10: memref<1x128x128xbf16, #tpu.memory_space<vmem>>, %arg11: memref<1x128xf32, #tpu.memory_space<vmem>>, %arg12: memref<4x128x128xbf16, #tpu.memory_space<vmem>>, %arg13: memref<1x128xf32, #tpu.memory_space<vmem>>, %arg14: memref<3x128x128xbf16, #tpu.memory_space<vmem>>, %arg15: memref<1x128xf32, #tpu.memory_space<vmem>>, %arg16: memref<1x128x128xbf16, #tpu.memory_space<vmem>>, %arg17: memref<1x128xf32, #tpu.memory_space<vmem>>, %arg18: memref<3x128x128xbf16, #tpu.memory_space<vmem>>, %arg19: memref<1x128xf32, #tpu.memory_space<vmem>>, %arg20: memref<1x128x128xbf16, #tpu.memory_space<vmem>>, %arg21: memref<1x128xf32, #tpu.memory_space<vmem>>, %arg22: memref<3x128x128xbf16, #tpu.memory_space<vmem>>, %arg23: memref<1x128xf32, #tpu.memory_space<vmem>>, %arg24: memref<1x32x16xf32, #tpu.memory_space<vmem>>, %arg25: memref<72x128xf32, #tpu.memory_space<vmem>>) attributes {dimension_semantics = [#tpu.dimension_semantics<parallel>], iteration_bounds = array<i64: 2>, scalar_prefetch = 0 : i64, scratch_operands = 1 : i64, tpu.core_type = #tpu.core_type<tc>, window_params = [{transform_indices = @transform_0, window_bounds = array<i64: 1, 4, 64>}, {pipeline_mode = #tpu.pipeline_mode<synchronous>, transform_indices = @transform_1, window_bounds = array<i64: 4, 128, 128>}, {pipeline_mode = #tpu.pipeline_mode<synchronous>, transform_indices = @transform_2, window_bounds = array<i64: 1, 128>}, {pipeline_mode = #tpu.pipeline_mode<synchronous>, transform_indices = @transform_3, window_bounds = array<i64: 3, 128, 128>}, {pipeline_mode = #tpu.pipeline_mode<synchronous>, transform_indices = @transform_4, window_bounds = array<i64: 1, 128>}, {pipeline_mode = #tpu.pipeline_mode<synchronous>, transform_indices = @transform_5, window_bounds = array<i64: 1, 128, 128>}, {pipeline_mode = #tpu.pipeline_mode<synchronous>, transform_indices = @transform_6, window_bounds = array<i64: 1, 128>}, {pipeline_mode = #tpu.pipeline_mode<synchronous>, transform_indices = @transform_7, window_bounds = array<i64: 3, 128, 128>}, {pipeline_mode = #tpu.pipeline_mode<synchronous>, transform_indices = @transform_8, window_bounds = array<i64: 1, 128>}, {pipeline_mode = #tpu.pipeline_mode<synchronous>, transform_indices = @transform_9, window_bounds = array<i64: 1, 128, 128>}, {pipeline_mode = #tpu.pipeline_mode<synchronous>, transform_indices = @transform_10, window_bounds = array<i64: 1, 128>}, {pipeline_mode = #tpu.pipeline_mode<synchronous>, transform_indices = @transform_11, window_bounds = array<i64: 4, 128, 128>}, {pipeline_mode = #tpu.pipeline_mode<synchronous>, transform_indices = @transform_12, window_bounds = array<i64: 1, 128>}, {pipeline_mode = #tpu.pipeline_mode<synchronous>, transform_indices = @transform_13, window_bounds = array<i64: 3, 128, 128>}, {pipeline_mode = #tpu.pipeline_mode<synchronous>, transform_indices = @transform_14, window_bounds = array<i64: 1, 128>}, {pipeline_mode = #tpu.pipeline_mode<synchronous>, transform_indices = @transform_15, window_bounds = array<i64: 1, 128, 128>}, {pipeline_mode = #tpu.pipeline_mode<synchronous>, transform_indices = @transform_16, window_bounds = array<i64: 1, 128>}, {pipeline_mode = #tpu.pipeline_mode<synchronous>, transform_indices = @transform_17, window_bounds = array<i64: 3, 128, 128>}, {pipeline_mode = #tpu.pipeline_mode<synchronous>, transform_indices = @transform_18, window_bounds = array<i64: 1, 128>}, {pipeline_mode = #tpu.pipeline_mode<synchronous>, transform_indices = @transform_19, window_bounds = array<i64: 1, 128, 128>}, {pipeline_mode = #tpu.pipeline_mode<synchronous>, transform_indices = @transform_20, window_bounds = array<i64: 1, 128>}, {pipeline_mode = #tpu.pipeline_mode<synchronous>, transform_indices = @transform_21, window_bounds = array<i64: 3, 128, 128>}, {pipeline_mode = #tpu.pipeline_mode<synchronous>, transform_indices = @transform_22, window_bounds = array<i64: 1, 128>}, {transform_indices = @transform_23, window_bounds = array<i64: 1, 32, 16>}]} {
    %cst = arith.constant 0.000000e+00 : f32
    %0 = vector.broadcast %cst : f32 to vector<64x128xf32>
    %c0 = arith.constant 0 : index
    %c0_0 = arith.constant 0 : index
    %1 = vector.load %arg25[%c0, %c0_0] : memref<72x128xf32, #tpu.memory_space<vmem>>, vector<64x128xf32>
    tpu.vector_store %arg25[%c0, %c0_0], %0 {strides = array<i32>} : memref<72x128xf32, #tpu.memory_space<vmem>>, vector<64x128xf32>,
    %c0_1 = arith.constant 0 : index
    %c0_2 = arith.constant 0 : index
    %c0_3 = arith.constant 0 : index
    %2 = vector.load %arg1[%c0_1, %c0_2, %c0_3] : memref<1x4x64xf32, #tpu.memory_space<vmem>>, vector<1x4x64xf32>
    %3 = vector.shape_cast %2 : vector<1x4x64xf32> to vector<4x64xf32>
    %4 = tpu.transpose %3, [1, 0] : vector<4x64xf32> -> vector<64x4xf32>
    %c0_4 = arith.constant 0 : index
    %c0_5 = arith.constant 0 : index
    %5 = vector.load %arg25[%c0_4, %c0_5] : memref<72x128xf32, #tpu.memory_space<vmem>>, vector<64x4xf32>
    tpu.vector_store %arg25[%c0_4, %c0_5], %4 {strides = array<i32>} : memref<72x128xf32, #tpu.memory_space<vmem>>, vector<64x4xf32>,
    %c0_6 = arith.constant 0 : index
    %c0_7 = arith.constant 0 : index
    %6 = vector.load %arg25[%c0_6, %c0_7] : memref<72x128xf32, #tpu.memory_space<vmem>>, vector<64x128xf32>
    %cst_8 = arith.constant 0.000000e+00 : f32
    %7 = vector.broadcast %cst_8 : f32 to vector<1x128xf32>
    %c0_9 = arith.constant 0 : index
    %c0_10 = arith.constant 0 : index
    %8 = vector.load %arg25[%c0_9, %c0_10] : memref<72x128xf32, #tpu.memory_space<vmem>>, vector<1x128xf32>
    tpu.vector_store %arg25[%c0_9, %c0_10], %7 {strides = array<i32>} : memref<72x128xf32, #tpu.memory_space<vmem>>, vector<1x128xf32>,
    %cst_11 = arith.constant 0.000000e+00 : f32
    %9 = vector.broadcast %cst_11 : f32 to vector<1x128xf32>
    %c65 = arith.constant 65 : index
    %c0_12 = arith.constant 0 : index
    %10 = vector.load %arg25[%c65, %c0_12] : memref<72x128xf32, #tpu.memory_space<vmem>>, vector<1x128xf32>
    tpu.vector_store %arg25[%c65, %c0_12], %9 {strides = array<i32>} : memref<72x128xf32, #tpu.memory_space<vmem>>, vector<1x128xf32>,
    %c1 = arith.constant 1 : index
    %c0_13 = arith.constant 0 : index
    %11 = vector.load %arg25[%c1, %c0_13] : memref<72x128xf32, #tpu.memory_space<vmem>>, vector<64x128xf32>
    tpu.vector_store %arg25[%c1, %c0_13], %6 {strides = array<i32>} : memref<72x128xf32, #tpu.memory_space<vmem>>, vector<64x128xf32>,
    %c0_14 = arith.constant 0 : index
    %c0_15 = arith.constant 0 : index
    %12 = tpu.strided_load %arg25[%c0_14, %c0_15] {strides = array<i32: 2, 1>} : memref<72x128xf32, #tpu.memory_space<vmem>>, vector<32x128xf32>
    %13 = arith.truncf %12 : vector<32x128xf32> to vector<32x128xbf16>
    %c0_16 = arith.constant 0 : index
    %c0_17 = arith.constant 0 : index
    %c0_18 = arith.constant 0 : index
    %14 = vector.load %arg2[%c0_16, %c0_17, %c0_18] : memref<4x128x128xbf16, #tpu.memory_space<vmem>>, vector<1x128x128xbf16>
    %15 = vector.shape_cast %14 : vector<1x128x128xbf16> to vector<128x128xbf16>
    %cst_19 = arith.constant dense<0.000000e+00> : vector<32x128xf32>
    %16 = tpu.matmul %13, %15, %cst_19 {dimension_numbers = #tpu.dot_dimension_numbers<[1], [0], [0], [1], [0, 0, 1, 1], [], []>} : vector<32x128xbf16>, vector<128x128xbf16>, vector<32x128xf32> -> vector<32x128xf32>
    %c1_20 = arith.constant 1 : index
    %c0_21 = arith.constant 0 : index
    %17 = tpu.strided_load %arg25[%c1_20, %c0_21] {strides = array<i32: 2, 1>} : memref<72x128xf32, #tpu.memory_space<vmem>>, vector<32x128xf32>
    %18 = arith.truncf %17 : vector<32x128xf32> to vector<32x128xbf16>
    %c1_22 = arith.constant 1 : index
    %c0_23 = arith.constant 0 : index
    %c0_24 = arith.constant 0 : index
    %19 = vector.load %arg2[%c1_22, %c0_23, %c0_24] : memref<4x128x128xbf16, #tpu.memory_space<vmem>>, vector<1x128x128xbf16>
    %20 = vector.shape_cast %19 : vector<1x128x128xbf16> to vector<128x128xbf16>
    %cst_25 = arith.constant dense<0.000000e+00> : vector<32x128xf32>
    %21 = tpu.matmul %18, %20, %cst_25 {dimension_numbers = #tpu.dot_dimension_numbers<[1], [0], [0], [1], [0, 0, 1, 1], [], []>} : vector<32x128xbf16>, vector<128x128xbf16>, vector<32x128xf32> -> vector<32x128xf32>
    %22 = arith.addf %16, %21 : vector<32x128xf32>
    %c2 = arith.constant 2 : index
    %c0_26 = arith.constant 0 : index
    %23 = tpu.strided_load %arg25[%c2, %c0_26] {strides = array<i32: 2, 1>} : memref<72x128xf32, #tpu.memory_space<vmem>>, vector<32x128xf32>
    %24 = arith.truncf %23 : vector<32x128xf32> to vector<32x128xbf16>
    %c2_27 = arith.constant 2 : index
    %c0_28 = arith.constant 0 : index
    %c0_29 = arith.constant 0 : index
    %25 = vector.load %arg2[%c2_27, %c0_28, %c0_29] : memref<4x128x128xbf16, #tpu.memory_space<vmem>>, vector<1x128x128xbf16>
    %26 = vector.shape_cast %25 : vector<1x128x128xbf16> to vector<128x128xbf16>
    %cst_30 = arith.constant dense<0.000000e+00> : vector<32x128xf32>
    %27 = tpu.matmul %24, %26, %cst_30 {dimension_numbers = #tpu.dot_dimension_numbers<[1], [0], [0], [1], [0, 0, 1, 1], [], []>} : vector<32x128xbf16>, vector<128x128xbf16>, vector<32x128xf32> -> vector<32x128xf32>
    %28 = arith.addf %22, %27 : vector<32x128xf32>
    %c3 = arith.constant 3 : index
    %c0_31 = arith.constant 0 : index
    %29 = tpu.strided_load %arg25[%c3, %c0_31] {strides = array<i32: 2, 1>} : memref<72x128xf32, #tpu.memory_space<vmem>>, vector<32x128xf32>
    %30 = arith.truncf %29 : vector<32x128xf32> to vector<32x128xbf16>
    %c3_32 = arith.constant 3 : index
    %c0_33 = arith.constant 0 : index
    %c0_34 = arith.constant 0 : index
    %31 = vector.load %arg2[%c3_32, %c0_33, %c0_34] : memref<4x128x128xbf16, #tpu.memory_space<vmem>>, vector<1x128x128xbf16>
    %32 = vector.shape_cast %31 : vector<1x128x128xbf16> to vector<128x128xbf16>
    %cst_35 = arith.constant dense<0.000000e+00> : vector<32x128xf32>
    %33 = tpu.matmul %30, %32, %cst_35 {dimension_numbers = #tpu.dot_dimension_numbers<[1], [0], [0], [1], [0, 0, 1, 1], [], []>} : vector<32x128xbf16>, vector<128x128xbf16>, vector<32x128xf32> -> vector<32x128xf32>
    %34 = arith.addf %28, %33 : vector<32x128xf32>
    %c0_36 = arith.constant 0 : index
    %c0_37 = arith.constant 0 : index
    %35 = vector.load %arg3[%c0_36, %c0_37] : memref<1x128xf32, #tpu.memory_space<vmem>>, vector<1x128xf32>
    %36 = vector.broadcast %35 : vector<1x128xf32> to vector<32x128xf32>
    %37 = arith.addf %34, %36 : vector<32x128xf32>
    %cst_38 = arith.constant 0.000000e+00 : f32
    %38 = vector.broadcast %cst_38 : f32 to vector<32x128xf32>
    %39 = arith.maximumf %37, %38 : vector<32x128xf32>
    %cst_39 = arith.constant 0.000000e+00 : f32
    %40 = vector.broadcast %cst_39 : f32 to vector<1x128xf32>
    %c0_40 = arith.constant 0 : index
    %c0_41 = arith.constant 0 : index
    %41 = vector.load %arg25[%c0_40, %c0_41] : memref<72x128xf32, #tpu.memory_space<vmem>>, vector<1x128xf32>
    tpu.vector_store %arg25[%c0_40, %c0_41], %40 {strides = array<i32>} : memref<72x128xf32, #tpu.memory_space<vmem>>, vector<1x128xf32>,
    %cst_42 = arith.constant 0.000000e+00 : f32
    %42 = vector.broadcast %cst_42 : f32 to vector<1x128xf32>
    %c33 = arith.constant 33 : index
    %c0_43 = arith.constant 0 : index
    %43 = vector.load %arg25[%c33, %c0_43] : memref<72x128xf32, #tpu.memory_space<vmem>>, vector<1x128xf32>
    tpu.vector_store %arg25[%c33, %c0_43], %42 {strides = array<i32>} : memref<72x128xf32, #tpu.memory_space<vmem>>, vector<1x128xf32>,
    %c1_44 = arith.constant 1 : index
    %c0_45 = arith.constant 0 : index
    %44 = vector.load %arg25[%c1_44, %c0_45] : memref<72x128xf32, #tpu.memory_space<vmem>>, vector<32x128xf32>
    tpu.vector_store %arg25[%c1_44, %c0_45], %39 {strides = array<i32>} : memref<72x128xf32, #tpu.memory_space<vmem>>, vector<32x128xf32>,
    %c0_46 = arith.constant 0 : index
    %c0_47 = arith.constant 0 : index
    %45 = vector.load %arg25[%c0_46, %c0_47] : memref<72x128xf32, #tpu.memory_space<vmem>>, vector<32x128xf32>
    %46 = arith.truncf %45 : vector<32x128xf32> to vector<32x128xbf16>
    %c0_48 = arith.constant 0 : index
    %c0_49 = arith.constant 0 : index
    %c0_50 = arith.constant 0 : index
    %47 = vector.load %arg4[%c0_48, %c0_49, %c0_50] : memref<3x128x128xbf16, #tpu.memory_space<vmem>>, vector<1x128x128xbf16>
    %48 = vector.shape_cast %47 : vector<1x128x128xbf16> to vector<128x128xbf16>
    %cst_51 = arith.constant dense<0.000000e+00> : vector<32x128xf32>
    %49 = tpu.matmul %46, %48, %cst_51 {dimension_numbers = #tpu.dot_dimension_numbers<[1], [0], [0], [1], [0, 0, 1, 1], [], []>} : vector<32x128xbf16>, vector<128x128xbf16>, vector<32x128xf32> -> vector<32x128xf32>
    %c1_52 = arith.constant 1 : index
    %c0_53 = arith.constant 0 : index
    %50 = vector.load %arg25[%c1_52, %c0_53] : memref<72x128xf32, #tpu.memory_space<vmem>>, vector<32x128xf32>
    %51 = arith.truncf %50 : vector<32x128xf32> to vector<32x128xbf16>
    %c1_54 = arith.constant 1 : index
    %c0_55 = arith.constant 0 : index
    %c0_56 = arith.constant 0 : index
    %52 = vector.load %arg4[%c1_54, %c0_55, %c0_56] : memref<3x128x128xbf16, #tpu.memory_space<vmem>>, vector<1x128x128xbf16>
    %53 = vector.shape_cast %52 : vector<1x128x128xbf16> to vector<128x128xbf16>
    %cst_57 = arith.constant dense<0.000000e+00> : vector<32x128xf32>
    %54 = tpu.matmul %51, %53, %cst_57 {dimension_numbers = #tpu.dot_dimension_numbers<[1], [0], [0], [1], [0, 0, 1, 1], [], []>} : vector<32x128xbf16>, vector<128x128xbf16>, vector<32x128xf32> -> vector<32x128xf32>
    %55 = arith.addf %49, %54 : vector<32x128xf32>
    %c2_58 = arith.constant 2 : index
    %c0_59 = arith.constant 0 : index
    %56 = vector.load %arg25[%c2_58, %c0_59] : memref<72x128xf32, #tpu.memory_space<vmem>>, vector<32x128xf32>
    %57 = arith.truncf %56 : vector<32x128xf32> to vector<32x128xbf16>
    %c2_60 = arith.constant 2 : index
    %c0_61 = arith.constant 0 : index
    %c0_62 = arith.constant 0 : index
    %58 = vector.load %arg4[%c2_60, %c0_61, %c0_62] : memref<3x128x128xbf16, #tpu.memory_space<vmem>>, vector<1x128x128xbf16>
    %59 = vector.shape_cast %58 : vector<1x128x128xbf16> to vector<128x128xbf16>
    %cst_63 = arith.constant dense<0.000000e+00> : vector<32x128xf32>
    %60 = tpu.matmul %57, %59, %cst_63 {dimension_numbers = #tpu.dot_dimension_numbers<[1], [0], [0], [1], [0, 0, 1, 1], [], []>} : vector<32x128xbf16>, vector<128x128xbf16>, vector<32x128xf32> -> vector<32x128xf32>
    %61 = arith.addf %55, %60 : vector<32x128xf32>
    %c0_64 = arith.constant 0 : index
    %c0_65 = arith.constant 0 : index
    %62 = vector.load %arg5[%c0_64, %c0_65] : memref<1x128xf32, #tpu.memory_space<vmem>>, vector<1x128xf32>
    %63 = vector.broadcast %62 : vector<1x128xf32> to vector<32x128xf32>
    %64 = arith.addf %61, %63 : vector<32x128xf32>
    %cst_66 = arith.constant 0.000000e+00 : f32
    %65 = vector.broadcast %cst_66 : f32 to vector<32x128xf32>
    %66 = arith.maximumf %64, %65 : vector<32x128xf32>
    %67 = arith.truncf %66 : vector<32x128xf32> to vector<32x128xbf16>
    %c0_67 = arith.constant 0 : index
    %c0_68 = arith.constant 0 : index
    %c0_69 = arith.constant 0 : index
    %68 = vector.load %arg6[%c0_67, %c0_68, %c0_69] : memref<1x128x128xbf16, #tpu.memory_space<vmem>>, vector<1x128x128xbf16>
    %69 = vector.shape_cast %68 : vector<1x128x128xbf16> to vector<128x128xbf16>
    %cst_70 = arith.constant dense<0.000000e+00> : vector<32x128xf32>
    %70 = tpu.matmul %67, %69, %cst_70 {dimension_numbers = #tpu.dot_dimension_numbers<[1], [0], [0], [1], [0, 0, 1, 1], [], []>} : vector<32x128xbf16>, vector<128x128xbf16>, vector<32x128xf32> -> vector<32x128xf32>
    %c0_71 = arith.constant 0 : index
    %c0_72 = arith.constant 0 : index
    %71 = vector.load %arg7[%c0_71, %c0_72] : memref<1x128xf32, #tpu.memory_space<vmem>>, vector<1x128xf32>
    %72 = vector.broadcast %71 : vector<1x128xf32> to vector<32x128xf32>
    %73 = arith.addf %70, %72 : vector<32x128xf32>
    %cst_73 = arith.constant 1.000000e+00 : f32
    %74 = vector.broadcast %cst_73 : f32 to vector<32x128xf32>
    %75 = arith.mulf %74, %73 : vector<32x128xf32>
    %76 = arith.addf %37, %75 : vector<32x128xf32>
    %cst_74 = arith.constant 0.000000e+00 : f32
    %77 = vector.broadcast %cst_74 : f32 to vector<32x128xf32>
    %78 = arith.maximumf %76, %77 : vector<32x128xf32>
    %cst_75 = arith.constant 0.000000e+00 : f32
    %79 = vector.broadcast %cst_75 : f32 to vector<2x128xf32>
    %c0_76 = arith.constant 0 : index
    %c0_77 = arith.constant 0 : index
    %80 = vector.load %arg25[%c0_76, %c0_77] : memref<72x128xf32, #tpu.memory_space<vmem>>, vector<2x128xf32>
    tpu.vector_store %arg25[%c0_76, %c0_77], %79 {strides = array<i32>} : memref<72x128xf32, #tpu.memory_space<vmem>>, vector<2x128xf32>,
    %cst_78 = arith.constant 0.000000e+00 : f32
    %81 = vector.broadcast %cst_78 : f32 to vector<2x128xf32>
    %c34 = arith.constant 34 : index
    %c0_79 = arith.constant 0 : index
    %82 = vector.load %arg25[%c34, %c0_79] : memref<72x128xf32, #tpu.memory_space<vmem>>, vector<2x128xf32>
    tpu.vector_store %arg25[%c34, %c0_79], %81 {strides = array<i32>} : memref<72x128xf32, #tpu.memory_space<vmem>>, vector<2x128xf32>,
    %c2_80 = arith.constant 2 : index
    %c0_81 = arith.constant 0 : index
    %83 = vector.load %arg25[%c2_80, %c0_81] : memref<72x128xf32, #tpu.memory_space<vmem>>, vector<32x128xf32>
    tpu.vector_store %arg25[%c2_80, %c0_81], %78 {strides = array<i32>} : memref<72x128xf32, #tpu.memory_space<vmem>>, vector<32x128xf32>,
    %c0_82 = arith.constant 0 : index
    %c0_83 = arith.constant 0 : index
    %84 = vector.load %arg25[%c0_82, %c0_83] : memref<72x128xf32, #tpu.memory_space<vmem>>, vector<32x128xf32>
    %85 = arith.truncf %84 : vector<32x128xf32> to vector<32x128xbf16>
    %c0_84 = arith.constant 0 : index
    %c0_85 = arith.constant 0 : index
    %c0_86 = arith.constant 0 : index
    %86 = vector.load %arg8[%c0_84, %c0_85, %c0_86] : memref<3x128x128xbf16, #tpu.memory_space<vmem>>, vector<1x128x128xbf16>
    %87 = vector.shape_cast %86 : vector<1x128x128xbf16> to vector<128x128xbf16>
    %cst_87 = arith.constant dense<0.000000e+00> : vector<32x128xf32>
    %88 = tpu.matmul %85, %87, %cst_87 {dimension_numbers = #tpu.dot_dimension_numbers<[1], [0], [0], [1], [0, 0, 1, 1], [], []>} : vector<32x128xbf16>, vector<128x128xbf16>, vector<32x128xf32> -> vector<32x128xf32>
    %c2_88 = arith.constant 2 : index
    %c0_89 = arith.constant 0 : index
    %89 = vector.load %arg25[%c2_88, %c0_89] : memref<72x128xf32, #tpu.memory_space<vmem>>, vector<32x128xf32>
    %90 = arith.truncf %89 : vector<32x128xf32> to vector<32x128xbf16>
    %c1_90 = arith.constant 1 : index
    %c0_91 = arith.constant 0 : index
    %c0_92 = arith.constant 0 : index
    %91 = vector.load %arg8[%c1_90, %c0_91, %c0_92] : memref<3x128x128xbf16, #tpu.memory_space<vmem>>, vector<1x128x128xbf16>
    %92 = vector.shape_cast %91 : vector<1x128x128xbf16> to vector<128x128xbf16>
    %cst_93 = arith.constant dense<0.000000e+00> : vector<32x128xf32>
    %93 = tpu.matmul %90, %92, %cst_93 {dimension_numbers = #tpu.dot_dimension_numbers<[1], [0], [0], [1], [0, 0, 1, 1], [], []>} : vector<32x128xbf16>, vector<128x128xbf16>, vector<32x128xf32> -> vector<32x128xf32>
    %94 = arith.addf %88, %93 : vector<32x128xf32>
    %c4 = arith.constant 4 : index
    %c0_94 = arith.constant 0 : index
    %95 = vector.load %arg25[%c4, %c0_94] : memref<72x128xf32, #tpu.memory_space<vmem>>, vector<32x128xf32>
    %96 = arith.truncf %95 : vector<32x128xf32> to vector<32x128xbf16>
    %c2_95 = arith.constant 2 : index
    %c0_96 = arith.constant 0 : index
    %c0_97 = arith.constant 0 : index
    %97 = vector.load %arg8[%c2_95, %c0_96, %c0_97] : memref<3x128x128xbf16, #tpu.memory_space<vmem>>, vector<1x128x128xbf16>
    %98 = vector.shape_cast %97 : vector<1x128x128xbf16> to vector<128x128xbf16>
    %cst_98 = arith.constant dense<0.000000e+00> : vector<32x128xf32>
    %99 = tpu.matmul %96, %98, %cst_98 {dimension_numbers = #tpu.dot_dimension_numbers<[1], [0], [0], [1], [0, 0, 1, 1], [], []>} : vector<32x128xbf16>, vector<128x128xbf16>, vector<32x128xf32> -> vector<32x128xf32>
    %100 = arith.addf %94, %99 : vector<32x128xf32>
    %c0_99 = arith.constant 0 : index
    %c0_100 = arith.constant 0 : index
    %101 = vector.load %arg9[%c0_99, %c0_100] : memref<1x128xf32, #tpu.memory_space<vmem>>, vector<1x128xf32>
    %102 = vector.broadcast %101 : vector<1x128xf32> to vector<32x128xf32>
    %103 = arith.addf %100, %102 : vector<32x128xf32>
    %cst_101 = arith.constant 0.000000e+00 : f32
    %104 = vector.broadcast %cst_101 : f32 to vector<32x128xf32>
    %105 = arith.maximumf %103, %104 : vector<32x128xf32>
    %106 = arith.truncf %105 : vector<32x128xf32> to vector<32x128xbf16>
    %c0_102 = arith.constant 0 : index
    %c0_103 = arith.constant 0 : index
    %c0_104 = arith.constant 0 : index
    %107 = vector.load %arg10[%c0_102, %c0_103, %c0_104] : memref<1x128x128xbf16, #tpu.memory_space<vmem>>, vector<1x128x128xbf16>
    %108 = vector.shape_cast %107 : vector<1x128x128xbf16> to vector<128x128xbf16>
    %cst_105 = arith.constant dense<0.000000e+00> : vector<32x128xf32>
    %109 = tpu.matmul %106, %108, %cst_105 {dimension_numbers = #tpu.dot_dimension_numbers<[1], [0], [0], [1], [0, 0, 1, 1], [], []>} : vector<32x128xbf16>, vector<128x128xbf16>, vector<32x128xf32> -> vector<32x128xf32>
    %c0_106 = arith.constant 0 : index
    %c0_107 = arith.constant 0 : index
    %110 = vector.load %arg11[%c0_106, %c0_107] : memref<1x128xf32, #tpu.memory_space<vmem>>, vector<1x128xf32>
    %111 = vector.broadcast %110 : vector<1x128xf32> to vector<32x128xf32>
    %112 = arith.addf %109, %111 : vector<32x128xf32>
    %cst_108 = arith.constant 1.000000e+00 : f32
    %113 = vector.broadcast %cst_108 : f32 to vector<32x128xf32>
    %114 = arith.mulf %113, %112 : vector<32x128xf32>
    %115 = arith.addf %76, %114 : vector<32x128xf32>
    %cst_109 = arith.constant 0.000000e+00 : f32
    %116 = vector.broadcast %cst_109 : f32 to vector<1x128xf32>
    %c0_110 = arith.constant 0 : index
    %c0_111 = arith.constant 0 : index
    %117 = vector.load %arg25[%c0_110, %c0_111] : memref<72x128xf32, #tpu.memory_space<vmem>>, vector<1x128xf32>
    tpu.vector_store %arg25[%c0_110, %c0_111], %116 {strides = array<i32>} : memref<72x128xf32, #tpu.memory_space<vmem>>, vector<1x128xf32>,
    %cst_112 = arith.constant 0.000000e+00 : f32
    %118 = vector.broadcast %cst_112 : f32 to vector<1x128xf32>
    %c33_113 = arith.constant 33 : index
    %c0_114 = arith.constant 0 : index
    %119 = vector.load %arg25[%c33_113, %c0_114] : memref<72x128xf32, #tpu.memory_space<vmem>>, vector<1x128xf32>
    tpu.vector_store %arg25[%c33_113, %c0_114], %118 {strides = array<i32>} : memref<72x128xf32, #tpu.memory_space<vmem>>, vector<1x128xf32>,
    %c1_115 = arith.constant 1 : index
    %c0_116 = arith.constant 0 : index
    %120 = vector.load %arg25[%c1_115, %c0_116] : memref<72x128xf32, #tpu.memory_space<vmem>>, vector<32x128xf32>
    tpu.vector_store %arg25[%c1_115, %c0_116], %115 {strides = array<i32>} : memref<72x128xf32, #tpu.memory_space<vmem>>, vector<32x128xf32>,
    %c0_117 = arith.constant 0 : index
    %c0_118 = arith.constant 0 : index
    %121 = tpu.strided_load %arg25[%c0_117, %c0_118] {strides = array<i32: 2, 1>} : memref<72x128xf32, #tpu.memory_space<vmem>>, vector<16x128xf32>
    %122 = arith.truncf %121 : vector<16x128xf32> to vector<16x128xbf16>
    %c0_119 = arith.constant 0 : index
    %c0_120 = arith.constant 0 : index
    %c0_121 = arith.constant 0 : index
    %123 = vector.load %arg12[%c0_119, %c0_120, %c0_121] : memref<4x128x128xbf16, #tpu.memory_space<vmem>>, vector<1x128x128xbf16>
    %124 = vector.shape_cast %123 : vector<1x128x128xbf16> to vector<128x128xbf16>
    %cst_122 = arith.constant dense<0.000000e+00> : vector<16x128xf32>
    %125 = tpu.matmul %122, %124, %cst_122 {dimension_numbers = #tpu.dot_dimension_numbers<[1], [0], [0], [1], [0, 0, 1, 1], [], []>} : vector<16x128xbf16>, vector<128x128xbf16>, vector<16x128xf32> -> vector<16x128xf32>
    %c1_123 = arith.constant 1 : index
    %c0_124 = arith.constant 0 : index
    %126 = tpu.strided_load %arg25[%c1_123, %c0_124] {strides = array<i32: 2, 1>} : memref<72x128xf32, #tpu.memory_space<vmem>>, vector<16x128xf32>
    %127 = arith.truncf %126 : vector<16x128xf32> to vector<16x128xbf16>
    %c1_125 = arith.constant 1 : index
    %c0_126 = arith.constant 0 : index
    %c0_127 = arith.constant 0 : index
    %128 = vector.load %arg12[%c1_125, %c0_126, %c0_127] : memref<4x128x128xbf16, #tpu.memory_space<vmem>>, vector<1x128x128xbf16>
    %129 = vector.shape_cast %128 : vector<1x128x128xbf16> to vector<128x128xbf16>
    %cst_128 = arith.constant dense<0.000000e+00> : vector<16x128xf32>
    %130 = tpu.matmul %127, %129, %cst_128 {dimension_numbers = #tpu.dot_dimension_numbers<[1], [0], [0], [1], [0, 0, 1, 1], [], []>} : vector<16x128xbf16>, vector<128x128xbf16>, vector<16x128xf32> -> vector<16x128xf32>
    %131 = arith.addf %125, %130 : vector<16x128xf32>
    %c2_129 = arith.constant 2 : index
    %c0_130 = arith.constant 0 : index
    %132 = tpu.strided_load %arg25[%c2_129, %c0_130] {strides = array<i32: 2, 1>} : memref<72x128xf32, #tpu.memory_space<vmem>>, vector<16x128xf32>
    %133 = arith.truncf %132 : vector<16x128xf32> to vector<16x128xbf16>
    %c2_131 = arith.constant 2 : index
    %c0_132 = arith.constant 0 : index
    %c0_133 = arith.constant 0 : index
    %134 = vector.load %arg12[%c2_131, %c0_132, %c0_133] : memref<4x128x128xbf16, #tpu.memory_space<vmem>>, vector<1x128x128xbf16>
    %135 = vector.shape_cast %134 : vector<1x128x128xbf16> to vector<128x128xbf16>
    %cst_134 = arith.constant dense<0.000000e+00> : vector<16x128xf32>
    %136 = tpu.matmul %133, %135, %cst_134 {dimension_numbers = #tpu.dot_dimension_numbers<[1], [0], [0], [1], [0, 0, 1, 1], [], []>} : vector<16x128xbf16>, vector<128x128xbf16>, vector<16x128xf32> -> vector<16x128xf32>
    %137 = arith.addf %131, %136 : vector<16x128xf32>
    %c3_135 = arith.constant 3 : index
    %c0_136 = arith.constant 0 : index
    %138 = tpu.strided_load %arg25[%c3_135, %c0_136] {strides = array<i32: 2, 1>} : memref<72x128xf32, #tpu.memory_space<vmem>>, vector<16x128xf32>
    %139 = arith.truncf %138 : vector<16x128xf32> to vector<16x128xbf16>
    %c3_137 = arith.constant 3 : index
    %c0_138 = arith.constant 0 : index
    %c0_139 = arith.constant 0 : index
    %140 = vector.load %arg12[%c3_137, %c0_138, %c0_139] : memref<4x128x128xbf16, #tpu.memory_space<vmem>>, vector<1x128x128xbf16>
    %141 = vector.shape_cast %140 : vector<1x128x128xbf16> to vector<128x128xbf16>
    %cst_140 = arith.constant dense<0.000000e+00> : vector<16x128xf32>
    %142 = tpu.matmul %139, %141, %cst_140 {dimension_numbers = #tpu.dot_dimension_numbers<[1], [0], [0], [1], [0, 0, 1, 1], [], []>} : vector<16x128xbf16>, vector<128x128xbf16>, vector<16x128xf32> -> vector<16x128xf32>
    %143 = arith.addf %137, %142 : vector<16x128xf32>
    %c0_141 = arith.constant 0 : index
    %c0_142 = arith.constant 0 : index
    %144 = vector.load %arg13[%c0_141, %c0_142] : memref<1x128xf32, #tpu.memory_space<vmem>>, vector<1x128xf32>
    %145 = vector.broadcast %144 : vector<1x128xf32> to vector<16x128xf32>
    %146 = arith.addf %143, %145 : vector<16x128xf32>
    %cst_143 = arith.constant 0.000000e+00 : f32
    %147 = vector.broadcast %cst_143 : f32 to vector<16x128xf32>
    %148 = arith.maximumf %146, %147 : vector<16x128xf32>
    %cst_144 = arith.constant 0.000000e+00 : f32
    %149 = vector.broadcast %cst_144 : f32 to vector<1x128xf32>
    %c0_145 = arith.constant 0 : index
    %c0_146 = arith.constant 0 : index
    %150 = vector.load %arg25[%c0_145, %c0_146] : memref<72x128xf32, #tpu.memory_space<vmem>>, vector<1x128xf32>
    tpu.vector_store %arg25[%c0_145, %c0_146], %149 {strides = array<i32>} : memref<72x128xf32, #tpu.memory_space<vmem>>, vector<1x128xf32>,
    %cst_147 = arith.constant 0.000000e+00 : f32
    %151 = vector.broadcast %cst_147 : f32 to vector<1x128xf32>
    %c17 = arith.constant 17 : index
    %c0_148 = arith.constant 0 : index
    %152 = vector.load %arg25[%c17, %c0_148] : memref<72x128xf32, #tpu.memory_space<vmem>>, vector<1x128xf32>
    tpu.vector_store %arg25[%c17, %c0_148], %151 {strides = array<i32>} : memref<72x128xf32, #tpu.memory_space<vmem>>, vector<1x128xf32>,
    %c1_149 = arith.constant 1 : index
    %c0_150 = arith.constant 0 : index
    %153 = vector.load %arg25[%c1_149, %c0_150] : memref<72x128xf32, #tpu.memory_space<vmem>>, vector<16x128xf32>
    tpu.vector_store %arg25[%c1_149, %c0_150], %148 {strides = array<i32>} : memref<72x128xf32, #tpu.memory_space<vmem>>, vector<16x128xf32>,
    %c0_151 = arith.constant 0 : index
    %c0_152 = arith.constant 0 : index
    %154 = vector.load %arg25[%c0_151, %c0_152] : memref<72x128xf32, #tpu.memory_space<vmem>>, vector<16x128xf32>
    %155 = arith.truncf %154 : vector<16x128xf32> to vector<16x128xbf16>
    %c0_153 = arith.constant 0 : index
    %c0_154 = arith.constant 0 : index
    %c0_155 = arith.constant 0 : index
    %156 = vector.load %arg14[%c0_153, %c0_154, %c0_155] : memref<3x128x128xbf16, #tpu.memory_space<vmem>>, vector<1x128x128xbf16>
    %157 = vector.shape_cast %156 : vector<1x128x128xbf16> to vector<128x128xbf16>
    %cst_156 = arith.constant dense<0.000000e+00> : vector<16x128xf32>
    %158 = tpu.matmul %155, %157, %cst_156 {dimension_numbers = #tpu.dot_dimension_numbers<[1], [0], [0], [1], [0, 0, 1, 1], [], []>} : vector<16x128xbf16>, vector<128x128xbf16>, vector<16x128xf32> -> vector<16x128xf32>
    %c1_157 = arith.constant 1 : index
    %c0_158 = arith.constant 0 : index
    %159 = vector.load %arg25[%c1_157, %c0_158] : memref<72x128xf32, #tpu.memory_space<vmem>>, vector<16x128xf32>
    %160 = arith.truncf %159 : vector<16x128xf32> to vector<16x128xbf16>
    %c1_159 = arith.constant 1 : index
    %c0_160 = arith.constant 0 : index
    %c0_161 = arith.constant 0 : index
    %161 = vector.load %arg14[%c1_159, %c0_160, %c0_161] : memref<3x128x128xbf16, #tpu.memory_space<vmem>>, vector<1x128x128xbf16>
    %162 = vector.shape_cast %161 : vector<1x128x128xbf16> to vector<128x128xbf16>
    %cst_162 = arith.constant dense<0.000000e+00> : vector<16x128xf32>
    %163 = tpu.matmul %160, %162, %cst_162 {dimension_numbers = #tpu.dot_dimension_numbers<[1], [0], [0], [1], [0, 0, 1, 1], [], []>} : vector<16x128xbf16>, vector<128x128xbf16>, vector<16x128xf32> -> vector<16x128xf32>
    %164 = arith.addf %158, %163 : vector<16x128xf32>
    %c2_163 = arith.constant 2 : index
    %c0_164 = arith.constant 0 : index
    %165 = vector.load %arg25[%c2_163, %c0_164] : memref<72x128xf32, #tpu.memory_space<vmem>>, vector<16x128xf32>
    %166 = arith.truncf %165 : vector<16x128xf32> to vector<16x128xbf16>
    %c2_165 = arith.constant 2 : index
    %c0_166 = arith.constant 0 : index
    %c0_167 = arith.constant 0 : index
    %167 = vector.load %arg14[%c2_165, %c0_166, %c0_167] : memref<3x128x128xbf16, #tpu.memory_space<vmem>>, vector<1x128x128xbf16>
    %168 = vector.shape_cast %167 : vector<1x128x128xbf16> to vector<128x128xbf16>
    %cst_168 = arith.constant dense<0.000000e+00> : vector<16x128xf32>
    %169 = tpu.matmul %166, %168, %cst_168 {dimension_numbers = #tpu.dot_dimension_numbers<[1], [0], [0], [1], [0, 0, 1, 1], [], []>} : vector<16x128xbf16>, vector<128x128xbf16>, vector<16x128xf32> -> vector<16x128xf32>
    %170 = arith.addf %164, %169 : vector<16x128xf32>
    %c0_169 = arith.constant 0 : index
    %c0_170 = arith.constant 0 : index
    %171 = vector.load %arg15[%c0_169, %c0_170] : memref<1x128xf32, #tpu.memory_space<vmem>>, vector<1x128xf32>
    %172 = vector.broadcast %171 : vector<1x128xf32> to vector<16x128xf32>
    %173 = arith.addf %170, %172 : vector<16x128xf32>
    %cst_171 = arith.constant 0.000000e+00 : f32
    %174 = vector.broadcast %cst_171 : f32 to vector<16x128xf32>
    %175 = arith.maximumf %173, %174 : vector<16x128xf32>
    %176 = arith.truncf %175 : vector<16x128xf32> to vector<16x128xbf16>
    %c0_172 = arith.constant 0 : index
    %c0_173 = arith.constant 0 : index
    %c0_174 = arith.constant 0 : index
    %177 = vector.load %arg16[%c0_172, %c0_173, %c0_174] : memref<1x128x128xbf16, #tpu.memory_space<vmem>>, vector<1x128x128xbf16>
    %178 = vector.shape_cast %177 : vector<1x128x128xbf16> to vector<128x128xbf16>
    %cst_175 = arith.constant dense<0.000000e+00> : vector<16x128xf32>
    %179 = tpu.matmul %176, %178, %cst_175 {dimension_numbers = #tpu.dot_dimension_numbers<[1], [0], [0], [1], [0, 0, 1, 1], [], []>} : vector<16x128xbf16>, vector<128x128xbf16>, vector<16x128xf32> -> vector<16x128xf32>
    %c0_176 = arith.constant 0 : index
    %c0_177 = arith.constant 0 : index
    %180 = vector.load %arg17[%c0_176, %c0_177] : memref<1x128xf32, #tpu.memory_space<vmem>>, vector<1x128xf32>
    %181 = vector.broadcast %180 : vector<1x128xf32> to vector<16x128xf32>
    %182 = arith.addf %179, %181 : vector<16x128xf32>
    %cst_178 = arith.constant 1.000000e+00 : f32
    %183 = vector.broadcast %cst_178 : f32 to vector<16x128xf32>
    %184 = arith.mulf %183, %182 : vector<16x128xf32>
    %185 = arith.addf %146, %184 : vector<16x128xf32>
    %cst_179 = arith.constant 0.000000e+00 : f32
    %186 = vector.broadcast %cst_179 : f32 to vector<16x128xf32>
    %187 = arith.maximumf %185, %186 : vector<16x128xf32>
    %cst_180 = arith.constant 0.000000e+00 : f32
    %188 = vector.broadcast %cst_180 : f32 to vector<2x128xf32>
    %c0_181 = arith.constant 0 : index
    %c0_182 = arith.constant 0 : index
    %189 = vector.load %arg25[%c0_181, %c0_182] : memref<72x128xf32, #tpu.memory_space<vmem>>, vector<2x128xf32>
    tpu.vector_store %arg25[%c0_181, %c0_182], %188 {strides = array<i32>} : memref<72x128xf32, #tpu.memory_space<vmem>>, vector<2x128xf32>,
    %cst_183 = arith.constant 0.000000e+00 : f32
    %190 = vector.broadcast %cst_183 : f32 to vector<2x128xf32>
    %c18 = arith.constant 18 : index
    %c0_184 = arith.constant 0 : index
    %191 = vector.load %arg25[%c18, %c0_184] : memref<72x128xf32, #tpu.memory_space<vmem>>, vector<2x128xf32>
    tpu.vector_store %arg25[%c18, %c0_184], %190 {strides = array<i32>} : memref<72x128xf32, #tpu.memory_space<vmem>>, vector<2x128xf32>,
    %c2_185 = arith.constant 2 : index
    %c0_186 = arith.constant 0 : index
    %192 = vector.load %arg25[%c2_185, %c0_186] : memref<72x128xf32, #tpu.memory_space<vmem>>, vector<16x128xf32>
    tpu.vector_store %arg25[%c2_185, %c0_186], %187 {strides = array<i32>} : memref<72x128xf32, #tpu.memory_space<vmem>>, vector<16x128xf32>,
    %c0_187 = arith.constant 0 : index
    %c0_188 = arith.constant 0 : index
    %193 = vector.load %arg25[%c0_187, %c0_188] : memref<72x128xf32, #tpu.memory_space<vmem>>, vector<16x128xf32>
    %194 = arith.truncf %193 : vector<16x128xf32> to vector<16x128xbf16>
    %c0_189 = arith.constant 0 : index
    %c0_190 = arith.constant 0 : index
    %c0_191 = arith.constant 0 : index
    %195 = vector.load %arg18[%c0_189, %c0_190, %c0_191] : memref<3x128x128xbf16, #tpu.memory_space<vmem>>, vector<1x128x128xbf16>
    %196 = vector.shape_cast %195 : vector<1x128x128xbf16> to vector<128x128xbf16>
    %cst_192 = arith.constant dense<0.000000e+00> : vector<16x128xf32>
    %197 = tpu.matmul %194, %196, %cst_192 {dimension_numbers = #tpu.dot_dimension_numbers<[1], [0], [0], [1], [0, 0, 1, 1], [], []>} : vector<16x128xbf16>, vector<128x128xbf16>, vector<16x128xf32> -> vector<16x128xf32>
    %c2_193 = arith.constant 2 : index
    %c0_194 = arith.constant 0 : index
    %198 = vector.load %arg25[%c2_193, %c0_194] : memref<72x128xf32, #tpu.memory_space<vmem>>, vector<16x128xf32>
    %199 = arith.truncf %198 : vector<16x128xf32> to vector<16x128xbf16>
    %c1_195 = arith.constant 1 : index
    %c0_196 = arith.constant 0 : index
    %c0_197 = arith.constant 0 : index
    %200 = vector.load %arg18[%c1_195, %c0_196, %c0_197] : memref<3x128x128xbf16, #tpu.memory_space<vmem>>, vector<1x128x128xbf16>
    %201 = vector.shape_cast %200 : vector<1x128x128xbf16> to vector<128x128xbf16>
    %cst_198 = arith.constant dense<0.000000e+00> : vector<16x128xf32>
    %202 = tpu.matmul %199, %201, %cst_198 {dimension_numbers = #tpu.dot_dimension_numbers<[1], [0], [0], [1], [0, 0, 1, 1], [], []>} : vector<16x128xbf16>, vector<128x128xbf16>, vector<16x128xf32> -> vector<16x128xf32>
    %203 = arith.addf %197, %202 : vector<16x128xf32>
    %c4_199 = arith.constant 4 : index
    %c0_200 = arith.constant 0 : index
    %204 = vector.load %arg25[%c4_199, %c0_200] : memref<72x128xf32, #tpu.memory_space<vmem>>, vector<16x128xf32>
    %205 = arith.truncf %204 : vector<16x128xf32> to vector<16x128xbf16>
    %c2_201 = arith.constant 2 : index
    %c0_202 = arith.constant 0 : index
    %c0_203 = arith.constant 0 : index
    %206 = vector.load %arg18[%c2_201, %c0_202, %c0_203] : memref<3x128x128xbf16, #tpu.memory_space<vmem>>, vector<1x128x128xbf16>
    %207 = vector.shape_cast %206 : vector<1x128x128xbf16> to vector<128x128xbf16>
    %cst_204 = arith.constant dense<0.000000e+00> : vector<16x128xf32>
    %208 = tpu.matmul %205, %207, %cst_204 {dimension_numbers = #tpu.dot_dimension_numbers<[1], [0], [0], [1], [0, 0, 1, 1], [], []>} : vector<16x128xbf16>, vector<128x128xbf16>, vector<16x128xf32> -> vector<16x128xf32>
    %209 = arith.addf %203, %208 : vector<16x128xf32>
    %c0_205 = arith.constant 0 : index
    %c0_206 = arith.constant 0 : index
    %210 = vector.load %arg19[%c0_205, %c0_206] : memref<1x128xf32, #tpu.memory_space<vmem>>, vector<1x128xf32>
    %211 = vector.broadcast %210 : vector<1x128xf32> to vector<16x128xf32>
    %212 = arith.addf %209, %211 : vector<16x128xf32>
    %cst_207 = arith.constant 0.000000e+00 : f32
    %213 = vector.broadcast %cst_207 : f32 to vector<16x128xf32>
    %214 = arith.maximumf %212, %213 : vector<16x128xf32>
    %215 = arith.truncf %214 : vector<16x128xf32> to vector<16x128xbf16>
    %c0_208 = arith.constant 0 : index
    %c0_209 = arith.constant 0 : index
    %c0_210 = arith.constant 0 : index
    %216 = vector.load %arg20[%c0_208, %c0_209, %c0_210] : memref<1x128x128xbf16, #tpu.memory_space<vmem>>, vector<1x128x128xbf16>
    %217 = vector.shape_cast %216 : vector<1x128x128xbf16> to vector<128x128xbf16>
    %cst_211 = arith.constant dense<0.000000e+00> : vector<16x128xf32>
    %218 = tpu.matmul %215, %217, %cst_211 {dimension_numbers = #tpu.dot_dimension_numbers<[1], [0], [0], [1], [0, 0, 1, 1], [], []>} : vector<16x128xbf16>, vector<128x128xbf16>, vector<16x128xf32> -> vector<16x128xf32>
    %c0_212 = arith.constant 0 : index
    %c0_213 = arith.constant 0 : index
    %219 = vector.load %arg21[%c0_212, %c0_213] : memref<1x128xf32, #tpu.memory_space<vmem>>, vector<1x128xf32>
    %220 = vector.broadcast %219 : vector<1x128xf32> to vector<16x128xf32>
    %221 = arith.addf %218, %220 : vector<16x128xf32>
    %cst_214 = arith.constant 1.000000e+00 : f32
    %222 = vector.broadcast %cst_214 : f32 to vector<16x128xf32>
    %223 = arith.mulf %222, %221 : vector<16x128xf32>
    %224 = arith.addf %185, %223 : vector<16x128xf32>
    %cst_215 = arith.constant 0.000000e+00 : f32
    %225 = vector.broadcast %cst_215 : f32 to vector<1x128xf32>
    %c0_216 = arith.constant 0 : index
    %c0_217 = arith.constant 0 : index
    %226 = vector.load %arg25[%c0_216, %c0_217] : memref<72x128xf32, #tpu.memory_space<vmem>>, vector<1x128xf32>
    tpu.vector_store %arg25[%c0_216, %c0_217], %225 {strides = array<i32>} : memref<72x128xf32, #tpu.memory_space<vmem>>, vector<1x128xf32>,
    %cst_218 = arith.constant 0.000000e+00 : f32
    %227 = vector.broadcast %cst_218 : f32 to vector<1x128xf32>
    %c17_219 = arith.constant 17 : index
    %c0_220 = arith.constant 0 : index
    %228 = vector.load %arg25[%c17_219, %c0_220] : memref<72x128xf32, #tpu.memory_space<vmem>>, vector<1x128xf32>
    tpu.vector_store %arg25[%c17_219, %c0_220], %227 {strides = array<i32>} : memref<72x128xf32, #tpu.memory_space<vmem>>, vector<1x128xf32>,
    %c1_221 = arith.constant 1 : index
    %c0_222 = arith.constant 0 : index
    %229 = vector.load %arg25[%c1_221, %c0_222] : memref<72x128xf32, #tpu.memory_space<vmem>>, vector<16x128xf32>
    tpu.vector_store %arg25[%c1_221, %c0_222], %224 {strides = array<i32>} : memref<72x128xf32, #tpu.memory_space<vmem>>, vector<16x128xf32>,
    %c0_223 = arith.constant 0 : index
    %c0_224 = arith.constant 0 : index
    %230 = vector.load %arg25[%c0_223, %c0_224] : memref<72x128xf32, #tpu.memory_space<vmem>>, vector<16x128xf32>
    %231 = arith.truncf %230 : vector<16x128xf32> to vector<16x128xbf16>
    %c0_225 = arith.constant 0 : index
    %c0_226 = arith.constant 0 : index
    %c0_227 = arith.constant 0 : index
    %232 = vector.load %arg22[%c0_225, %c0_226, %c0_227] : memref<3x128x128xbf16, #tpu.memory_space<vmem>>, vector<1x128x128xbf16>
    %233 = vector.shape_cast %232 : vector<1x128x128xbf16> to vector<128x128xbf16>
    %cst_228 = arith.constant dense<0.000000e+00> : vector<16x128xf32>
    %234 = tpu.matmul %231, %233, %cst_228 {dimension_numbers = #tpu.dot_dimension_numbers<[1], [0], [0], [1], [0, 0, 1, 1], [], []>} : vector<16x128xbf16>, vector<128x128xbf16>, vector<16x128xf32> -> vector<16x128xf32>
    %c1_229 = arith.constant 1 : index
    %c0_230 = arith.constant 0 : index
    %235 = vector.load %arg25[%c1_229, %c0_230] : memref<72x128xf32, #tpu.memory_space<vmem>>, vector<16x128xf32>
    %236 = arith.truncf %235 : vector<16x128xf32> to vector<16x128xbf16>
    %c1_231 = arith.constant 1 : index
    %c0_232 = arith.constant 0 : index
    %c0_233 = arith.constant 0 : index
    %237 = vector.load %arg22[%c1_231, %c0_232, %c0_233] : memref<3x128x128xbf16, #tpu.memory_space<vmem>>, vector<1x128x128xbf16>
    %238 = vector.shape_cast %237 : vector<1x128x128xbf16> to vector<128x128xbf16>
    %cst_234 = arith.constant dense<0.000000e+00> : vector<16x128xf32>
    %239 = tpu.matmul %236, %238, %cst_234 {dimension_numbers = #tpu.dot_dimension_numbers<[1], [0], [0], [1], [0, 0, 1, 1], [], []>} : vector<16x128xbf16>, vector<128x128xbf16>, vector<16x128xf32> -> vector<16x128xf32>
    %240 = arith.addf %234, %239 : vector<16x128xf32>
    %c2_235 = arith.constant 2 : index
    %c0_236 = arith.constant 0 : index
    %241 = vector.load %arg25[%c2_235, %c0_236] : memref<72x128xf32, #tpu.memory_space<vmem>>, vector<16x128xf32>
    %242 = arith.truncf %241 : vector<16x128xf32> to vector<16x128xbf16>
    %c2_237 = arith.constant 2 : index
    %c0_238 = arith.constant 0 : index
    %c0_239 = arith.constant 0 : index
    %243 = vector.load %arg22[%c2_237, %c0_238, %c0_239] : memref<3x128x128xbf16, #tpu.memory_space<vmem>>, vector<1x128x128xbf16>
    %244 = vector.shape_cast %243 : vector<1x128x128xbf16> to vector<128x128xbf16>
    %cst_240 = arith.constant dense<0.000000e+00> : vector<16x128xf32>
    %245 = tpu.matmul %242, %244, %cst_240 {dimension_numbers = #tpu.dot_dimension_numbers<[1], [0], [0], [1], [0, 0, 1, 1], [], []>} : vector<16x128xbf16>, vector<128x128xbf16>, vector<16x128xf32> -> vector<16x128xf32>
    %246 = arith.addf %240, %245 : vector<16x128xf32>
    %c0_241 = arith.constant 0 : index
    %c0_242 = arith.constant 0 : index
    %247 = vector.load %arg23[%c0_241, %c0_242] : memref<1x128xf32, #tpu.memory_space<vmem>>, vector<1x128xf32>
    %248 = vector.broadcast %247 : vector<1x128xf32> to vector<16x128xf32>
    %249 = arith.addf %246, %248 : vector<16x128xf32>
    %250 = vector.extract_strided_slice %249 {offsets = [0, 0], sizes = [16, 32], strides = [1, 1]} : vector<16x128xf32> to vector<16x32xf32>
    %251 = tpu.transpose %250, [1, 0] : vector<16x32xf32> -> vector<32x16xf32>
    %c0_243 = arith.constant 0 : index
    %c0_244 = arith.constant 0 : index
    %c0_245 = arith.constant 0 : index
    %252 = vector.load %arg24[%c0_243, %c0_244, %c0_245] : memref<1x32x16xf32, #tpu.memory_space<vmem>>, vector<1x32x16xf32>
    %253 = vector.shape_cast %252 : vector<1x32x16xf32> to vector<32x16xf32>
    %254 = vector.shape_cast %251 : vector<32x16xf32> to vector<1x32x16xf32>
    tpu.vector_store %arg24[%c0_243, %c0_244, %c0_245], %254 {strides = array<i32>} : memref<1x32x16xf32, #tpu.memory_space<vmem>>, vector<1x32x16xf32>,
    return
  }
  func.func @transform_0(%arg0: i32) -> (i32, i32, i32) {
    %c0_i32 = arith.constant 0 : i32
    %c0_i32_0 = arith.constant 0 : i32
    %c0_i32_1 = arith.constant 0 : i32
    return %arg0, %c0_i32, %c0_i32_0 : i32, i32, i32
  }
  func.func @transform_1(%arg0: i32) -> (i32, i32, i32) {
    %c0_i32 = arith.constant 0 : i32
    %c0_i32_0 = arith.constant 0 : i32
    %c0_i32_1 = arith.constant 0 : i32
    %c0_i32_2 = arith.constant 0 : i32
    return %c0_i32, %c0_i32_0, %c0_i32_1 : i32, i32, i32
  }
  func.func @transform_2(%arg0: i32) -> (i32, i32) {
    %c0_i32 = arith.constant 0 : i32
    %c0_i32_0 = arith.constant 0 : i32
    %c0_i32_1 = arith.constant 0 : i32
    return %c0_i32, %c0_i32_0 : i32, i32
  }
  func.func @transform_3(%arg0: i32) -> (i32, i32, i32) {
    %c0_i32 = arith.constant 0 : i32
    %c0_i32_0 = arith.constant 0 : i32
    %c0_i32_1 = arith.constant 0 : i32
    %c0_i32_2 = arith.constant 0 : i32
    return %c0_i32, %c0_i32_0, %c0_i32_1 : i32, i32, i32
  }
  func.func @transform_4(%arg0: i32) -> (i32, i32) {
    %c0_i32 = arith.constant 0 : i32
    %c0_i32_0 = arith.constant 0 : i32
    %c0_i32_1 = arith.constant 0 : i32
    return %c0_i32, %c0_i32_0 : i32, i32
  }
  func.func @transform_5(%arg0: i32) -> (i32, i32, i32) {
    %c0_i32 = arith.constant 0 : i32
    %c0_i32_0 = arith.constant 0 : i32
    %c0_i32_1 = arith.constant 0 : i32
    %c0_i32_2 = arith.constant 0 : i32
    return %c0_i32, %c0_i32_0, %c0_i32_1 : i32, i32, i32
  }
  func.func @transform_6(%arg0: i32) -> (i32, i32) {
    %c0_i32 = arith.constant 0 : i32
    %c0_i32_0 = arith.constant 0 : i32
    %c0_i32_1 = arith.constant 0 : i32
    return %c0_i32, %c0_i32_0 : i32, i32
  }
  func.func @transform_7(%arg0: i32) -> (i32, i32, i32) {
    %c0_i32 = arith.constant 0 : i32
    %c0_i32_0 = arith.constant 0 : i32
    %c0_i32_1 = arith.constant 0 : i32
    %c0_i32_2 = arith.constant 0 : i32
    return %c0_i32, %c0_i32_0, %c0_i32_1 : i32, i32, i32
  }
  func.func @transform_8(%arg0: i32) -> (i32, i32) {
    %c0_i32 = arith.constant 0 : i32
    %c0_i32_0 = arith.constant 0 : i32
    %c0_i32_1 = arith.constant 0 : i32
    return %c0_i32, %c0_i32_0 : i32, i32
  }
  func.func @transform_9(%arg0: i32) -> (i32, i32, i32) {
    %c0_i32 = arith.constant 0 : i32
    %c0_i32_0 = arith.constant 0 : i32
    %c0_i32_1 = arith.constant 0 : i32
    %c0_i32_2 = arith.constant 0 : i32
    return %c0_i32, %c0_i32_0, %c0_i32_1 : i32, i32, i32
  }
  func.func @transform_10(%arg0: i32) -> (i32, i32) {
    %c0_i32 = arith.constant 0 : i32
    %c0_i32_0 = arith.constant 0 : i32
    %c0_i32_1 = arith.constant 0 : i32
    return %c0_i32, %c0_i32_0 : i32, i32
  }
  func.func @transform_11(%arg0: i32) -> (i32, i32, i32) {
    %c0_i32 = arith.constant 0 : i32
    %c0_i32_0 = arith.constant 0 : i32
    %c0_i32_1 = arith.constant 0 : i32
    %c0_i32_2 = arith.constant 0 : i32
    return %c0_i32, %c0_i32_0, %c0_i32_1 : i32, i32, i32
  }
  func.func @transform_12(%arg0: i32) -> (i32, i32) {
    %c0_i32 = arith.constant 0 : i32
    %c0_i32_0 = arith.constant 0 : i32
    %c0_i32_1 = arith.constant 0 : i32
    return %c0_i32, %c0_i32_0 : i32, i32
  }
  func.func @transform_13(%arg0: i32) -> (i32, i32, i32) {
    %c0_i32 = arith.constant 0 : i32
    %c0_i32_0 = arith.constant 0 : i32
    %c0_i32_1 = arith.constant 0 : i32
    %c0_i32_2 = arith.constant 0 : i32
    return %c0_i32, %c0_i32_0, %c0_i32_1 : i32, i32, i32
  }
  func.func @transform_14(%arg0: i32) -> (i32, i32) {
    %c0_i32 = arith.constant 0 : i32
    %c0_i32_0 = arith.constant 0 : i32
    %c0_i32_1 = arith.constant 0 : i32
    return %c0_i32, %c0_i32_0 : i32, i32
  }
  func.func @transform_15(%arg0: i32) -> (i32, i32, i32) {
    %c0_i32 = arith.constant 0 : i32
    %c0_i32_0 = arith.constant 0 : i32
    %c0_i32_1 = arith.constant 0 : i32
    %c0_i32_2 = arith.constant 0 : i32
    return %c0_i32, %c0_i32_0, %c0_i32_1 : i32, i32, i32
  }
  func.func @transform_16(%arg0: i32) -> (i32, i32) {
    %c0_i32 = arith.constant 0 : i32
    %c0_i32_0 = arith.constant 0 : i32
    %c0_i32_1 = arith.constant 0 : i32
    return %c0_i32, %c0_i32_0 : i32, i32
  }
  func.func @transform_17(%arg0: i32) -> (i32, i32, i32) {
    %c0_i32 = arith.constant 0 : i32
    %c0_i32_0 = arith.constant 0 : i32
    %c0_i32_1 = arith.constant 0 : i32
    %c0_i32_2 = arith.constant 0 : i32
    return %c0_i32, %c0_i32_0, %c0_i32_1 : i32, i32, i32
  }
  func.func @transform_18(%arg0: i32) -> (i32, i32) {
    %c0_i32 = arith.constant 0 : i32
    %c0_i32_0 = arith.constant 0 : i32
    %c0_i32_1 = arith.constant 0 : i32
    return %c0_i32, %c0_i32_0 : i32, i32
  }
  func.func @transform_19(%arg0: i32) -> (i32, i32, i32) {
    %c0_i32 = arith.constant 0 : i32
    %c0_i32_0 = arith.constant 0 : i32
    %c0_i32_1 = arith.constant 0 : i32
    %c0_i32_2 = arith.constant 0 : i32
    return %c0_i32, %c0_i32_0, %c0_i32_1 : i32, i32, i32
  }
  func.func @transform_20(%arg0: i32) -> (i32, i32) {
    %c0_i32 = arith.constant 0 : i32
    %c0_i32_0 = arith.constant 0 : i32
    %c0_i32_1 = arith.constant 0 : i32
    return %c0_i32, %c0_i32_0 : i32, i32
  }
  func.func @transform_21(%arg0: i32) -> (i32, i32, i32) {
    %c0_i32 = arith.constant 0 : i32
    %c0_i32_0 = arith.constant 0 : i32
    %c0_i32_1 = arith.constant 0 : i32
    %c0_i32_2 = arith.constant 0 : i32
    return %c0_i32, %c0_i32_0, %c0_i32_1 : i32, i32, i32
  }
  func.func @transform_22(%arg0: i32) -> (i32, i32) {
    %c0_i32 = arith.constant 0 : i32
    %c0_i32_0 = arith.constant 0 : i32
    %c0_i32_1 = arith.constant 0 : i32
    return %c0_i32, %c0_i32_0 : i32, i32
  }
  func.func @transform_23(%arg0: i32) -> (i32, i32, i32) {
    %c0_i32 = arith.constant 0 : i32
    %c0_i32_0 = arith.constant 0 : i32
    %c0_i32_1 = arith.constant 0 : i32
    return %arg0, %c0_i32, %c0_i32_0 : i32, i32, i32
  }
}

module attributes {stable_mosaic.version = 11 : i64} {
  func.func @kernel(%arg0: i32, %arg1: memref<1x32x16xf32, #tpu.memory_space<vmem>>, %arg2: memref<4x128x128xbf16, #tpu.memory_space<vmem>>, %arg3: memref<1x128xf32, #tpu.memory_space<vmem>>, %arg4: memref<3x128x128xbf16, #tpu.memory_space<vmem>>, %arg5: memref<1x128xf32, #tpu.memory_space<vmem>>, %arg6: memref<1x128x128xbf16, #tpu.memory_space<vmem>>, %arg7: memref<1x128xf32, #tpu.memory_space<vmem>>, %arg8: memref<3x128x128xbf16, #tpu.memory_space<vmem>>, %arg9: memref<1x128xf32, #tpu.memory_space<vmem>>, %arg10: memref<1x128x128xbf16, #tpu.memory_space<vmem>>, %arg11: memref<1x128xf32, #tpu.memory_space<vmem>>, %arg12: memref<3x128x128xbf16, #tpu.memory_space<vmem>>, %arg13: memref<1x128xf32, #tpu.memory_space<vmem>>, %arg14: memref<1x32x8xf32, #tpu.memory_space<vmem>>, %arg15: memref<24x128xf32, #tpu.memory_space<vmem>>) attributes {dimension_semantics = [#tpu.dimension_semantics<parallel>], iteration_bounds = array<i64: 2>, scalar_prefetch = 0 : i64, scratch_operands = 1 : i64, tpu.core_type = #tpu.core_type<tc>, window_params = [{transform_indices = @transform_0, window_bounds = array<i64: 1, 32, 16>}, {pipeline_mode = #tpu.pipeline_mode<synchronous>, transform_indices = @transform_1, window_bounds = array<i64: 4, 128, 128>}, {pipeline_mode = #tpu.pipeline_mode<synchronous>, transform_indices = @transform_2, window_bounds = array<i64: 1, 128>}, {pipeline_mode = #tpu.pipeline_mode<synchronous>, transform_indices = @transform_3, window_bounds = array<i64: 3, 128, 128>}, {pipeline_mode = #tpu.pipeline_mode<synchronous>, transform_indices = @transform_4, window_bounds = array<i64: 1, 128>}, {pipeline_mode = #tpu.pipeline_mode<synchronous>, transform_indices = @transform_5, window_bounds = array<i64: 1, 128, 128>}, {pipeline_mode = #tpu.pipeline_mode<synchronous>, transform_indices = @transform_6, window_bounds = array<i64: 1, 128>}, {pipeline_mode = #tpu.pipeline_mode<synchronous>, transform_indices = @transform_7, window_bounds = array<i64: 3, 128, 128>}, {pipeline_mode = #tpu.pipeline_mode<synchronous>, transform_indices = @transform_8, window_bounds = array<i64: 1, 128>}, {pipeline_mode = #tpu.pipeline_mode<synchronous>, transform_indices = @transform_9, window_bounds = array<i64: 1, 128, 128>}, {pipeline_mode = #tpu.pipeline_mode<synchronous>, transform_indices = @transform_10, window_bounds = array<i64: 1, 128>}, {pipeline_mode = #tpu.pipeline_mode<synchronous>, transform_indices = @transform_11, window_bounds = array<i64: 3, 128, 128>}, {pipeline_mode = #tpu.pipeline_mode<synchronous>, transform_indices = @transform_12, window_bounds = array<i64: 1, 128>}, {transform_indices = @transform_13, window_bounds = array<i64: 1, 32, 8>}]} {
    %cst = arith.constant 0.000000e+00 : f32
    %0 = vector.broadcast %cst : f32 to vector<16x128xf32>
    %c0 = arith.constant 0 : index
    %c0_0 = arith.constant 0 : index
    %1 = vector.load %arg15[%c0, %c0_0] : memref<24x128xf32, #tpu.memory_space<vmem>>, vector<16x128xf32>
    tpu.vector_store %arg15[%c0, %c0_0], %0 {strides = array<i32>} : memref<24x128xf32, #tpu.memory_space<vmem>>, vector<16x128xf32>,
    %c0_1 = arith.constant 0 : index
    %c0_2 = arith.constant 0 : index
    %c0_3 = arith.constant 0 : index
    %2 = vector.load %arg1[%c0_1, %c0_2, %c0_3] : memref<1x32x16xf32, #tpu.memory_space<vmem>>, vector<1x32x16xf32>
    %3 = vector.shape_cast %2 : vector<1x32x16xf32> to vector<32x16xf32>
    %4 = tpu.transpose %3, [1, 0] : vector<32x16xf32> -> vector<16x32xf32>
    %c0_4 = arith.constant 0 : index
    %c0_5 = arith.constant 0 : index
    %5 = vector.load %arg15[%c0_4, %c0_5] : memref<24x128xf32, #tpu.memory_space<vmem>>, vector<16x32xf32>
    tpu.vector_store %arg15[%c0_4, %c0_5], %4 {strides = array<i32>} : memref<24x128xf32, #tpu.memory_space<vmem>>, vector<16x32xf32>,
    %c0_6 = arith.constant 0 : index
    %c0_7 = arith.constant 0 : index
    %6 = vector.load %arg15[%c0_6, %c0_7] : memref<24x128xf32, #tpu.memory_space<vmem>>, vector<16x128xf32>
    %cst_8 = arith.constant 0.000000e+00 : f32
    %7 = vector.broadcast %cst_8 : f32 to vector<1x128xf32>
    %c0_9 = arith.constant 0 : index
    %c0_10 = arith.constant 0 : index
    %8 = vector.load %arg15[%c0_9, %c0_10] : memref<24x128xf32, #tpu.memory_space<vmem>>, vector<1x128xf32>
    tpu.vector_store %arg15[%c0_9, %c0_10], %7 {strides = array<i32>} : memref<24x128xf32, #tpu.memory_space<vmem>>, vector<1x128xf32>,
    %cst_11 = arith.constant 0.000000e+00 : f32
    %9 = vector.broadcast %cst_11 : f32 to vector<1x128xf32>
    %c17 = arith.constant 17 : index
    %c0_12 = arith.constant 0 : index
    %10 = vector.load %arg15[%c17, %c0_12] : memref<24x128xf32, #tpu.memory_space<vmem>>, vector<1x128xf32>
    tpu.vector_store %arg15[%c17, %c0_12], %9 {strides = array<i32>} : memref<24x128xf32, #tpu.memory_space<vmem>>, vector<1x128xf32>,
    %c1 = arith.constant 1 : index
    %c0_13 = arith.constant 0 : index
    %11 = vector.load %arg15[%c1, %c0_13] : memref<24x128xf32, #tpu.memory_space<vmem>>, vector<16x128xf32>
    tpu.vector_store %arg15[%c1, %c0_13], %6 {strides = array<i32>} : memref<24x128xf32, #tpu.memory_space<vmem>>, vector<16x128xf32>,
    %c0_14 = arith.constant 0 : index
    %c0_15 = arith.constant 0 : index
    %12 = tpu.strided_load %arg15[%c0_14, %c0_15] {strides = array<i32: 2, 1>} : memref<24x128xf32, #tpu.memory_space<vmem>>, vector<8x128xf32>
    %13 = arith.truncf %12 : vector<8x128xf32> to vector<8x128xbf16>
    %c0_16 = arith.constant 0 : index
    %c0_17 = arith.constant 0 : index
    %c0_18 = arith.constant 0 : index
    %14 = vector.load %arg2[%c0_16, %c0_17, %c0_18] : memref<4x128x128xbf16, #tpu.memory_space<vmem>>, vector<1x128x128xbf16>
    %15 = vector.shape_cast %14 : vector<1x128x128xbf16> to vector<128x128xbf16>
    %cst_19 = arith.constant dense<0.000000e+00> : vector<8x128xf32>
    %16 = tpu.matmul %13, %15, %cst_19 {dimension_numbers = #tpu.dot_dimension_numbers<[1], [0], [0], [1], [0, 0, 1, 1], [], []>} : vector<8x128xbf16>, vector<128x128xbf16>, vector<8x128xf32> -> vector<8x128xf32>
    %c1_20 = arith.constant 1 : index
    %c0_21 = arith.constant 0 : index
    %17 = tpu.strided_load %arg15[%c1_20, %c0_21] {strides = array<i32: 2, 1>} : memref<24x128xf32, #tpu.memory_space<vmem>>, vector<8x128xf32>
    %18 = arith.truncf %17 : vector<8x128xf32> to vector<8x128xbf16>
    %c1_22 = arith.constant 1 : index
    %c0_23 = arith.constant 0 : index
    %c0_24 = arith.constant 0 : index
    %19 = vector.load %arg2[%c1_22, %c0_23, %c0_24] : memref<4x128x128xbf16, #tpu.memory_space<vmem>>, vector<1x128x128xbf16>
    %20 = vector.shape_cast %19 : vector<1x128x128xbf16> to vector<128x128xbf16>
    %cst_25 = arith.constant dense<0.000000e+00> : vector<8x128xf32>
    %21 = tpu.matmul %18, %20, %cst_25 {dimension_numbers = #tpu.dot_dimension_numbers<[1], [0], [0], [1], [0, 0, 1, 1], [], []>} : vector<8x128xbf16>, vector<128x128xbf16>, vector<8x128xf32> -> vector<8x128xf32>
    %22 = arith.addf %16, %21 : vector<8x128xf32>
    %c2 = arith.constant 2 : index
    %c0_26 = arith.constant 0 : index
    %23 = tpu.strided_load %arg15[%c2, %c0_26] {strides = array<i32: 2, 1>} : memref<24x128xf32, #tpu.memory_space<vmem>>, vector<8x128xf32>
    %24 = arith.truncf %23 : vector<8x128xf32> to vector<8x128xbf16>
    %c2_27 = arith.constant 2 : index
    %c0_28 = arith.constant 0 : index
    %c0_29 = arith.constant 0 : index
    %25 = vector.load %arg2[%c2_27, %c0_28, %c0_29] : memref<4x128x128xbf16, #tpu.memory_space<vmem>>, vector<1x128x128xbf16>
    %26 = vector.shape_cast %25 : vector<1x128x128xbf16> to vector<128x128xbf16>
    %cst_30 = arith.constant dense<0.000000e+00> : vector<8x128xf32>
    %27 = tpu.matmul %24, %26, %cst_30 {dimension_numbers = #tpu.dot_dimension_numbers<[1], [0], [0], [1], [0, 0, 1, 1], [], []>} : vector<8x128xbf16>, vector<128x128xbf16>, vector<8x128xf32> -> vector<8x128xf32>
    %28 = arith.addf %22, %27 : vector<8x128xf32>
    %c3 = arith.constant 3 : index
    %c0_31 = arith.constant 0 : index
    %29 = tpu.strided_load %arg15[%c3, %c0_31] {strides = array<i32: 2, 1>} : memref<24x128xf32, #tpu.memory_space<vmem>>, vector<8x128xf32>
    %30 = arith.truncf %29 : vector<8x128xf32> to vector<8x128xbf16>
    %c3_32 = arith.constant 3 : index
    %c0_33 = arith.constant 0 : index
    %c0_34 = arith.constant 0 : index
    %31 = vector.load %arg2[%c3_32, %c0_33, %c0_34] : memref<4x128x128xbf16, #tpu.memory_space<vmem>>, vector<1x128x128xbf16>
    %32 = vector.shape_cast %31 : vector<1x128x128xbf16> to vector<128x128xbf16>
    %cst_35 = arith.constant dense<0.000000e+00> : vector<8x128xf32>
    %33 = tpu.matmul %30, %32, %cst_35 {dimension_numbers = #tpu.dot_dimension_numbers<[1], [0], [0], [1], [0, 0, 1, 1], [], []>} : vector<8x128xbf16>, vector<128x128xbf16>, vector<8x128xf32> -> vector<8x128xf32>
    %34 = arith.addf %28, %33 : vector<8x128xf32>
    %c0_36 = arith.constant 0 : index
    %c0_37 = arith.constant 0 : index
    %35 = vector.load %arg3[%c0_36, %c0_37] : memref<1x128xf32, #tpu.memory_space<vmem>>, vector<1x128xf32>
    %36 = vector.broadcast %35 : vector<1x128xf32> to vector<8x128xf32>
    %37 = arith.addf %34, %36 : vector<8x128xf32>
    %cst_38 = arith.constant 0.000000e+00 : f32
    %38 = vector.broadcast %cst_38 : f32 to vector<8x128xf32>
    %39 = arith.maximumf %37, %38 : vector<8x128xf32>
    %cst_39 = arith.constant 0.000000e+00 : f32
    %40 = vector.broadcast %cst_39 : f32 to vector<1x128xf32>
    %c0_40 = arith.constant 0 : index
    %c0_41 = arith.constant 0 : index
    %41 = vector.load %arg15[%c0_40, %c0_41] : memref<24x128xf32, #tpu.memory_space<vmem>>, vector<1x128xf32>
    tpu.vector_store %arg15[%c0_40, %c0_41], %40 {strides = array<i32>} : memref<24x128xf32, #tpu.memory_space<vmem>>, vector<1x128xf32>,
    %cst_42 = arith.constant 0.000000e+00 : f32
    %42 = vector.broadcast %cst_42 : f32 to vector<1x128xf32>
    %c9 = arith.constant 9 : index
    %c0_43 = arith.constant 0 : index
    %43 = vector.load %arg15[%c9, %c0_43] : memref<24x128xf32, #tpu.memory_space<vmem>>, vector<1x128xf32>
    tpu.vector_store %arg15[%c9, %c0_43], %42 {strides = array<i32>} : memref<24x128xf32, #tpu.memory_space<vmem>>, vector<1x128xf32>,
    %c1_44 = arith.constant 1 : index
    %c0_45 = arith.constant 0 : index
    %44 = vector.load %arg15[%c1_44, %c0_45] : memref<24x128xf32, #tpu.memory_space<vmem>>, vector<8x128xf32>
    tpu.vector_store %arg15[%c1_44, %c0_45], %39 {strides = array<i32>} : memref<24x128xf32, #tpu.memory_space<vmem>>, vector<8x128xf32>,
    %c0_46 = arith.constant 0 : index
    %c0_47 = arith.constant 0 : index
    %45 = vector.load %arg15[%c0_46, %c0_47] : memref<24x128xf32, #tpu.memory_space<vmem>>, vector<8x128xf32>
    %46 = arith.truncf %45 : vector<8x128xf32> to vector<8x128xbf16>
    %c0_48 = arith.constant 0 : index
    %c0_49 = arith.constant 0 : index
    %c0_50 = arith.constant 0 : index
    %47 = vector.load %arg4[%c0_48, %c0_49, %c0_50] : memref<3x128x128xbf16, #tpu.memory_space<vmem>>, vector<1x128x128xbf16>
    %48 = vector.shape_cast %47 : vector<1x128x128xbf16> to vector<128x128xbf16>
    %cst_51 = arith.constant dense<0.000000e+00> : vector<8x128xf32>
    %49 = tpu.matmul %46, %48, %cst_51 {dimension_numbers = #tpu.dot_dimension_numbers<[1], [0], [0], [1], [0, 0, 1, 1], [], []>} : vector<8x128xbf16>, vector<128x128xbf16>, vector<8x128xf32> -> vector<8x128xf32>
    %c1_52 = arith.constant 1 : index
    %c0_53 = arith.constant 0 : index
    %50 = vector.load %arg15[%c1_52, %c0_53] : memref<24x128xf32, #tpu.memory_space<vmem>>, vector<8x128xf32>
    %51 = arith.truncf %50 : vector<8x128xf32> to vector<8x128xbf16>
    %c1_54 = arith.constant 1 : index
    %c0_55 = arith.constant 0 : index
    %c0_56 = arith.constant 0 : index
    %52 = vector.load %arg4[%c1_54, %c0_55, %c0_56] : memref<3x128x128xbf16, #tpu.memory_space<vmem>>, vector<1x128x128xbf16>
    %53 = vector.shape_cast %52 : vector<1x128x128xbf16> to vector<128x128xbf16>
    %cst_57 = arith.constant dense<0.000000e+00> : vector<8x128xf32>
    %54 = tpu.matmul %51, %53, %cst_57 {dimension_numbers = #tpu.dot_dimension_numbers<[1], [0], [0], [1], [0, 0, 1, 1], [], []>} : vector<8x128xbf16>, vector<128x128xbf16>, vector<8x128xf32> -> vector<8x128xf32>
    %55 = arith.addf %49, %54 : vector<8x128xf32>
    %c2_58 = arith.constant 2 : index
    %c0_59 = arith.constant 0 : index
    %56 = vector.load %arg15[%c2_58, %c0_59] : memref<24x128xf32, #tpu.memory_space<vmem>>, vector<8x128xf32>
    %57 = arith.truncf %56 : vector<8x128xf32> to vector<8x128xbf16>
    %c2_60 = arith.constant 2 : index
    %c0_61 = arith.constant 0 : index
    %c0_62 = arith.constant 0 : index
    %58 = vector.load %arg4[%c2_60, %c0_61, %c0_62] : memref<3x128x128xbf16, #tpu.memory_space<vmem>>, vector<1x128x128xbf16>
    %59 = vector.shape_cast %58 : vector<1x128x128xbf16> to vector<128x128xbf16>
    %cst_63 = arith.constant dense<0.000000e+00> : vector<8x128xf32>
    %60 = tpu.matmul %57, %59, %cst_63 {dimension_numbers = #tpu.dot_dimension_numbers<[1], [0], [0], [1], [0, 0, 1, 1], [], []>} : vector<8x128xbf16>, vector<128x128xbf16>, vector<8x128xf32> -> vector<8x128xf32>
    %61 = arith.addf %55, %60 : vector<8x128xf32>
    %c0_64 = arith.constant 0 : index
    %c0_65 = arith.constant 0 : index
    %62 = vector.load %arg5[%c0_64, %c0_65] : memref<1x128xf32, #tpu.memory_space<vmem>>, vector<1x128xf32>
    %63 = vector.broadcast %62 : vector<1x128xf32> to vector<8x128xf32>
    %64 = arith.addf %61, %63 : vector<8x128xf32>
    %cst_66 = arith.constant 0.000000e+00 : f32
    %65 = vector.broadcast %cst_66 : f32 to vector<8x128xf32>
    %66 = arith.maximumf %64, %65 : vector<8x128xf32>
    %67 = arith.truncf %66 : vector<8x128xf32> to vector<8x128xbf16>
    %c0_67 = arith.constant 0 : index
    %c0_68 = arith.constant 0 : index
    %c0_69 = arith.constant 0 : index
    %68 = vector.load %arg6[%c0_67, %c0_68, %c0_69] : memref<1x128x128xbf16, #tpu.memory_space<vmem>>, vector<1x128x128xbf16>
    %69 = vector.shape_cast %68 : vector<1x128x128xbf16> to vector<128x128xbf16>
    %cst_70 = arith.constant dense<0.000000e+00> : vector<8x128xf32>
    %70 = tpu.matmul %67, %69, %cst_70 {dimension_numbers = #tpu.dot_dimension_numbers<[1], [0], [0], [1], [0, 0, 1, 1], [], []>} : vector<8x128xbf16>, vector<128x128xbf16>, vector<8x128xf32> -> vector<8x128xf32>
    %c0_71 = arith.constant 0 : index
    %c0_72 = arith.constant 0 : index
    %71 = vector.load %arg7[%c0_71, %c0_72] : memref<1x128xf32, #tpu.memory_space<vmem>>, vector<1x128xf32>
    %72 = vector.broadcast %71 : vector<1x128xf32> to vector<8x128xf32>
    %73 = arith.addf %70, %72 : vector<8x128xf32>
    %cst_73 = arith.constant 1.000000e+00 : f32
    %74 = vector.broadcast %cst_73 : f32 to vector<8x128xf32>
    %75 = arith.mulf %74, %73 : vector<8x128xf32>
    %76 = arith.addf %37, %75 : vector<8x128xf32>
    %cst_74 = arith.constant 0.000000e+00 : f32
    %77 = vector.broadcast %cst_74 : f32 to vector<8x128xf32>
    %78 = arith.maximumf %76, %77 : vector<8x128xf32>
    %cst_75 = arith.constant 0.000000e+00 : f32
    %79 = vector.broadcast %cst_75 : f32 to vector<2x128xf32>
    %c0_76 = arith.constant 0 : index
    %c0_77 = arith.constant 0 : index
    %80 = vector.load %arg15[%c0_76, %c0_77] : memref<24x128xf32, #tpu.memory_space<vmem>>, vector<2x128xf32>
    tpu.vector_store %arg15[%c0_76, %c0_77], %79 {strides = array<i32>} : memref<24x128xf32, #tpu.memory_space<vmem>>, vector<2x128xf32>,
    %cst_78 = arith.constant 0.000000e+00 : f32
    %81 = vector.broadcast %cst_78 : f32 to vector<2x128xf32>
    %c10 = arith.constant 10 : index
    %c0_79 = arith.constant 0 : index
    %82 = vector.load %arg15[%c10, %c0_79] : memref<24x128xf32, #tpu.memory_space<vmem>>, vector<2x128xf32>
    tpu.vector_store %arg15[%c10, %c0_79], %81 {strides = array<i32>} : memref<24x128xf32, #tpu.memory_space<vmem>>, vector<2x128xf32>,
    %c2_80 = arith.constant 2 : index
    %c0_81 = arith.constant 0 : index
    %83 = vector.load %arg15[%c2_80, %c0_81] : memref<24x128xf32, #tpu.memory_space<vmem>>, vector<8x128xf32>
    tpu.vector_store %arg15[%c2_80, %c0_81], %78 {strides = array<i32>} : memref<24x128xf32, #tpu.memory_space<vmem>>, vector<8x128xf32>,
    %c0_82 = arith.constant 0 : index
    %c0_83 = arith.constant 0 : index
    %84 = vector.load %arg15[%c0_82, %c0_83] : memref<24x128xf32, #tpu.memory_space<vmem>>, vector<8x128xf32>
    %85 = arith.truncf %84 : vector<8x128xf32> to vector<8x128xbf16>
    %c0_84 = arith.constant 0 : index
    %c0_85 = arith.constant 0 : index
    %c0_86 = arith.constant 0 : index
    %86 = vector.load %arg8[%c0_84, %c0_85, %c0_86] : memref<3x128x128xbf16, #tpu.memory_space<vmem>>, vector<1x128x128xbf16>
    %87 = vector.shape_cast %86 : vector<1x128x128xbf16> to vector<128x128xbf16>
    %cst_87 = arith.constant dense<0.000000e+00> : vector<8x128xf32>
    %88 = tpu.matmul %85, %87, %cst_87 {dimension_numbers = #tpu.dot_dimension_numbers<[1], [0], [0], [1], [0, 0, 1, 1], [], []>} : vector<8x128xbf16>, vector<128x128xbf16>, vector<8x128xf32> -> vector<8x128xf32>
    %c2_88 = arith.constant 2 : index
    %c0_89 = arith.constant 0 : index
    %89 = vector.load %arg15[%c2_88, %c0_89] : memref<24x128xf32, #tpu.memory_space<vmem>>, vector<8x128xf32>
    %90 = arith.truncf %89 : vector<8x128xf32> to vector<8x128xbf16>
    %c1_90 = arith.constant 1 : index
    %c0_91 = arith.constant 0 : index
    %c0_92 = arith.constant 0 : index
    %91 = vector.load %arg8[%c1_90, %c0_91, %c0_92] : memref<3x128x128xbf16, #tpu.memory_space<vmem>>, vector<1x128x128xbf16>
    %92 = vector.shape_cast %91 : vector<1x128x128xbf16> to vector<128x128xbf16>
    %cst_93 = arith.constant dense<0.000000e+00> : vector<8x128xf32>
    %93 = tpu.matmul %90, %92, %cst_93 {dimension_numbers = #tpu.dot_dimension_numbers<[1], [0], [0], [1], [0, 0, 1, 1], [], []>} : vector<8x128xbf16>, vector<128x128xbf16>, vector<8x128xf32> -> vector<8x128xf32>
    %94 = arith.addf %88, %93 : vector<8x128xf32>
    %c4 = arith.constant 4 : index
    %c0_94 = arith.constant 0 : index
    %95 = vector.load %arg15[%c4, %c0_94] : memref<24x128xf32, #tpu.memory_space<vmem>>, vector<8x128xf32>
    %96 = arith.truncf %95 : vector<8x128xf32> to vector<8x128xbf16>
    %c2_95 = arith.constant 2 : index
    %c0_96 = arith.constant 0 : index
    %c0_97 = arith.constant 0 : index
    %97 = vector.load %arg8[%c2_95, %c0_96, %c0_97] : memref<3x128x128xbf16, #tpu.memory_space<vmem>>, vector<1x128x128xbf16>
    %98 = vector.shape_cast %97 : vector<1x128x128xbf16> to vector<128x128xbf16>
    %cst_98 = arith.constant dense<0.000000e+00> : vector<8x128xf32>
    %99 = tpu.matmul %96, %98, %cst_98 {dimension_numbers = #tpu.dot_dimension_numbers<[1], [0], [0], [1], [0, 0, 1, 1], [], []>} : vector<8x128xbf16>, vector<128x128xbf16>, vector<8x128xf32> -> vector<8x128xf32>
    %100 = arith.addf %94, %99 : vector<8x128xf32>
    %c0_99 = arith.constant 0 : index
    %c0_100 = arith.constant 0 : index
    %101 = vector.load %arg9[%c0_99, %c0_100] : memref<1x128xf32, #tpu.memory_space<vmem>>, vector<1x128xf32>
    %102 = vector.broadcast %101 : vector<1x128xf32> to vector<8x128xf32>
    %103 = arith.addf %100, %102 : vector<8x128xf32>
    %cst_101 = arith.constant 0.000000e+00 : f32
    %104 = vector.broadcast %cst_101 : f32 to vector<8x128xf32>
    %105 = arith.maximumf %103, %104 : vector<8x128xf32>
    %106 = arith.truncf %105 : vector<8x128xf32> to vector<8x128xbf16>
    %c0_102 = arith.constant 0 : index
    %c0_103 = arith.constant 0 : index
    %c0_104 = arith.constant 0 : index
    %107 = vector.load %arg10[%c0_102, %c0_103, %c0_104] : memref<1x128x128xbf16, #tpu.memory_space<vmem>>, vector<1x128x128xbf16>
    %108 = vector.shape_cast %107 : vector<1x128x128xbf16> to vector<128x128xbf16>
    %cst_105 = arith.constant dense<0.000000e+00> : vector<8x128xf32>
    %109 = tpu.matmul %106, %108, %cst_105 {dimension_numbers = #tpu.dot_dimension_numbers<[1], [0], [0], [1], [0, 0, 1, 1], [], []>} : vector<8x128xbf16>, vector<128x128xbf16>, vector<8x128xf32> -> vector<8x128xf32>
    %c0_106 = arith.constant 0 : index
    %c0_107 = arith.constant 0 : index
    %110 = vector.load %arg11[%c0_106, %c0_107] : memref<1x128xf32, #tpu.memory_space<vmem>>, vector<1x128xf32>
    %111 = vector.broadcast %110 : vector<1x128xf32> to vector<8x128xf32>
    %112 = arith.addf %109, %111 : vector<8x128xf32>
    %cst_108 = arith.constant 1.000000e+00 : f32
    %113 = vector.broadcast %cst_108 : f32 to vector<8x128xf32>
    %114 = arith.mulf %113, %112 : vector<8x128xf32>
    %115 = arith.addf %76, %114 : vector<8x128xf32>
    %cst_109 = arith.constant 0.000000e+00 : f32
    %116 = vector.broadcast %cst_109 : f32 to vector<1x128xf32>
    %c0_110 = arith.constant 0 : index
    %c0_111 = arith.constant 0 : index
    %117 = vector.load %arg15[%c0_110, %c0_111] : memref<24x128xf32, #tpu.memory_space<vmem>>, vector<1x128xf32>
    tpu.vector_store %arg15[%c0_110, %c0_111], %116 {strides = array<i32>} : memref<24x128xf32, #tpu.memory_space<vmem>>, vector<1x128xf32>,
    %cst_112 = arith.constant 0.000000e+00 : f32
    %118 = vector.broadcast %cst_112 : f32 to vector<1x128xf32>
    %c9_113 = arith.constant 9 : index
    %c0_114 = arith.constant 0 : index
    %119 = vector.load %arg15[%c9_113, %c0_114] : memref<24x128xf32, #tpu.memory_space<vmem>>, vector<1x128xf32>
    tpu.vector_store %arg15[%c9_113, %c0_114], %118 {strides = array<i32>} : memref<24x128xf32, #tpu.memory_space<vmem>>, vector<1x128xf32>,
    %c1_115 = arith.constant 1 : index
    %c0_116 = arith.constant 0 : index
    %120 = vector.load %arg15[%c1_115, %c0_116] : memref<24x128xf32, #tpu.memory_space<vmem>>, vector<8x128xf32>
    tpu.vector_store %arg15[%c1_115, %c0_116], %115 {strides = array<i32>} : memref<24x128xf32, #tpu.memory_space<vmem>>, vector<8x128xf32>,
    %c0_117 = arith.constant 0 : index
    %c0_118 = arith.constant 0 : index
    %121 = vector.load %arg15[%c0_117, %c0_118] : memref<24x128xf32, #tpu.memory_space<vmem>>, vector<8x128xf32>
    %122 = arith.truncf %121 : vector<8x128xf32> to vector<8x128xbf16>
    %c0_119 = arith.constant 0 : index
    %c0_120 = arith.constant 0 : index
    %c0_121 = arith.constant 0 : index
    %123 = vector.load %arg12[%c0_119, %c0_120, %c0_121] : memref<3x128x128xbf16, #tpu.memory_space<vmem>>, vector<1x128x128xbf16>
    %124 = vector.shape_cast %123 : vector<1x128x128xbf16> to vector<128x128xbf16>
    %cst_122 = arith.constant dense<0.000000e+00> : vector<8x128xf32>
    %125 = tpu.matmul %122, %124, %cst_122 {dimension_numbers = #tpu.dot_dimension_numbers<[1], [0], [0], [1], [0, 0, 1, 1], [], []>} : vector<8x128xbf16>, vector<128x128xbf16>, vector<8x128xf32> -> vector<8x128xf32>
    %c1_123 = arith.constant 1 : index
    %c0_124 = arith.constant 0 : index
    %126 = vector.load %arg15[%c1_123, %c0_124] : memref<24x128xf32, #tpu.memory_space<vmem>>, vector<8x128xf32>
    %127 = arith.truncf %126 : vector<8x128xf32> to vector<8x128xbf16>
    %c1_125 = arith.constant 1 : index
    %c0_126 = arith.constant 0 : index
    %c0_127 = arith.constant 0 : index
    %128 = vector.load %arg12[%c1_125, %c0_126, %c0_127] : memref<3x128x128xbf16, #tpu.memory_space<vmem>>, vector<1x128x128xbf16>
    %129 = vector.shape_cast %128 : vector<1x128x128xbf16> to vector<128x128xbf16>
    %cst_128 = arith.constant dense<0.000000e+00> : vector<8x128xf32>
    %130 = tpu.matmul %127, %129, %cst_128 {dimension_numbers = #tpu.dot_dimension_numbers<[1], [0], [0], [1], [0, 0, 1, 1], [], []>} : vector<8x128xbf16>, vector<128x128xbf16>, vector<8x128xf32> -> vector<8x128xf32>
    %131 = arith.addf %125, %130 : vector<8x128xf32>
    %c2_129 = arith.constant 2 : index
    %c0_130 = arith.constant 0 : index
    %132 = vector.load %arg15[%c2_129, %c0_130] : memref<24x128xf32, #tpu.memory_space<vmem>>, vector<8x128xf32>
    %133 = arith.truncf %132 : vector<8x128xf32> to vector<8x128xbf16>
    %c2_131 = arith.constant 2 : index
    %c0_132 = arith.constant 0 : index
    %c0_133 = arith.constant 0 : index
    %134 = vector.load %arg12[%c2_131, %c0_132, %c0_133] : memref<3x128x128xbf16, #tpu.memory_space<vmem>>, vector<1x128x128xbf16>
    %135 = vector.shape_cast %134 : vector<1x128x128xbf16> to vector<128x128xbf16>
    %cst_134 = arith.constant dense<0.000000e+00> : vector<8x128xf32>
    %136 = tpu.matmul %133, %135, %cst_134 {dimension_numbers = #tpu.dot_dimension_numbers<[1], [0], [0], [1], [0, 0, 1, 1], [], []>} : vector<8x128xbf16>, vector<128x128xbf16>, vector<8x128xf32> -> vector<8x128xf32>
    %137 = arith.addf %131, %136 : vector<8x128xf32>
    %c0_135 = arith.constant 0 : index
    %c0_136 = arith.constant 0 : index
    %138 = vector.load %arg13[%c0_135, %c0_136] : memref<1x128xf32, #tpu.memory_space<vmem>>, vector<1x128xf32>
    %139 = vector.broadcast %138 : vector<1x128xf32> to vector<8x128xf32>
    %140 = arith.addf %137, %139 : vector<8x128xf32>
    %141 = vector.extract_strided_slice %140 {offsets = [0, 0], sizes = [8, 32], strides = [1, 1]} : vector<8x128xf32> to vector<8x32xf32>
    %142 = tpu.transpose %141, [1, 0] : vector<8x32xf32> -> vector<32x8xf32>
    %c0_137 = arith.constant 0 : index
    %c0_138 = arith.constant 0 : index
    %c0_139 = arith.constant 0 : index
    %143 = vector.load %arg14[%c0_137, %c0_138, %c0_139] : memref<1x32x8xf32, #tpu.memory_space<vmem>>, vector<1x32x8xf32>
    %144 = vector.shape_cast %143 : vector<1x32x8xf32> to vector<32x8xf32>
    %145 = vector.shape_cast %142 : vector<32x8xf32> to vector<1x32x8xf32>
    tpu.vector_store %arg14[%c0_137, %c0_138, %c0_139], %145 {strides = array<i32>} : memref<1x32x8xf32, #tpu.memory_space<vmem>>, vector<1x32x8xf32>,
    return
  }
  func.func @transform_0(%arg0: i32) -> (i32, i32, i32) {
    %c0_i32 = arith.constant 0 : i32
    %c0_i32_0 = arith.constant 0 : i32
    %c0_i32_1 = arith.constant 0 : i32
    return %arg0, %c0_i32, %c0_i32_0 : i32, i32, i32
  }
  func.func @transform_1(%arg0: i32) -> (i32, i32, i32) {
    %c0_i32 = arith.constant 0 : i32
    %c0_i32_0 = arith.constant 0 : i32
    %c0_i32_1 = arith.constant 0 : i32
    %c0_i32_2 = arith.constant 0 : i32
    return %c0_i32, %c0_i32_0, %c0_i32_1 : i32, i32, i32
  }
  func.func @transform_2(%arg0: i32) -> (i32, i32) {
    %c0_i32 = arith.constant 0 : i32
    %c0_i32_0 = arith.constant 0 : i32
    %c0_i32_1 = arith.constant 0 : i32
    return %c0_i32, %c0_i32_0 : i32, i32
  }
  func.func @transform_3(%arg0: i32) -> (i32, i32, i32) {
    %c0_i32 = arith.constant 0 : i32
    %c0_i32_0 = arith.constant 0 : i32
    %c0_i32_1 = arith.constant 0 : i32
    %c0_i32_2 = arith.constant 0 : i32
    return %c0_i32, %c0_i32_0, %c0_i32_1 : i32, i32, i32
  }
  func.func @transform_4(%arg0: i32) -> (i32, i32) {
    %c0_i32 = arith.constant 0 : i32
    %c0_i32_0 = arith.constant 0 : i32
    %c0_i32_1 = arith.constant 0 : i32
    return %c0_i32, %c0_i32_0 : i32, i32
  }
  func.func @transform_5(%arg0: i32) -> (i32, i32, i32) {
    %c0_i32 = arith.constant 0 : i32
    %c0_i32_0 = arith.constant 0 : i32
    %c0_i32_1 = arith.constant 0 : i32
    %c0_i32_2 = arith.constant 0 : i32
    return %c0_i32, %c0_i32_0, %c0_i32_1 : i32, i32, i32
  }
  func.func @transform_6(%arg0: i32) -> (i32, i32) {
    %c0_i32 = arith.constant 0 : i32
    %c0_i32_0 = arith.constant 0 : i32
    %c0_i32_1 = arith.constant 0 : i32
    return %c0_i32, %c0_i32_0 : i32, i32
  }
  func.func @transform_7(%arg0: i32) -> (i32, i32, i32) {
    %c0_i32 = arith.constant 0 : i32
    %c0_i32_0 = arith.constant 0 : i32
    %c0_i32_1 = arith.constant 0 : i32
    %c0_i32_2 = arith.constant 0 : i32
    return %c0_i32, %c0_i32_0, %c0_i32_1 : i32, i32, i32
  }
  func.func @transform_8(%arg0: i32) -> (i32, i32) {
    %c0_i32 = arith.constant 0 : i32
    %c0_i32_0 = arith.constant 0 : i32
    %c0_i32_1 = arith.constant 0 : i32
    return %c0_i32, %c0_i32_0 : i32, i32
  }
  func.func @transform_9(%arg0: i32) -> (i32, i32, i32) {
    %c0_i32 = arith.constant 0 : i32
    %c0_i32_0 = arith.constant 0 : i32
    %c0_i32_1 = arith.constant 0 : i32
    %c0_i32_2 = arith.constant 0 : i32
    return %c0_i32, %c0_i32_0, %c0_i32_1 : i32, i32, i32
  }
  func.func @transform_10(%arg0: i32) -> (i32, i32) {
    %c0_i32 = arith.constant 0 : i32
    %c0_i32_0 = arith.constant 0 : i32
    %c0_i32_1 = arith.constant 0 : i32
    return %c0_i32, %c0_i32_0 : i32, i32
  }
  func.func @transform_11(%arg0: i32) -> (i32, i32, i32) {
    %c0_i32 = arith.constant 0 : i32
    %c0_i32_0 = arith.constant 0 : i32
    %c0_i32_1 = arith.constant 0 : i32
    %c0_i32_2 = arith.constant 0 : i32
    return %c0_i32, %c0_i32_0, %c0_i32_1 : i32, i32, i32
  }
  func.func @transform_12(%arg0: i32) -> (i32, i32) {
    %c0_i32 = arith.constant 0 : i32
    %c0_i32_0 = arith.constant 0 : i32
    %c0_i32_1 = arith.constant 0 : i32
    return %c0_i32, %c0_i32_0 : i32, i32
  }
  func.func @transform_13(%arg0: i32) -> (i32, i32, i32) {
    %c0_i32 = arith.constant 0 : i32
    %c0_i32_0 = arith.constant 0 : i32
    %c0_i32_1 = arith.constant 0 : i32
    return %arg0, %c0_i32, %c0_i32_0 : i32, i32, i32
  }
}

</mosaic_0001>

<bundles_post_ra>
// kernel: forward.3
= control target key start
LH: loop header
LB: loop body
LE: loop exit
PB: predicated region body
PF: predicated region fallthrough
CT: control target
= control target key end

     0   :  { %s3175_s25 = smov 0   ;;  %s3745_s0 = inlined_call_operand.vmem [shape: f32[2,32,16], index: 0, kind: input, shape index: {}]   ;;  %s3746_s1 = inlined_call_operand.vmem [shape: bf16[4,128,128], index: 1, kind: input, shape index: {}]   ;;  %s3747_s2 = inlined_call_operand.vmem [shape: f32[1,128], index: 2, kind: input, shape index: {}]   ;;  %s3748_s3 = inlined_call_operand.vmem [shape: bf16[3,128,128], index: 3, kind: input, shape index: {}]   ;;  %s3749_s4 = inlined_call_operand.vmem [shape: f32[1,128], index: 4, kind: input, shape index: {}]   ;;  %s3750_s5 = inlined_call_operand.vmem [shape: bf16[1,128,128], index: 5, kind: input, shape index: {}]   ;;  %s3751_s6 = inlined_call_operand.vmem [shape: f32[1,128], index: 6, kind: input, shape index: {}]   ;;  %s3752_s7 = inlined_call_operand.vmem [shape: bf16[3,128,128], index: 7, kind: input, shape index: {}]   ;;  %s3753_s8 = inlined_call_operand.vmem [shape: f32[1,128], index: 8, kind: input, shape index: {}]   ;;  %s3754_s9 = inlined_call_operand.vmem [shape: bf16[1,128,128], index: 9, kind: input, shape index: {}]   ;;  %s3755_s10 = inlined_call_operand.vmem [shape: f32[1,128], index: 10, kind: input, shape index: {}]   ;;  %s3756_s11 = inlined_call_operand.vmem [shape: bf16[3,128,128], index: 11, kind: input, shape index: {}]   ;;  %s3757_s12 = inlined_call_operand.vmem [shape: f32[1,128], index: 12, kind: input, shape index: {}]   ;;  %s3758_s13 = inlined_call_operand.vmem [shape: f32[2,32,8], index: 13, kind: output, shape index: {}]  }
   0x1 LB: > { %s2247_s26 = sadd.s32 4294967295, %s3101_s25   ;;  %p2251_p0 = scmp.ge.s32.totalorder %s3101_s25, 1  ;;  %s3101_s25 = sphi %s3175_s25, %s23_s25  }
   0x2   : > { %p387_p1 = scmp.lt.s32.totalorder %s3101_s25, 3 }
   0x4   : > { %p388_p2 = pnand %p2251_p0, %p387_p1 }
   0x5   : > { %p431_p3 = scmp.lt.s32.totalorder (!%p388_p2), %s2247_s26, 1 }
   0x6   : > { %391 = sbr.rel (%p388_p2) target bundleno = 1630 (0x65e), region = 72 }
   0xb   : > { %v3103_v0 = vmov 0.0   ;;  %v2975_v1 = vld [vmem:[%s3746_s1 + $0x78] sm:$0xff]   ;;  %s3760_s26 = smov (!%p431_p3, %s2247_s26), 1  ;;  %v2977_v3 = vld [vmem:[%s3746_s1 + $0x70] sm:$0xff]   ;;  %v2979_v7 = vld [vmem:[%s3746_s1 + $0x68] sm:$0xff]   ;;  %vm3104_vm0 = vmmov 0  }
   0xc   : > { %2665 = vmatprep.subr.bf16.mxu0 %v3103_v0  ;;  %442 = vst [vmem:[#allocation2] sm:$0xff] %v3103_v0  ;;  %443 = vst [vmem:[#allocation2 + $0x8] sm:$0xff] %v3103_v0  ;;  %2685 = vmatprep.subr.bf16.mxu1 %v3103_v0  ;;  %v2976_v2 = vld [vmem:[%s3746_s1 + $0x38] sm:$0xff]   ;;  %s2528_s16 = sshll.u32 %s3760_s26, 5  ;;  %v2978_v4 = vld [vmem:[%s3746_s1 + $0x30] sm:$0xff]   ;;  %vm480_vm1 = vcmask 261120  }
   0xd   : > { %486 = vst [vmem:[#allocation2 + $0x11] sm:$0x1] %v3103_v0  ;;  %2666 = vmatpush3.bf16.msra.mxu0 %v2975_v1  ;;  %2686 = vmatpush3.bf16.msra.mxu1 %v2976_v2  ;;  %s435_s21 = scalar_lea.vmem %s3745_s0, %s2528_s16  ;;  %v2980_v8 = vld [vmem:[%s3746_s1 + $0x28] sm:$0xff]   ;;  %v2981_v10 = vld [vmem:[%s3746_s1 + $0x60] sm:$0xff]   ;;  %v2983_v12 = vld [vmem:[%s3746_s1 + $0x58] sm:$0xff]   ;;  %s440_s15 = scalar_lea.vmem %s3758_s13, %s2528_s16  ;;  %vm2187_vm2 = vcmask 64512  }
   0xe   : > { %2667 = vmatprep.subr.bf16.mxu0 %v3103_v0  ;;  %2687 = vmatprep.subr.bf16.mxu1 %v3103_v0  ;;  %v444_v5 = vld [vmem:[%s435_s21] sm:$0xff]  ;;  %v445_v6 = vld [vmem:[%s435_s21 + $0x8] sm:$0xff]  ;;  %v446_v9 = vld [vmem:[%s435_s21 + $0x10] sm:$0xff] }
   0xf   : > { %448 = vxpose.xlu0.b32.start [1/4] (short) (narrow) %v444_v5, 16  ;;  %v2982_v11 = vld [vmem:[%s3746_s1 + $0x20] sm:$0xff]   ;;  %v447_v13 = vld [vmem:[%s435_s21 + $0x18] sm:$0xff]  ;;  %v2985_v15 = vld [vmem:[%s3746_s1 + $0x50] sm:$0xff]   ;;  %2681 = vmatprep.mubr.msk.bf16.mxu0 %vm3104_vm0, %v3103_v0 }
  0x10   : > { %v2984_v14 = vld [vmem:[%s3746_s1 + $0x18] sm:$0xff]   ;;  %v2986_v16 = vld [vmem:[%s3746_s1 + $0x10] sm:$0xff]   ;;  %v2987_v17 = vld [vmem:[%s3746_s1 + $0x48] sm:$0xff]   ;;  %2701 = vmatprep.mubr.msk.bf16.mxu1 %vm3104_vm0, %v3103_v0 }
  0x11   : > { %2668 = vmatpush3.bf16.msra.mxu0 %v2977_v3  ;;  %2688 = vmatpush3.bf16.msra.mxu1 %v2978_v4  ;;  %v2988_v18 = vld [vmem:[%s3746_s1 + $0x8] sm:$0xff]   ;;  %v2989_v19 = vld [vmem:[%s3746_s1 + $0x40] sm:$0xff]   ;;  %v2991_v25 = vld [vmem:[%s3746_s1 + $0xb8] sm:$0xff]  }
  0x12   : > { %2669 = vmatprep.subr.bf16.mxu0 %v3103_v0  ;;  %2689 = vmatprep.subr.bf16.mxu1 %v3103_v0  ;;  %v2990_v20 = vld [vmem:[%s3746_s1] sm:$0xff]   ;;  %v2992_v26 = vld [vmem:[%s3746_s1 + $0xf8] sm:$0xff]   ;;  %v2993_v33 = vld [vmem:[%s3746_s1 + $0xb0] sm:$0xff]  }
  0x13   : > { %449 = vxpose.xlu0.b32.cont [2/4] (short) (narrow) %v445_v6, 16  ;;  %v2994_v34 = vld [vmem:[%s3746_s1 + $0xf0] sm:$0xff]   ;;  %v2995_v35 = vld [vmem:[%s3746_s1 + $0xa8] sm:$0xff]   ;;  %v2997_v37 = vld [vmem:[%s3746_s1 + $0xa0] sm:$0xff]  }
  0x14   : > { %v2996_v36 = vld [vmem:[%s3746_s1 + $0xe8] sm:$0xff]   ;;  %v2998_v38 = vld [vmem:[%s3746_s1 + $0xe0] sm:$0xff]   ;;  %v2999_v39 = vld [vmem:[%s3746_s1 + $0x98] sm:$0xff]  }
  0x15   : > { %2670 = vmatpush3.bf16.msra.mxu0 %v2979_v7  ;;  %2690 = vmatpush3.bf16.msra.mxu1 %v2980_v8  ;;  %v3000_v40 = vld [vmem:[%s3746_s1 + $0xd8] sm:$0xff]   ;;  %v3001_v41 = vld [vmem:[%s3746_s1 + $0x90] sm:$0xff]   ;;  %v3003_v43 = vld [vmem:[%s3746_s1 + $0x88] sm:$0xff]  }
  0x16   : > { %2671 = vmatprep.subr.bf16.mxu0 %v3103_v0  ;;  %2691 = vmatprep.subr.bf16.mxu1 %v3103_v0  ;;  %v3002_v42 = vld [vmem:[%s3746_s1 + $0xd0] sm:$0xff]   ;;  %v3004_v44 = vld [vmem:[%s3746_s1 + $0xc8] sm:$0xff]   ;;  %v3005_v45 = vld [vmem:[%s3746_s1 + $0x80] sm:$0xff]  }
  0x17   : > { %450 = vxpose.xlu0.b32.cont [3/4] (short) (narrow) %v446_v9, 16  ;;  %v3006_v46 = vld [vmem:[%s3746_s1 + $0xc0] sm:$0xff]   ;;  %v3007_v49 = vld [vmem:[%s3748_s3 + $0x78] sm:$0xff]   ;;  %v3009_v51 = vld [vmem:[%s3748_s3 + $0x70] sm:$0xff]  }
  0x18   : > { %v3008_v50 = vld [vmem:[%s3748_s3 + $0x38] sm:$0xff]   ;;  %v3010_v52 = vld [vmem:[%s3748_s3 + $0x30] sm:$0xff]   ;;  %v3011_v53 = vld [vmem:[%s3748_s3 + $0x68] sm:$0xff]  }
  0x19   : > { %2672 = vmatpush3.bf16.msra.mxu0 %v2981_v10  ;;  %2692 = vmatpush3.bf16.msra.mxu1 %v2982_v11  ;;  %v3012_v54 = vld [vmem:[%s3748_s3 + $0x28] sm:$0xff]   ;;  %v3013_v55 = vld [vmem:[%s3748_s3 + $0x60] sm:$0xff]   ;;  %v3015_v56 = vld [vmem:[%s3748_s3 + $0x58] sm:$0xff]  }
  0x1a   : > { %2673 = vmatprep.subr.bf16.mxu0 %v3103_v0  ;;  %2693 = vmatprep.subr.bf16.mxu1 %v3103_v0  ;;  %v3017_v57 = vld [vmem:[%s3748_s3 + $0x50] sm:$0xff]   ;;  %v3014_v58 = vld [vmem:[%s3748_s3 + $0x20] sm:$0xff]   ;;  %v3019_v59 = vld [vmem:[%s3748_s3 + $0x48] sm:$0xff]  }
  0x1b   : > { %451 = vxpose.xlu0.b32.end [4/4] (short) (narrow) %v447_v13, 16  ;;  %v3016_v60 = vld [vmem:[%s3748_s3 + $0x18] sm:$0xff]   ;;  %v3021_v61 = vld [vmem:[%s3748_s3 + $0x40] sm:$0xff]   ;;  %v3018_v62 = vld [vmem:[%s3748_s3 + $0x10] sm:$0xff]  }
  0x1c   : > { %v3020_v63 = vld [vmem:[%s3748_s3 + $0x8] sm:$0xff]   ;;  %v3022_v1 = vld [vmem:[%s3748_s3] sm:$0xff]  }
  0x1d   : > { %2674 = vmatpush3.bf16.msra.mxu0 %v2983_v12  ;;  %2694 = vmatpush3.bf16.msra.mxu1 %v2984_v14  ;;  %v2336_v14 = vld [vmem:[%s3747_s2] ss:$0 sm:$0xff] }
  0x1e   : > { %2675 = vmatprep.subr.bf16.mxu0 %v3103_v0  ;;  %2695 = vmatprep.subr.bf16.mxu1 %v3103_v0 }
  0x21   : > { %2676 = vmatpush3.bf16.msra.mxu0 %v2985_v15  ;;  %2696 = vmatpush3.bf16.msra.mxu1 %v2986_v16 }
  0x22   : > { %2677 = vmatprep.subr.bf16.mxu0 %v3103_v0  ;;  %2697 = vmatprep.subr.bf16.mxu1 %v3103_v0 }
  0x25   : > { %2678 = vmatpush3.bf16.msra.mxu0 %v2987_v17  ;;  %2698 = vmatpush3.bf16.msra.mxu1 %v2988_v18 }
  0x26   : > { %2679 = vmatprep.subr.bf16.mxu0 %v3103_v0  ;;  %2699 = vmatprep.subr.bf16.mxu1 %v3103_v0 }
  0x29   : > { %2680 = vmatpush3.bf16.msra.mxu0 %v2989_v19  ;;  %2700 = vmatpush3.bf16.msra.mxu1 %v2990_v20 }
  0x2a   : > { %2705 = vmatprep.subr.bf16.mxu0 %v3103_v0  ;;  %2725 = vmatprep.subr.bf16.mxu1 %v3103_v0 }
  0x8b   : > { %v464_v21 = vpop.trf.xlu0 }
  0x8c   : > { %481 = vst.msk [vmem:[#allocation2] sm:$0xff] %vm480_vm1, %v464_v21 }
  0x8f   : > { %v465_v22 = vpop.trf.xlu0 }
  0x90   : > { %482 = vst.msk [vmem:[#allocation2 + $0x8] sm:$0xff] %vm480_vm1, %v465_v22 }
  0x93   : > { %v483_v23 = vld [vmem:[#allocation2] sm:$0xff] }
  0x94   : > { %485 = vst [vmem:[#allocation2] sm:$0x1] %v3103_v0 }
  0x97   : > { %v484_v24 = vld [vmem:[#allocation2 + $0x8] sm:$0xff] }
  0x98   : > { %487 = vst [vmem:[#allocation2 + $0x1] sm:$0xff] %v483_v23  ;;  %488 = vst [vmem:[#allocation2 + $0x9] sm:$0xff] %v484_v24  ;;  %v3023_v24 = vld [vmem:[%s3748_s3 + $0xb8] sm:$0xff]  }
  0x9f   : > { %v508_v27 = vld [vmem:[#allocation2 + $0x1] ss:$2 sm:$0xff]  ;;  %v489_v29 = vld [vmem:[#allocation2] ss:$2 sm:$0xff] }
  0xa0   : > { %v813_v28 = vld [vmem:[#allocation2 + $0x3] ss:$2 sm:$0xff]  ;;  %v509_v30 = vpack.c.bf16 %v508_v27, %v508_v27  ;;  %v490_v31 = vpack.c.bf16 %v489_v29, %v489_v29  ;;  %930 = vst [vmem:[#allocation2] sm:$0x1] %v3103_v0  ;;  %v704_v32 = vld [vmem:[#allocation2 + $0x2] ss:$2 sm:$0xff] }
  0xa1   : > { %931 = vst [vmem:[#allocation2 + $0x9] sm:$0x1] %v3103_v0  ;;  %1378 = vst [vmem:[#allocation2 + $0xa] sm:$0x3] %v3103_v0  ;;  %v705_v47 = vpack.c.bf16 %v704_v32, %v704_v32  ;;  %v814_v48 = vpack.c.bf16 %v813_v28, %v813_v28  ;;  %v3025_v28 = vld [vmem:[%s3748_s3 + $0xa8] sm:$0xff]   ;;  %v3028_v32 = vld [vmem:[%s3748_s3 + $0x90] sm:$0xff]  }
  0xa2   : > { %2682 = vmatmul.mubr.bf16.vlgmr.msra.gmra.mxu0 %v509_v30  ;;  %2702 = vmatmul.mubr.bf16.vlgmr.msra.gmra.mxu1 %v490_v31  ;;  %v3026_v30 = vld [vmem:[%s3748_s3 + $0xa0] sm:$0xff]   ;;  %v3027_v31 = vld [vmem:[%s3748_s3 + $0x98] sm:$0xff]  }
  0xa3   : > { %2706 = vmatpush3.bf16.msra.mxu0 %v2991_v25  ;;  %2726 = vmatpush3.bf16.msra.mxu1 %v2992_v26  ;;  %v3024_v26 = vld [vmem:[%s3748_s3 + $0xb0] sm:$0xff]  }
  0xa4   : > { %2707 = vmatprep.subr.bf16.mxu0 %v3103_v0  ;;  %2727 = vmatprep.subr.bf16.mxu1 %v3103_v0 }
  0xa5   : > { %2721 = vmatprep.mubr.msk.bf16.mxu0 %vm3104_vm0, %v3103_v0  ;;  %2741 = vmatprep.mubr.msk.bf16.mxu1 %vm3104_vm0, %v3103_v0 }
  0xa7   : > { %2708 = vmatpush3.bf16.msra.mxu0 %v2993_v33  ;;  %2728 = vmatpush3.bf16.msra.mxu1 %v2994_v34  ;;  %v3029_v33 = vld [vmem:[%s3748_s3 + $0x88] sm:$0xff]   ;;  %v3030_v34 = vld [vmem:[%s3748_s3 + $0x80] sm:$0xff]  }
  0xa8   : > { %2709 = vmatprep.subr.bf16.mxu0 %v3103_v0  ;;  %2729 = vmatprep.subr.bf16.mxu1 %v3103_v0 }
  0xab   : > { %2710 = vmatpush3.bf16.msra.mxu0 %v2995_v35  ;;  %2730 = vmatpush3.bf16.msra.mxu1 %v2996_v36 }
  0xac   : > { %2711 = vmatprep.subr.bf16.mxu0 %v3103_v0  ;;  %2731 = vmatprep.subr.bf16.mxu1 %v3103_v0 }
  0xaf   : > { %2712 = vmatpush3.bf16.msra.mxu0 %v2997_v37  ;;  %2732 = vmatpush3.bf16.msra.mxu1 %v2998_v38  ;;  %v3031_v37 = vld [vmem:[%s3750_s5 + $0x38] sm:$0xff]   ;;  %v3032_v38 = vld [vmem:[%s3750_s5 + $0x30] sm:$0xff]  }
  0xb0   : > { %2713 = vmatprep.subr.bf16.mxu0 %v3103_v0  ;;  %2733 = vmatprep.subr.bf16.mxu1 %v3103_v0 }
  0xb3   : > { %2714 = vmatpush3.bf16.msra.mxu0 %v2999_v39  ;;  %2734 = vmatpush3.bf16.msra.mxu1 %v3000_v40  ;;  %v3033_v39 = vld [vmem:[%s3750_s5 + $0x28] sm:$0xff]   ;;  %v3034_v40 = vld [vmem:[%s3750_s5 + $0x20] sm:$0xff]  }
  0xb4   : > { %2715 = vmatprep.subr.bf16.mxu0 %v3103_v0  ;;  %2735 = vmatprep.subr.bf16.mxu1 %v3103_v0 }
  0xb7   : > { %2716 = vmatpush3.bf16.msra.mxu0 %v3001_v41  ;;  %2736 = vmatpush3.bf16.msra.mxu1 %v3002_v42  ;;  %v3035_v41 = vld [vmem:[%s3750_s5 + $0x18] sm:$0xff]   ;;  %v3036_v42 = vld [vmem:[%s3750_s5 + $0x10] sm:$0xff]  }
  0xb8   : > { %2717 = vmatprep.subr.bf16.mxu0 %v3103_v0  ;;  %2737 = vmatprep.subr.bf16.mxu1 %v3103_v0 }
  0xbb   : > { %2718 = vmatpush3.bf16.msra.mxu0 %v3003_v43  ;;  %2738 = vmatpush3.bf16.msra.mxu1 %v3004_v44  ;;  %v3037_v43 = vld [vmem:[%s3750_s5 + $0x8] sm:$0xff]   ;;  %v3038_v44 = vld [vmem:[%s3750_s5] sm:$0xff]  }
  0xbc   : > { %2719 = vmatprep.subr.bf16.mxu0 %v3103_v0  ;;  %2739 = vmatprep.subr.bf16.mxu1 %v3103_v0 }
  0xbf   : > { %2720 = vmatpush3.bf16.msra.mxu0 %v3005_v45  ;;  %2740 = vmatpush3.bf16.msra.mxu1 %v3006_v46  ;;  %v3039_v45 = vld [vmem:[%s3752_s7 + $0x78] sm:$0xff]   ;;  %v3041_v46 = vld [vmem:[%s3752_s7 + $0x70] sm:$0xff]  }
  0xc0   : > { %2745 = vmatprep.subr.bf16.mxu0 %v3103_v0  ;;  %2765 = vmatprep.subr.bf16.mxu1 %v3103_v0 }
  0xc2   : > { %2722 = vmatmul.mubr.bf16.vlgmr.msra.gmra.mxu0 %v705_v47  ;;  %2742 = vmatmul.mubr.bf16.vlgmr.msra.gmra.mxu1 %v814_v48  ;;  %v3043_v47 = vld [vmem:[%s3752_s7 + $0x68] sm:$0xff]   ;;  %v3045_v48 = vld [vmem:[%s3752_s7 + $0x60] sm:$0xff]  }
  0xc3   : > { %2761 = vmatprep.mubr.msk.bf16.mxu0 %vm3104_vm0, %v3103_v0  ;;  %2781 = vmatprep.mubr.msk.bf16.mxu1 %vm3104_vm0, %v3103_v0 }
  0xc4   : > { %2746 = vmatpush3.bf16.msra.mxu0 %v3007_v49  ;;  %2766 = vmatpush3.bf16.msra.mxu1 %v3008_v50 }
  0xc5   : > { %2747 = vmatprep.subr.bf16.mxu0 %v3103_v0  ;;  %2767 = vmatprep.subr.bf16.mxu1 %v3103_v0 }
  0xc8   : > { %2748 = vmatpush3.bf16.msra.mxu0 %v3009_v51  ;;  %2768 = vmatpush3.bf16.msra.mxu1 %v3010_v52 }
  0xc9   : > { %2749 = vmatprep.subr.bf16.mxu0 %v3103_v0  ;;  %2769 = vmatprep.subr.bf16.mxu1 %v3103_v0 }
  0xcc   : > { %2750 = vmatpush3.bf16.msra.mxu0 %v3011_v53  ;;  %2770 = vmatpush3.bf16.msra.mxu1 %v3012_v54 }
  0xcd   : > { %2751 = vmatprep.subr.bf16.mxu0 %v3103_v0  ;;  %2771 = vmatprep.subr.bf16.mxu1 %v3103_v0 }
  0xd0   : > { %2752 = vmatpush3.bf16.msra.mxu0 %v3013_v55  ;;  %2772 = vmatpush3.bf16.msra.mxu1 %v3014_v58 }
  0xd1   : > { %2753 = vmatprep.subr.bf16.mxu0 %v3103_v0  ;;  %2773 = vmatprep.subr.bf16.mxu1 %v3103_v0 }
  0xd4   : > { %2754 = vmatpush3.bf16.msra.mxu0 %v3015_v56  ;;  %2774 = vmatpush3.bf16.msra.mxu1 %v3016_v60 }
  0xd5   : > { %2755 = vmatprep.subr.bf16.mxu0 %v3103_v0  ;;  %2775 = vmatprep.subr.bf16.mxu1 %v3103_v0 }
  0xd8   : > { %2756 = vmatpush3.bf16.msra.mxu0 %v3017_v57  ;;  %2776 = vmatpush3.bf16.msra.mxu1 %v3018_v62 }
  0xd9   : > { %2757 = vmatprep.subr.bf16.mxu0 %v3103_v0  ;;  %2777 = vmatprep.subr.bf16.mxu1 %v3103_v0 }
  0xdc   : > { %2758 = vmatpush3.bf16.msra.mxu0 %v3019_v59  ;;  %2778 = vmatpush3.bf16.msra.mxu1 %v3020_v63  ;;  %v2393_v59 = vld [vmem:[%s3749_s4] ss:$0 sm:$0xff] }
  0xdd   : > { %2759 = vmatprep.subr.bf16.mxu0 %v3103_v0  ;;  %2779 = vmatprep.subr.bf16.mxu1 %v3103_v0 }
  0xe0   : > { %2760 = vmatpush3.bf16.msra.mxu0 %v3021_v61  ;;  %2780 = vmatpush3.bf16.msra.mxu1 %v3022_v1 }
  0xe1   : > { %2785 = vmatprep.subr.bf16.mxu0 %v3103_v0  ;;  %2805 = vmatprep.subr.bf16.mxu1 %v3103_v0 }
 0x162   : > { %v609_v2 = vpop.f32.mrf.mxu0  ;;  %v697_v3 = vpop.f32.mrf.mxu1 }
 0x163   : > { %v698_v10 = vadd.f32 %v697_v3, %v609_v2  ;;  %v3040_v3 = vld [vmem:[%s3752_s7 + $0x38] sm:$0xff]  }
 0x164   : > { %v2683_v4 = vpop.f32.mrf.mxu0  ;;  %v2703_v5 = vpop.f32.mrf.mxu1 }
 0x165   : > { %v3042_v5 = vld [vmem:[%s3752_s7 + $0x30] sm:$0xff]  }
 0x166   : > { %v612_v6 = vpop.f32.mrf.mxu0  ;;  %v700_v7 = vpop.f32.mrf.mxu1 }
 0x167   : > { %v3044_v6 = vld [vmem:[%s3752_s7 + $0x28] sm:$0xff]   ;;  %v3046_v7 = vld [vmem:[%s3752_s7 + $0x20] sm:$0xff]  }
 0x168   : > { %v2684_v8 = vpop.f32.mrf.mxu0  ;;  %v2704_v9 = vpop.f32.mrf.mxu1 }
 0x169   : > { %v3047_v8 = vld [vmem:[%s3752_s7 + $0x58] sm:$0xff]   ;;  %v3049_v9 = vld [vmem:[%s3752_s7 + $0x50] sm:$0xff]  }
 0x182   : > { %v805_v11 = vpop.f32.mrf.mxu0  ;;  %v914_v12 = vpop.f32.mrf.mxu1 }
 0x183   : > { %v811_v13 = vadd.f32 %v805_v11, %v698_v10  ;;  %v3051_v10 = vld [vmem:[%s3752_s7 + $0x48] sm:$0xff]   ;;  %v3048_v11 = vld [vmem:[%s3752_s7 + $0x18] sm:$0xff]  }
 0x184   : > { %v2723_v15 = vpop.f32.mrf.mxu0  ;;  %v2743_v16 = vpop.f32.mrf.mxu1 }
 0x185   : > { %v920_v17 = vadd.f32 %v914_v12, %v811_v13  ;;  %v3053_v12 = vld [vmem:[%s3752_s7 + $0x40] sm:$0xff]   ;;  %v3050_v13 = vld [vmem:[%s3752_s7 + $0x10] sm:$0xff]  }
 0x186   : > { %v808_v18 = vpop.f32.mrf.mxu0  ;;  %v917_v19 = vpop.f32.mrf.mxu1  ;;  %v3054_v15 = vld [vmem:[%s3752_s7] sm:$0xff]  }
 0x187   : > { %v3407_v20 = vadd.f32 %v2336_v14, %v920_v17  ;;  %v3052_v14 = vld [vmem:[%s3752_s7 + $0x8] sm:$0xff]   ;;  %v2394_v16 = vld [vmem:[%s3751_s6] ss:$0 sm:$0xff] }
 0x188   : > { %v2724_v21 = vpop.f32.mrf.mxu0  ;;  %v2744_v22 = vpop.f32.mrf.mxu1 }
 0x189   : > { %v929_v23 = vmax.f32 %v3407_v20, 0.0 }
 0x18b   : > { %932 = vst [vmem:[#allocation2 + $0x1] sm:$0xff] %v929_v23  ;;  %v952_v25 = vpack.c.bf16 %v929_v23, %v929_v23 }
 0x18d   : > { %2762 = vmatmul.mubr.bf16.vlgmr.msra.gmra.mxu0 %v952_v25  ;;  %v3055_v25 = vld [vmem:[%s3752_s7 + $0xb8] sm:$0xff]  }
 0x18e   : > { %2786 = vmatpush3.bf16.msra.mxu0 %v3023_v24  ;;  %2801 = vmatprep.mubr.msk.bf16.mxu0 %vm3104_vm0, %v3103_v0 }
 0x18f   : > { %2787 = vmatprep.subr.bf16.mxu0 %v3103_v0 }
 0x192   : > { %v933_v27 = vld [vmem:[#allocation2] sm:$0xff]  ;;  %2788 = vmatpush3.bf16.msra.mxu0 %v3024_v26 }
 0x193   : > { %v934_v29 = vpack.c.bf16 %v933_v27, %v933_v27  ;;  %1377 = vst [vmem:[#allocation2] sm:$0x3] %v3103_v0  ;;  %2789 = vmatprep.subr.bf16.mxu0 %v3103_v0  ;;  %v1146_v35 = vld [vmem:[#allocation2 + $0x2] sm:$0xff]  ;;  %v3056_v27 = vld [vmem:[%s3752_s7 + $0xb0] sm:$0xff]  }
 0x194   : > { %v1147_v36 = vpack.c.bf16 %v1146_v35, %v1146_v35  ;;  %v3062_v35 = vld [vmem:[%s3752_s7 + $0x80] sm:$0xff]  }
 0x195   : > { %2782 = vmatmul.mubr.bf16.vlgmr.msra.gmra.mxu1 %v934_v29 }
 0x196   : > { %2790 = vmatpush3.bf16.msra.mxu0 %v3025_v28  ;;  %2821 = vmatprep.mubr.msk.bf16.mxu1 %vm3104_vm0, %v3103_v0  ;;  %v3057_v28 = vld [vmem:[%s3752_s7 + $0xa8] sm:$0xff]  }
 0x197   : > { %2791 = vmatprep.subr.bf16.mxu0 %v3103_v0  ;;  %2806 = vmatpush3.bf16.msra.mxu1 %v3031_v37  ;;  %v3063_v37 = vld [vmem:[%s3754_s9 + $0x38] sm:$0xff]  }
 0x198   : > { %2807 = vmatprep.subr.bf16.mxu1 %v3103_v0 }
 0x19a   : > { %2792 = vmatpush3.bf16.msra.mxu0 %v3026_v30 }
 0x19b   : > { %2793 = vmatprep.subr.bf16.mxu0 %v3103_v0  ;;  %2808 = vmatpush3.bf16.msra.mxu1 %v3032_v38  ;;  %v3064_v38 = vld [vmem:[%s3754_s9 + $0x30] sm:$0xff]  }
 0x19c   : > { %2809 = vmatprep.subr.bf16.mxu1 %v3103_v0 }
 0x19e   : > { %2794 = vmatpush3.bf16.msra.mxu0 %v3027_v31  ;;  %v3058_v31 = vld [vmem:[%s3752_s7 + $0xa0] sm:$0xff]  }
 0x19f   : > { %2795 = vmatprep.subr.bf16.mxu0 %v3103_v0  ;;  %2810 = vmatpush3.bf16.msra.mxu1 %v3033_v39  ;;  %v3065_v39 = vld [vmem:[%s3754_s9 + $0x28] sm:$0xff]  }
 0x1a0   : > { %2811 = vmatprep.subr.bf16.mxu1 %v3103_v0 }
 0x1a2   : > { %2796 = vmatpush3.bf16.msra.mxu0 %v3028_v32  ;;  %v3059_v32 = vld [vmem:[%s3752_s7 + $0x98] sm:$0xff]  }
 0x1a3   : > { %2797 = vmatprep.subr.bf16.mxu0 %v3103_v0  ;;  %2812 = vmatpush3.bf16.msra.mxu1 %v3034_v40  ;;  %v3066_v40 = vld [vmem:[%s3754_s9 + $0x20] sm:$0xff]  }
 0x1a4   : > { %2813 = vmatprep.subr.bf16.mxu1 %v3103_v0 }
 0x1a6   : > { %2798 = vmatpush3.bf16.msra.mxu0 %v3029_v33  ;;  %v3060_v33 = vld [vmem:[%s3752_s7 + $0x90] sm:$0xff]  }
 0x1a7   : > { %2799 = vmatprep.subr.bf16.mxu0 %v3103_v0  ;;  %2814 = vmatpush3.bf16.msra.mxu1 %v3035_v41  ;;  %v3067_v41 = vld [vmem:[%s3754_s9 + $0x18] sm:$0xff]  }
 0x1a8   : > { %2815 = vmatprep.subr.bf16.mxu1 %v3103_v0 }
 0x1aa   : > { %2800 = vmatpush3.bf16.msra.mxu0 %v3030_v34  ;;  %v3061_v34 = vld [vmem:[%s3752_s7 + $0x88] sm:$0xff]  }
 0x1ab   : > { %2825 = vmatprep.subr.bf16.mxu0 %v3103_v0  ;;  %2816 = vmatpush3.bf16.msra.mxu1 %v3036_v42  ;;  %v3068_v42 = vld [vmem:[%s3754_s9 + $0x10] sm:$0xff]  }
 0x1ac   : > { %2817 = vmatprep.subr.bf16.mxu1 %v3103_v0 }
 0x1ad   : > { %2802 = vmatmul.mubr.bf16.vlgmr.msra.gmra.mxu0 %v1147_v36 }
 0x1ae   : > { %2841 = vmatprep.mubr.msk.bf16.mxu0 %vm3104_vm0, %v3103_v0  ;;  %2826 = vmatpush3.bf16.msra.mxu0 %v3039_v45  ;;  %v3071_v45 = vld [vmem:[%s3756_s11 + $0x78] sm:$0xff]  }
 0x1af   : > { %2818 = vmatpush3.bf16.msra.mxu1 %v3037_v43  ;;  %2827 = vmatprep.subr.bf16.mxu0 %v3103_v0  ;;  %v3069_v43 = vld [vmem:[%s3754_s9 + $0x8] sm:$0xff]  }
 0x1b0   : > { %2819 = vmatprep.subr.bf16.mxu1 %v3103_v0 }
 0x1b2   : > { %2828 = vmatpush3.bf16.msra.mxu0 %v3041_v46  ;;  %v3073_v46 = vld [vmem:[%s3756_s11 + $0x70] sm:$0xff]  }
 0x1b3   : > { %2820 = vmatpush3.bf16.msra.mxu1 %v3038_v44  ;;  %2829 = vmatprep.subr.bf16.mxu0 %v3103_v0  ;;  %v3070_v44 = vld [vmem:[%s3754_s9] sm:$0xff]  }
 0x1b4   : > { %2845 = vmatprep.subr.bf16.mxu1 %v3103_v0 }
 0x1b6   : > { %2830 = vmatpush3.bf16.msra.mxu0 %v3043_v47  ;;  %v3075_v47 = vld [vmem:[%s3756_s11 + $0x68] sm:$0xff]  }
 0x1b7   : > { %2831 = vmatprep.subr.bf16.mxu0 %v3103_v0 }
 0x1ba   : > { %2832 = vmatpush3.bf16.msra.mxu0 %v3045_v48  ;;  %v3077_v48 = vld [vmem:[%s3756_s11 + $0x60] sm:$0xff]  }
 0x1bb   : > { %2833 = vmatprep.subr.bf16.mxu0 %v3103_v0 }
 0x1be   : > { %2834 = vmatpush3.bf16.msra.mxu0 %v3047_v8  ;;  %v3078_v8 = vld [vmem:[%s3756_s11 + $0x20] sm:$0xff]  }
 0x1bf   : > { %2835 = vmatprep.subr.bf16.mxu0 %v3103_v0 }
 0x1c2   : > { %2836 = vmatpush3.bf16.msra.mxu0 %v3049_v9  ;;  %v3081_v9 = vld [vmem:[%s3756_s11 + $0x50] sm:$0xff]  }
 0x1c3   : > { %2837 = vmatprep.subr.bf16.mxu0 %v3103_v0 }
 0x1c6   : > { %2838 = vmatpush3.bf16.msra.mxu0 %v3051_v10  ;;  %v3083_v10 = vld [vmem:[%s3756_s11 + $0x48] sm:$0xff]  }
 0x1c7   : > { %2839 = vmatprep.subr.bf16.mxu0 %v3103_v0 }
 0x1ca   : > { %2840 = vmatpush3.bf16.msra.mxu0 %v3053_v12  ;;  %v3085_v12 = vld [vmem:[%s3756_s11 + $0x40] sm:$0xff]  }
 0x1cb   : > { %2865 = vmatprep.subr.bf16.mxu0 %v3103_v0 }
 0x24d   : > { %v1052_v49 = vpop.f32.mrf.mxu0 }
 0x24f   : > { %v2763_v50 = vpop.f32.mrf.mxu0 }
 0x251   : > { %v1055_v51 = vpop.f32.mrf.mxu0 }
 0x253   : > { %v2764_v52 = vpop.f32.mrf.mxu0 }
 0x255   : > { %v1140_v53 = vpop.f32.mrf.mxu1 }
 0x256   : > { %v1141_v57 = vadd.f32 %v1140_v53, %v1052_v49  ;;  %v3079_v49 = vld [vmem:[%s3756_s11 + $0x58] sm:$0xff]  }
 0x257   : > { %v2783_v54 = vpop.f32.mrf.mxu1 }
 0x259   : > { %v1143_v55 = vpop.f32.mrf.mxu1 }
 0x25b   : > { %v2784_v56 = vpop.f32.mrf.mxu1 }
 0x26d   : > { %v1247_v58 = vpop.f32.mrf.mxu0 }
 0x26e   : > { %v1253_v60 = vadd.f32 %v1247_v58, %v1141_v57 }
 0x26f   : > { %v2803_v61 = vpop.f32.mrf.mxu0 }
 0x270   : > { %v1261_v62 = vadd.f32 %v2393_v59, %v1253_v60  ;;  %v2459_v60 = vld [vmem:[%s3753_s8] ss:$0 sm:$0xff] }
 0x271   : > { %v1250_v63 = vpop.f32.mrf.mxu0 }
 0x272   : > { %v1262_v1 = vmax.f32 %v1261_v62, 0.0 }
 0x273   : > { %v2804_v2 = vpop.f32.mrf.mxu0 }
 0x274   : > { %v1263_v4 = vpack.c.bf16 %v1262_v1, %v1262_v1 }
 0x276   : > { %2822 = vmatmul.mubr.bf16.vlgmr.msra.gmra.mxu1 %v1263_v4  ;;  %v3072_v4 = vld [vmem:[%s3756_s11 + $0x38] sm:$0xff]  }
 0x277   : > { %2846 = vmatpush3.bf16.msra.mxu1 %v3040_v3  ;;  %2861 = vmatprep.mubr.msk.bf16.mxu1 %vm3104_vm0, %v3103_v0 }
 0x278   : > { %2847 = vmatprep.subr.bf16.mxu1 %v3103_v0 }
 0x27b   : > { %2848 = vmatpush3.bf16.msra.mxu1 %v3042_v5 }
 0x27c   : > { %2849 = vmatprep.subr.bf16.mxu1 %v3103_v0 }
 0x27f   : > { %2850 = vmatpush3.bf16.msra.mxu1 %v3044_v6  ;;  %v3074_v6 = vld [vmem:[%s3756_s11 + $0x30] sm:$0xff]  }
 0x280   : > { %2851 = vmatprep.subr.bf16.mxu1 %v3103_v0 }
 0x283   : > { %2852 = vmatpush3.bf16.msra.mxu1 %v3046_v7  ;;  %v3076_v7 = vld [vmem:[%s3756_s11 + $0x28] sm:$0xff]  }
 0x284   : > { %2853 = vmatprep.subr.bf16.mxu1 %v3103_v0 }
 0x287   : > { %2854 = vmatpush3.bf16.msra.mxu1 %v3048_v11  ;;  %v3080_v11 = vld [vmem:[%s3756_s11 + $0x18] sm:$0xff]  }
 0x288   : > { %2855 = vmatprep.subr.bf16.mxu1 %v3103_v0 }
 0x28b   : > { %2856 = vmatpush3.bf16.msra.mxu1 %v3050_v13  ;;  %v3082_v13 = vld [vmem:[%s3756_s11 + $0x10] sm:$0xff]  }
 0x28c   : > { %2857 = vmatprep.subr.bf16.mxu1 %v3103_v0 }
 0x28f   : > { %2858 = vmatpush3.bf16.msra.mxu1 %v3052_v14  ;;  %v3084_v14 = vld [vmem:[%s3756_s11 + $0x8] sm:$0xff]  }
 0x290   : > { %2859 = vmatprep.subr.bf16.mxu1 %v3103_v0 }
 0x293   : > { %2860 = vmatpush3.bf16.msra.mxu1 %v3054_v15  ;;  %v3086_v15 = vld [vmem:[%s3756_s11] sm:$0xff]  }
 0x294   : > { %2885 = vmatprep.subr.bf16.mxu1 %v3103_v0 }
 0x336   : > { %v1369_v17 = vpop.f32.mrf.mxu1 }
 0x337   : > { %v1370_v18 = vadd.f32 %v2394_v16, %v1369_v17  ;;  %v2460_v16 = vld [vmem:[%s3755_s10] ss:$0 sm:$0xff] }
 0x338   : > { %v2823_v19 = vpop.f32.mrf.mxu1 }
 0x339   : > { %v3554_v21 = vadd.f32 %v1370_v18, %v3407_v20 }
 0x33a   : > { %v1372_v22 = vpop.f32.mrf.mxu1 }
 0x33b   : > { %v1376_v23 = vmax.f32 %v3554_v21, 0.0 }
 0x33c   : > { %v2824_v24 = vpop.f32.mrf.mxu1 }
 0x33d   : > { %1379 = vst [vmem:[#allocation2 + $0x2] sm:$0xff] %v1376_v23  ;;  %v1399_v26 = vpack.c.bf16 %v1376_v23, %v1376_v23  ;;  %v3087_v24 = vld [vmem:[%s3756_s11 + $0xb8] sm:$0xff]  }
 0x33f   : > { %2842 = vmatmul.mubr.bf16.vlgmr.msra.gmra.mxu0 %v1399_v26 }
 0x340   : > { %2866 = vmatpush3.bf16.msra.mxu0 %v3055_v25  ;;  %2881 = vmatprep.mubr.msk.bf16.mxu0 %vm3104_vm0, %v3103_v0 }
 0x341   : > { %2867 = vmatprep.subr.bf16.mxu0 %v3103_v0 }
 0x344   : > { %v1380_v20 = vld [vmem:[#allocation2] sm:$0xff]  ;;  %2868 = vmatpush3.bf16.msra.mxu0 %v3056_v27  ;;  %v3088_v27 = vld [vmem:[%s3756_s11 + $0xb0] sm:$0xff]  }
 0x345   : > { %v1593_v29 = vld [vmem:[#allocation2 + $0x4] sm:$0xff]  ;;  %v1381_v30 = vpack.c.bf16 %v1380_v20, %v1380_v20  ;;  %1823 = vst [vmem:[#allocation2] sm:$0x1] %v3103_v0  ;;  %2869 = vmatprep.subr.bf16.mxu0 %v3103_v0 }
 0x346   : > { %1824 = vst [vmem:[#allocation2 + $0x9] sm:$0x1] %v3103_v0  ;;  %v1594_v36 = vpack.c.bf16 %v1593_v29, %v1593_v29  ;;  %v3089_v20 = vld [vmem:[%s3756_s11 + $0xa8] sm:$0xff]   ;;  %v3090_v29 = vld [vmem:[%s3756_s11 + $0xa0] sm:$0xff]  }
 0x347   : > { %2862 = vmatmul.mubr.bf16.vlgmr.msra.gmra.mxu1 %v1381_v30  ;;  %v3091_v30 = vld [vmem:[%s3756_s11 + $0x98] sm:$0xff]  }
 0x348   : > { %2870 = vmatpush3.bf16.msra.mxu0 %v3057_v28  ;;  %2901 = vmatprep.mubr.msk.bf16.mxu1 %vm3104_vm0, %v3103_v0 }
 0x349   : > { %2871 = vmatprep.subr.bf16.mxu0 %v3103_v0  ;;  %2886 = vmatpush3.bf16.msra.mxu1 %v3063_v37 }
 0x34a   : > { %2887 = vmatprep.subr.bf16.mxu1 %v3103_v0 }
 0x34c   : > { %2872 = vmatpush3.bf16.msra.mxu0 %v3058_v31  ;;  %v3092_v31 = vld [vmem:[%s3756_s11 + $0x90] sm:$0xff]  }
 0x34d   : > { %2873 = vmatprep.subr.bf16.mxu0 %v3103_v0  ;;  %2888 = vmatpush3.bf16.msra.mxu1 %v3064_v38 }
 0x34e   : > { %2889 = vmatprep.subr.bf16.mxu1 %v3103_v0 }
 0x350   : > { %2874 = vmatpush3.bf16.msra.mxu0 %v3059_v32  ;;  %v3093_v32 = vld [vmem:[%s3756_s11 + $0x88] sm:$0xff]  }
 0x351   : > { %2875 = vmatprep.subr.bf16.mxu0 %v3103_v0  ;;  %2890 = vmatpush3.bf16.msra.mxu1 %v3065_v39 }
 0x352   : > { %2891 = vmatprep.subr.bf16.mxu1 %v3103_v0 }
 0x354   : > { %2876 = vmatpush3.bf16.msra.mxu0 %v3060_v33  ;;  %v3094_v33 = vld [vmem:[%s3756_s11 + $0x80] sm:$0xff]  }
 0x355   : > { %2877 = vmatprep.subr.bf16.mxu0 %v3103_v0  ;;  %2892 = vmatpush3.bf16.msra.mxu1 %v3066_v40 }
 0x356   : > { %2893 = vmatprep.subr.bf16.mxu1 %v3103_v0 }
 0x358   : > { %2878 = vmatpush3.bf16.msra.mxu0 %v3061_v34 }
 0x359   : > { %2879 = vmatprep.subr.bf16.mxu0 %v3103_v0  ;;  %2894 = vmatpush3.bf16.msra.mxu1 %v3067_v41 }
 0x35a   : > { %2895 = vmatprep.subr.bf16.mxu1 %v3103_v0 }
 0x35c   : > { %2880 = vmatpush3.bf16.msra.mxu0 %v3062_v35 }
 0x35d   : > { %2905 = vmatprep.subr.bf16.mxu0 %v3103_v0  ;;  %2896 = vmatpush3.bf16.msra.mxu1 %v3068_v42 }
 0x35e   : > { %2897 = vmatprep.subr.bf16.mxu1 %v3103_v0 }
 0x35f   : > { %2882 = vmatmul.mubr.bf16.vlgmr.msra.gmra.mxu0 %v1594_v36 }
 0x360   : > { %2921 = vmatprep.mubr.msk.bf16.mxu0 %vm3104_vm0, %v3103_v0  ;;  %2906 = vmatpush3.bf16.msra.mxu0 %v3071_v45 }
 0x361   : > { %2898 = vmatpush3.bf16.msra.mxu1 %v3069_v43  ;;  %2907 = vmatprep.subr.bf16.mxu0 %v3103_v0 }
 0x362   : > { %2899 = vmatprep.subr.bf16.mxu1 %v3103_v0 }
 0x364   : > { %2908 = vmatpush3.bf16.msra.mxu0 %v3073_v46  ;;  %v2525_v46 = vld [vmem:[%s3757_s12] ss:$0 sm:$0xff] }
 0x365   : > { %2900 = vmatpush3.bf16.msra.mxu1 %v3070_v44  ;;  %2909 = vmatprep.subr.bf16.mxu0 %v3103_v0 }
 0x366   : > { %2925 = vmatprep.subr.bf16.mxu1 %v3103_v0 }
 0x368   : > { %2910 = vmatpush3.bf16.msra.mxu0 %v3075_v47 }
 0x369   : > { %2911 = vmatprep.subr.bf16.mxu0 %v3103_v0 }
 0x36c   : > { %2912 = vmatpush3.bf16.msra.mxu0 %v3077_v48 }
 0x36d   : > { %2913 = vmatprep.subr.bf16.mxu0 %v3103_v0 }
 0x370   : > { %2914 = vmatpush3.bf16.msra.mxu0 %v3079_v49 }
 0x371   : > { %2915 = vmatprep.subr.bf16.mxu0 %v3103_v0 }
 0x374   : > { %2916 = vmatpush3.bf16.msra.mxu0 %v3081_v9 }
 0x375   : > { %2917 = vmatprep.subr.bf16.mxu0 %v3103_v0 }
 0x378   : > { %2918 = vmatpush3.bf16.msra.mxu0 %v3083_v10 }
 0x379   : > { %2919 = vmatprep.subr.bf16.mxu0 %v3103_v0 }
 0x37c   : > { %2920 = vmatpush3.bf16.msra.mxu0 %v3085_v12 }
 0x37d   : > { %2945 = vmatprep.subr.bf16.mxu0 %v3103_v0 }
 0x3ff   : > { %v1499_v50 = vpop.f32.mrf.mxu0 }
 0x401   : > { %v2843_v51 = vpop.f32.mrf.mxu0 }
 0x403   : > { %v1502_v52 = vpop.f32.mrf.mxu0 }
 0x405   : > { %v2844_v53 = vpop.f32.mrf.mxu0 }
 0x407   : > { %v1587_v54 = vpop.f32.mrf.mxu1 }
 0x408   : > { %v1588_v58 = vadd.f32 %v1587_v54, %v1499_v50 }
 0x409   : > { %v2863_v55 = vpop.f32.mrf.mxu1 }
 0x40b   : > { %v1590_v56 = vpop.f32.mrf.mxu1 }
 0x40d   : > { %v2864_v57 = vpop.f32.mrf.mxu1 }
 0x41f   : > { %v1694_v59 = vpop.f32.mrf.mxu0 }
 0x420   : > { %v1700_v61 = vadd.f32 %v1694_v59, %v1588_v58 }
 0x421   : > { %v2883_v62 = vpop.f32.mrf.mxu0 }
 0x422   : > { %v1708_v63 = vadd.f32 %v2459_v60, %v1700_v61 }
 0x423   : > { %v1697_v1 = vpop.f32.mrf.mxu0 }
 0x424   : > { %v1709_v2 = vmax.f32 %v1708_v63, 0.0 }
 0x425   : > { %v2884_v3 = vpop.f32.mrf.mxu0 }
 0x426   : > { %v1710_v5 = vpack.c.bf16 %v1709_v2, %v1709_v2 }
 0x428   : > { %2902 = vmatmul.mubr.bf16.vlgmr.msra.gmra.mxu1 %v1710_v5 }
 0x429   : > { %2926 = vmatpush3.bf16.msra.mxu1 %v3072_v4  ;;  %2941 = vmatprep.mubr.msk.bf16.mxu1 %vm3104_vm0, %v3103_v0 }
 0x42a   : > { %2927 = vmatprep.subr.bf16.mxu1 %v3103_v0 }
 0x42d   : > { %2928 = vmatpush3.bf16.msra.mxu1 %v3074_v6 }
 0x42e   : > { %2929 = vmatprep.subr.bf16.mxu1 %v3103_v0 }
 0x431   : > { %2930 = vmatpush3.bf16.msra.mxu1 %v3076_v7 }
 0x432   : > { %2931 = vmatprep.subr.bf16.mxu1 %v3103_v0 }
 0x435   : > { %2932 = vmatpush3.bf16.msra.mxu1 %v3078_v8 }
 0x436   : > { %2933 = vmatprep.subr.bf16.mxu1 %v3103_v0 }
 0x439   : > { %2934 = vmatpush3.bf16.msra.mxu1 %v3080_v11 }
 0x43a   : > { %2935 = vmatprep.subr.bf16.mxu1 %v3103_v0 }
 0x43d   : > { %2936 = vmatpush3.bf16.msra.mxu1 %v3082_v13 }
 0x43e   : > { %2937 = vmatprep.subr.bf16.mxu1 %v3103_v0 }
 0x441   : > { %2938 = vmatpush3.bf16.msra.mxu1 %v3084_v14 }
 0x442   : > { %2939 = vmatprep.subr.bf16.mxu1 %v3103_v0 }
 0x445   : > { %2940 = vmatpush3.bf16.msra.mxu1 %v3086_v15 }
 0x4e8   : > { %v1816_v17 = vpop.f32.mrf.mxu1 }
 0x4e9   : > { %v1817_v18 = vadd.f32 %v2460_v16, %v1816_v17 }
 0x4ea   : > { %v2903_v19 = vpop.f32.mrf.mxu1 }
 0x4eb   : > { %v1822_v22 = vadd.f32 %v1817_v18, %v3554_v21 }
 0x4ec   : > { %v1819_v23 = vpop.f32.mrf.mxu1 }
 0x4ed   : > { %1825 = vst [vmem:[#allocation2 + $0x1] sm:$0xff] %v1822_v22  ;;  %v1845_v25 = vpack.c.bf16 %v1822_v22, %v1822_v22 }
 0x4ee   : > { %v2904_v26 = vpop.f32.mrf.mxu1 }
 0x4ef   : > { %2922 = vmatmul.mubr.bf16.vlgmr.msra.gmra.mxu0 %v1845_v25 }
 0x4f0   : > { %2946 = vmatpush3.bf16.msra.mxu0 %v3087_v24  ;;  %2961 = vmatprep.mubr.msk.bf16.mxu0 %vm3104_vm0, %v3103_v0 }
 0x4f1   : > { %2947 = vmatprep.subr.bf16.mxu0 %v3103_v0 }
 0x4f4   : > { %v1826_v21 = vld [vmem:[#allocation2] sm:$0xff]  ;;  %2948 = vmatpush3.bf16.msra.mxu0 %v3088_v27 }
 0x4f5   : > { %v1827_v28 = vpack.c.bf16 %v1826_v21, %v1826_v21  ;;  %2949 = vmatprep.subr.bf16.mxu0 %v3103_v0  ;;  %v2039_v34 = vld [vmem:[#allocation2 + $0x2] sm:$0xff] }
 0x4f6   : > { %v2040_v35 = vpack.c.bf16 %v2039_v34, %v2039_v34 }
 0x4f7   : > { %2942 = vmatmul.mubr.bf16.vlgmr.msra.gmra.mxu1 %v1827_v28 }
 0x4f8   : > { %2950 = vmatpush3.bf16.msra.mxu0 %v3089_v20 }
 0x4f9   : > { %2951 = vmatprep.subr.bf16.mxu0 %v3103_v0 }
 0x4fc   : > { %2952 = vmatpush3.bf16.msra.mxu0 %v3090_v29 }
 0x4fd   : > { %2953 = vmatprep.subr.bf16.mxu0 %v3103_v0 }
 0x500   : > { %2954 = vmatpush3.bf16.msra.mxu0 %v3091_v30 }
 0x501   : > { %2955 = vmatprep.subr.bf16.mxu0 %v3103_v0 }
 0x504   : > { %2956 = vmatpush3.bf16.msra.mxu0 %v3092_v31 }
 0x505   : > { %2957 = vmatprep.subr.bf16.mxu0 %v3103_v0 }
 0x508   : > { %2958 = vmatpush3.bf16.msra.mxu0 %v3093_v32 }
 0x509   : > { %2959 = vmatprep.subr.bf16.mxu0 %v3103_v0 }
 0x50c   : > { %2960 = vmatpush3.bf16.msra.mxu0 %v3094_v33 }
 0x50f   : > { %2962 = vmatmul.mubr.bf16.vlgmr.msra.gmra.mxu0 %v2040_v35 }
 0x5af   : > { %v1945_v36 = vpop.f32.mrf.mxu0 }
 0x5b1   : > { %v2923_v37 = vpop.f32.mrf.mxu0 }
 0x5b3   : > { %v1948_v38 = vpop.f32.mrf.mxu0 }
 0x5b5   : > { %v2924_v39 = vpop.f32.mrf.mxu0 }
 0x5b7   : > { %v2033_v40 = vpop.f32.mrf.mxu1 }
 0x5b8   : > { %v2034_v44 = vadd.f32 %v2033_v40, %v1945_v36 }
 0x5b9   : > { %v2943_v41 = vpop.f32.mrf.mxu1 }
 0x5bb   : > { %v2036_v42 = vpop.f32.mrf.mxu1 }
 0x5bd   : > { %v2944_v43 = vpop.f32.mrf.mxu1 }
 0x5cf   : > { %v2140_v45 = vpop.f32.mrf.mxu0 }
 0x5d0   : > { %v2146_v0 = vadd.f32 %v2140_v45, %v2034_v44 }
 0x5d1   : > { %v2963_v47 = vpop.f32.mrf.mxu0 }
 0x5d2   : > { %v2154_v48 = vadd.f32 %v2525_v46, %v2146_v0 }
 0x5d3   : > { %v2143_v49 = vpop.f32.mrf.mxu0 }
 0x5d4   : > { %2155 = vxpose.xlu1.b32.start.end [1/1] (short) (narrow) %v2154_v48, 32 }
 0x5d5   : > { %v2964_v50 = vpop.f32.mrf.mxu0 }
 0x650   : > { %v2171_v51 = vpop.trf.xlu1 }
 0x651   : > { %2188 = vst.msk [vmem:[%s440_s15] sm:$0xff] %vm2187_vm2, %v2171_v51 }
 0x654   : > { %v2172_v52 = vpop.trf.xlu1 }
 0x655   : > { %2189 = vst.msk [vmem:[%s440_s15 + $0x8] sm:$0xff] %vm2187_vm2, %v2172_v52 }
 0x658   : > { %v2173_v53 = vpop.trf.xlu1 }
 0x659   : > { %2190 = vst.msk [vmem:[%s440_s15 + $0x10] sm:$0xff] %vm2187_vm2, %v2173_v53 }
 0x65c   : > { %v2174_v54 = vpop.trf.xlu1 }
 0x65d   : > { %2191 = vst.msk [vmem:[%s440_s15 + $0x18] sm:$0xff] %vm2187_vm2, %v2174_v54 }
 0x65e PF: > { %s23_s25 = sadd.s32 1, %s3101_s25  }
 0x65f   : > { %p20_p4 = scmp.ge.s32.totalorder %s23_s25, 4  }
 0x661   :  { %22 = sbr.rel (!%p20_p4) target bundleno = 1 (0x1), region = 114 }

// kernel: forward.2
= control target key start
LH: loop header
LB: loop body
LE: loop exit
PB: predicated region body
PF: predicated region fallthrough
CT: control target
= control target key end

     0   :  { %s6711_s0 = inlined_call_operand.vmem [shape: f32[2,4,64], index: 0, kind: input, shape index: {}]   ;;  %s6712_s1 = inlined_call_operand.hbm [shape: bf16[4,128,128], index: 1, kind: input, shape index: {}]   ;;  %s6713_s2 = inlined_call_operand.vmem [shape: f32[1,128], index: 2, kind: input, shape index: {}]   ;;  %s6714_s3 = inlined_call_operand.hbm [shape: bf16[3,128,128], index: 3, kind: input, shape index: {}]   ;;  %s6715_s4 = inlined_call_operand.vmem [shape: f32[1,128], index: 4, kind: input, shape index: {}]   ;;  %s6716_s5 = inlined_call_operand.hbm [shape: bf16[1,128,128], index: 5, kind: input, shape index: {}]   ;;  %s6717_s6 = inlined_call_operand.vmem [shape: f32[1,128], index: 6, kind: input, shape index: {}]   ;;  %s6718_s7 = inlined_call_operand.hbm [shape: bf16[3,128,128], index: 7, kind: input, shape index: {}]   ;;  %s6719_s8 = inlined_call_operand.vmem [shape: f32[1,128], index: 8, kind: input, shape index: {}]   ;;  %s6720_s9 = inlined_call_operand.hbm [shape: bf16[1,128,128], index: 9, kind: input, shape index: {}]   ;;  %s6721_s10 = inlined_call_operand.vmem [shape: f32[1,128], index: 10, kind: input, shape index: {}]   ;;  %s6722_s11 = inlined_call_operand.hbm [shape: bf16[4,128,128], index: 11, kind: input, shape index: {}]   ;;  %s6723_s12 = inlined_call_operand.vmem [shape: f32[1,128], index: 12, kind: input, shape index: {}]   ;;  %s6724_s13 = inlined_call_operand.hbm [shape: bf16[3,128,128], index: 13, kind: input, shape index: {}]   ;;  %s6725_s14 = inlined_call_operand.vmem [shape: f32[1,128], index: 14, kind: input, shape index: {}]   ;;  %s6726_s15 = inlined_call_operand.hbm [shape: bf16[1,128,128], index: 15, kind: input, shape index: {}]   ;;  %s6727_s16 = inlined_call_operand.vmem [shape: f32[1,128], index: 16, kind: input, shape index: {}]   ;;  %s6728_s17 = inlined_call_operand.hbm [shape: bf16[3,128,128], index: 17, kind: input, shape index: {}]   ;;  %s6729_s18 = inlined_call_operand.vmem [shape: f32[1,128], index: 18, kind: input, shape index: {}]   ;;  %s6730_s19 = inlined_call_operand.hbm [shape: bf16[1,128,128], index: 19, kind: input, shape index: {}]   ;;  %s6731_s20 = inlined_call_operand.vmem [shape: f32[1,128], index: 20, kind: input, shape index: {}]   ;;  %s6732_s21 = inlined_call_operand.hbm [shape: bf16[3,128,128], index: 21, kind: input, shape index: {}]   ;;  %s6733_s22 = inlined_call_operand.vmem [shape: f32[1,128], index: 22, kind: input, shape index: {}]   ;;  %s6734_s23 = inlined_call_operand.vmem [shape: f32[2,32,16], index: 23, kind: output, shape index: {}]  }
   0x1   :  { %6736 = sst [smem:[#allocation27_spill]] %s6711_s0 }
   0x2   :  { %6737 = sst [smem:[#allocation28_spill]] %s6712_s1 }
   0x3   :  { %6738 = sst [smem:[#allocation29_spill]] %s6713_s2 }
   0x4   :  { %6739 = sst [smem:[#allocation30_spill]] %s6714_s3 }
   0x5   :  { %6740 = sst [smem:[#allocation31_spill]] %s6715_s4 }
   0x6   :  { %6741 = sst [smem:[#allocation32_spill]] %s6716_s5 }
   0x7   :  { %6742 = sst [smem:[#allocation33_spill]] %s6717_s6 }
   0x8   :  { %6743 = sst [smem:[#allocation34_spill]] %s6718_s7 }
   0x9   :  { %6744 = sst [smem:[#allocation35_spill]] %s6722_s11 }
   0xa   :  { %28 = vsyncpa [#allocation4], 0 }
   0xb   :  { %29 = vsyncpa [#allocation6], 0 }
   0xc   :  { %30 = vsyncpa [#allocation9], 0 }
   0xd   :  { %31 = vsyncpa [#allocation12], 0 }
   0xe   :  { %32 = vsyncpa [#allocation15], 0 }
   0xf   :  { %33 = vsyncpa [#allocation18], 0  ;;  %s6239_s4 = smov 0  }
  0x10 LB: > { %6745 = sst [smem:[#allocation26_spill]] %s6102_s4  ;;  %s6245_s30 = sadd.s32 4294967295, %s6102_s4   ;;  %s6102_s4 = sphi %s6239_s4, %s39_s4  }
  0x11   : > { %p4394_p0 = scmp.ge.s32.totalorder %s6102_s4, 1  ;;  %p558_p1 = scmp.lt.s32.totalorder %s6102_s4, 3 }
  0x12   : > { %p5525_p2 = scmp.eq.s32.totalorder %s6245_s30, 0  ;;  %s6104_s25 = smov [#allocation5]  }
  0x13   : > { %p6250_p3 = pnand %p4394_p0, %p558_p1  ;;  %s586_s5 = sshll.u32 %s6104_s25, 4  ;;  %s587_s5 = int_to_ptr.vmem [resolvable:$true] %s586_s5 }
  0x14   : > { %s6105_s1 = smov [#allocation8]   ;;  %s6106_s6 = smov [#allocation11]  }
  0x15   : > { %p5491_p4 = pneg %p6250_p3  ;;  %s618_s26 = sshll.u32 %s6105_s1, 4  ;;  %s6256_s26 = int_to_ptr.vmem [resolvable:$true] %s618_s26 }
  0x16   : > { %s650_s27 = sshll.u32 %s6106_s6, 4  ;;  %s6107_s7 = smov [#allocation14]   ;;  %s6264_s27 = int_to_ptr.vmem [resolvable:$true] %s650_s27 }
  0x17   : > { %p6260_p5 = pnand %p5525_p2, %p5491_p4  ;;  %s6266_s28 = sshll.u32 %s6107_s7, 4  ;;  %s683_s28 = int_to_ptr.vmem [resolvable:$true] %s6266_s28 }
  0x18   : > { %s5797_s3 = scalar_lea.vmem %s587_s5, 3072  ;;  %p5805_p10 = scmp.lt.s32.totalorder %s587_s5, %s587_s5 }
  0x19   : > { %p6270_p6 = pneg %p6260_p5  ;;  %p5798_p7 = scmp.ne.s32.totalorder %s587_s5, %s5797_s3 }
  0x1a   : > { %p5806_p11 = scmp.lt.s32.totalorder %s5797_s3, %s5797_s3 }
  0x1b   : > { %p5800_p8 = pnand %p5798_p7, %p6270_p6 }
  0x1c   : > { %p5807_p12 = por %p5806_p11, %p5805_p10 }
  0x1d   : > { %p5801_p9 = pneg %p5800_p8 }
  0x1f   : > { %p5808_p13 = pnand %p5807_p12, %p5801_p9 }
  0x21   : > { %5811 = shalt.err (!%p5808_p13)
}
  0x22   : > { %s6108_s0 = smov 64   ;;  %s6109_s25 = smov 4  }
  0x23   : > { %s6749_s7 = sld [smem:[#allocation30_spill]]  ;;  %s5823_s4 = scalar_lea.vmem %s6256_s26, 3072 }
  0x24   : > { %p5824_p0 = scmp.ne.s32.totalorder %s6256_s26, %s5823_s4  ;;  %p5831_p7 = scmp.lt.s32.totalorder %s6256_s26, %s6256_s26 }
  0x25   : > { %p5832_p8 = scmp.lt.s32.totalorder %s5823_s4, %s5823_s4 }
  0x26   : > { %p5826_p1 = pnand %p5824_p0, %p6270_p6 }
  0x27   : > { %p5833_p9 = por %p5832_p8, %p5831_p7 }
  0x28   : > { %p5827_p4 = pneg %p5826_p1 }
  0x29   : > { %5497 = dma.hbm_to_vmem [thread:$0]  (!%p6260_p5), %s6749_s7, 3072, %s587_s5, [#allocation6], %s6108_s0, %s6108_s0, %s6109_s25  }
  0x2a   : > { %p5834_p10 = pnand %p5833_p9, %p5827_p4 }
  0x2c   : > { %5837 = shalt.err (!%p5834_p10)
}
  0x2d   : > { %s6750_s5 = sld [smem:[#allocation34_spill]]  ;;  %s5849_s6 = scalar_lea.vmem %s6264_s27, 4096 }
  0x2e   : > { %p5850_p11 = scmp.ne.s32.totalorder %s6264_s27, %s5849_s6  ;;  %p5857_p0 = scmp.lt.s32.totalorder %s6264_s27, %s6264_s27 }
  0x2f   : > { %p5858_p1 = scmp.lt.s32.totalorder %s5849_s6, %s5849_s6 }
  0x30   : > { %p5852_p12 = pnand %p5850_p11, %p6270_p6 }
  0x31   : > { %p5859_p4 = por %p5858_p1, %p5857_p0 }
  0x32   : > { %p5853_p13 = pneg %p5852_p12 }
  0x33   : > { %5503 = dma.hbm_to_vmem [thread:$0]  (!%p6260_p5), %s6750_s5, 3072, %s6256_s26, [#allocation9], %s6108_s0, %s6108_s0, %s6109_s25  }
  0x34   : > { %p5860_p7 = pnand %p5859_p4, %p5853_p13 }
  0x36   : > { %5863 = shalt.err (!%p5860_p7)
}
  0x37   : > { %s6751_s11 = sld [smem:[#allocation35_spill]]  ;;  %s5875_s26 = scalar_lea.vmem %s683_s28, 1024 }
  0x38   : > { %p5876_p8 = scmp.ne.s32.totalorder %s683_s28, %s5875_s26  ;;  %p5883_p11 = scmp.lt.s32.totalorder %s683_s28, %s683_s28 }
  0x39   : > { %p5884_p12 = scmp.lt.s32.totalorder %s5875_s26, %s5875_s26 }
  0x3a   : > { %p5878_p9 = pnand %p5876_p8, %p6270_p6 }
  0x3b   : > { %p5885_p13 = por %p5884_p12, %p5883_p11 }
  0x3c   : > { %p5879_p10 = pneg %p5878_p9 }
  0x3d   : > { %5509 = dma.hbm_to_vmem [thread:$0]  (!%p6260_p5), %s6751_s11, 4096, %s6264_s27, [#allocation12], %s6108_s0, %s6108_s0, %s6109_s25  }
  0x3e   : > { %p5886_p0 = pnand %p5885_p13, %p5879_p10 }
  0x40   : > { %5889 = shalt.err (!%p5886_p0)
}
  0x41   : > { %5515 = dma.hbm_to_vmem [thread:$0]  (!%p6260_p5), %s6726_s15, 1024, %s683_s28, [#allocation15], %s6108_s0, %s6108_s0, %s6109_s25  }
  0x42   : > { %s6110_s27 = smov [#allocation17]   ;;  %s6111_s6 = smov [#allocation3]  }
  0x43   : > { %s714_s5 = sshll.u32 %s6110_s27, 4  ;;  %s570_s4 = sshll.u32 %s6111_s6, 4  ;;  %s715_s5 = int_to_ptr.vmem [resolvable:$true] %s714_s5  ;;  %s571_s4 = int_to_ptr.vmem [resolvable:$true] %s570_s4 }
  0x44   : > { %s5901_s7 = scalar_lea.vmem %s715_s5, 1024  ;;  %p5909_p8 = scmp.lt.s32.totalorder %s715_s5, %s715_s5 }
  0x45   : > { %p5902_p1 = scmp.ne.s32.totalorder %s715_s5, %s5901_s7  ;;  %p5910_p9 = scmp.lt.s32.totalorder %s5901_s7, %s5901_s7 }
  0x47   : > { %p5904_p4 = pnand %p5902_p1, %p6270_p6  ;;  %p5911_p10 = por %p5910_p9, %p5909_p8 }
  0x49   : > { %p5905_p7 = pneg %p5904_p4 }
  0x4b   : > { %p5912_p11 = pnand %p5911_p10, %p5905_p7 }
  0x4d   : > { %5915 = shalt.err (!%p5912_p11)
}
  0x4e   : > { %5521 = dma.hbm_to_vmem [thread:$0]  (!%p6260_p5), %s6730_s19, 1024, %s715_s5, [#allocation18], %s6108_s0, %s6108_s0, %s6109_s25  }
  0x4f   : > { %s5927_s3 = scalar_lea.vmem %s571_s4, 4096  ;;  %p5935_p1 = scmp.lt.s32.totalorder %s571_s4, %s571_s4 }
  0x50   : > { %p5928_p12 = scmp.ne.s32.totalorder %s571_s4, %s5927_s3  ;;  %p5936_p4 = scmp.lt.s32.totalorder %s5927_s3, %s5927_s3 }
  0x52   : > { %p5930_p13 = pnand %p5928_p12, %p6270_p6  ;;  %p5937_p7 = por %p5936_p4, %p5935_p1 }
  0x54   : > { %p5931_p0 = pneg %p5930_p13 }
  0x56   : > { %p5938_p8 = pnand %p5937_p7, %p5931_p0 }
  0x58   : > { %5941 = shalt.err (!%p5938_p8)
}
  0x59   : > { %s6752_s6 = sld [smem:[#allocation28_spill]]  ;;  %s6112_s5 = smov [#allocation7]  }
  0x5a   : > { %s602_s7 = sshll.u32 %s6112_s5, 4  ;;  %s6113_s28 = smov [#allocation10]   ;;  %s603_s7 = int_to_ptr.vmem [resolvable:$true] %s602_s7 }
  0x5b   : > { %s634_s26 = sshll.u32 %s6113_s28, 4  ;;  %s5953_s11 = scalar_lea.vmem %s603_s7, 1024  ;;  %s635_s26 = int_to_ptr.vmem [resolvable:$true] %s634_s26 }
  0x5c   : > { %p5954_p9 = scmp.ne.s32.totalorder %s603_s7, %s5953_s11  ;;  %p5961_p12 = scmp.lt.s32.totalorder %s603_s7, %s603_s7 }
  0x5d   : > { %p5962_p13 = scmp.lt.s32.totalorder %s5953_s11, %s5953_s11 }
  0x5e   : > { %p5956_p10 = pnand %p5954_p9, %p6270_p6 }
  0x5f   : > { %5494 = dma.hbm_to_vmem [thread:$0]  (!%p6260_p5), %s6752_s6, 4096, %s571_s4, [#allocation4], %s6108_s0, %s6108_s0, %s6109_s25  }
  0x60   : > { %p5957_p11 = pneg %p5956_p10  ;;  %p5963_p0 = por %p5962_p13, %p5961_p12 }
  0x62   : > { %p5964_p1 = pnand %p5963_p0, %p5957_p11 }
  0x64   : > { %5967 = shalt.err (!%p5964_p1)
}
  0x65   : > { %s6753_s1 = sld [smem:[#allocation32_spill]]  ;;  %s5979_s27 = scalar_lea.vmem %s635_s26, 1024 }
  0x66   : > { %p5980_p4 = scmp.ne.s32.totalorder %s635_s26, %s5979_s27  ;;  %p5987_p9 = scmp.lt.s32.totalorder %s635_s26, %s635_s26 }
  0x67   : > { %p5988_p10 = scmp.lt.s32.totalorder %s5979_s27, %s5979_s27 }
  0x68   : > { %p5982_p7 = pnand %p5980_p4, %p6270_p6 }
  0x69   : > { %p5989_p11 = por %p5988_p10, %p5987_p9 }
  0x6a   : > { %p5983_p8 = pneg %p5982_p7 }
  0x6b   : > { %5500 = dma.hbm_to_vmem [thread:$0]  (!%p6260_p5), %s6753_s1, 1024, %s603_s7, [#allocation6], %s6108_s0, %s6108_s0, %s6109_s25  }
  0x6c   : > { %p5990_p12 = pnand %p5989_p11, %p5983_p8 }
  0x6e   : > { %5993 = shalt.err (!%p5990_p12)
}
  0x6f   : > { %5506 = dma.hbm_to_vmem [thread:$0]  (!%p6260_p5), %s6720_s9, 1024, %s635_s26, [#allocation9], %s6108_s0, %s6108_s0, %s6109_s25  }
  0x70   : > { %s6114_s5 = smov [#allocation13]   ;;  %s6115_s28 = smov [#allocation16]  }
  0x71   : > { %s666_s7 = sshll.u32 %s6114_s5, 4  ;;  %s698_s4 = sshll.u32 %s6115_s28, 4  ;;  %s667_s7 = int_to_ptr.vmem [resolvable:$true] %s666_s7  ;;  %s699_s4 = int_to_ptr.vmem [resolvable:$true] %s698_s4 }
  0x72   : > { %s6005_s3 = scalar_lea.vmem %s667_s7, 3072  ;;  %p6013_p4 = scmp.lt.s32.totalorder %s667_s7, %s667_s7 }
  0x73   : > { %p6006_p13 = scmp.ne.s32.totalorder %s667_s7, %s6005_s3  ;;  %p6014_p7 = scmp.lt.s32.totalorder %s6005_s3, %s6005_s3 }
  0x75   : > { %p6008_p0 = pnand %p6006_p13, %p6270_p6  ;;  %p6015_p8 = por %p6014_p7, %p6013_p4 }
  0x77   : > { %p6009_p1 = pneg %p6008_p0 }
  0x79   : > { %p6016_p9 = pnand %p6015_p8, %p6009_p1 }
  0x7b   : > { %6019 = shalt.err (!%p6016_p9)
}
  0x7c   : > { %5512 = dma.hbm_to_vmem [thread:$0]  (!%p6260_p5), %s6724_s13, 3072, %s667_s7, [#allocation12], %s6108_s0, %s6108_s0, %s6109_s25  }
  0x7d   : > { %s6031_s27 = scalar_lea.vmem %s699_s4, 3072  ;;  %p6039_p13 = scmp.lt.s32.totalorder %s699_s4, %s699_s4 }
  0x7e   : > { %p6032_p10 = scmp.ne.s32.totalorder %s699_s4, %s6031_s27  ;;  %p6040_p0 = scmp.lt.s32.totalorder %s6031_s27, %s6031_s27 }
  0x80   : > { %p6034_p11 = pnand %p6032_p10, %p6270_p6  ;;  %p6041_p1 = por %p6040_p0, %p6039_p13 }
  0x82   : > { %p6035_p12 = pneg %p6034_p11 }
  0x84   : > { %p6042_p4 = pnand %p6041_p1, %p6035_p12 }
  0x86   : > { %6045 = shalt.err (!%p6042_p4)
}
  0x87   : > { %5518 = dma.hbm_to_vmem [thread:$0]  (!%p6260_p5), %s6728_s17, 3072, %s699_s4, [#allocation15], %s6108_s0, %s6108_s0, %s6109_s25  }
  0x88   : > { %s6116_s5 = smov [#allocation19]  }
  0x89   : > { %s730_s7 = sshll.u32 %s6116_s5, 4  ;;  %s731_s7 = int_to_ptr.vmem [resolvable:$true] %s730_s7 }
  0x8a   : > { %s6057_s28 = scalar_lea.vmem %s731_s7, 3072  ;;  %p6065_p10 = scmp.lt.s32.totalorder %s731_s7, %s731_s7 }
  0x8b   : > { %p6058_p7 = scmp.ne.s32.totalorder %s731_s7, %s6057_s28  ;;  %p6066_p11 = scmp.lt.s32.totalorder %s6057_s28, %s6057_s28 }
  0x8d   : > { %p6060_p8 = pnand %p6058_p7, %p6270_p6  ;;  %p6067_p12 = por %p6066_p11, %p6065_p10 }
  0x8f   : > { %p6061_p9 = pneg %p6060_p8 }
  0x91   : > { %p6068_p13 = pnand %p6067_p12, %p6061_p9 }
  0x93   : > { %6071 = shalt.err (!%p6068_p13)
}
  0x94   : > { %5524 = dma.hbm_to_vmem [thread:$0]  (!%p6260_p5), %s6732_s21, 3072, %s731_s7, [#allocation18], %s6108_s0, %s6108_s0, %s6109_s25  }
  0x95   : > { %756 = sbr.rel (%p6250_p3) target bundleno = 2975 (0xb9f), region = 112 }
  0x9a   : > { %6077 = dma.done.wait (%p5525_p2), [#allocation4], 4096  }
  0x9b   : > { %6079 = vsyncadd (%p5525_p2), [#allocation4], 4294963200 }
  0x9c   : > { %6081 = dma.done.wait (%p5525_p2), [#allocation6], 4096  }
  0x9d   : > { %6083 = vsyncadd (%p5525_p2), [#allocation6], 4294963200 }
  0x9e   : > { %6085 = dma.done.wait (%p5525_p2), [#allocation9], 4096  }
  0x9f   : > { %6087 = vsyncadd (%p5525_p2), [#allocation9], 4294963200 }
  0xa0   : > { %6089 = dma.done.wait (%p5525_p2), [#allocation12], 7168  }
  0xa1   : > { %6091 = vsyncadd (%p5525_p2), [#allocation12], 4294960128 }
  0xa2   : > { %6093 = dma.done.wait (%p5525_p2), [#allocation15], 4096  }
  0xa3   : > { %6095 = vsyncadd (%p5525_p2), [#allocation15], 4294963200 }
  0xa4   : > { %6097 = dma.done.wait (%p5525_p2), [#allocation18], 4096  }
  0xa5   : > { %6099 = vsyncadd (%p5525_p2), [#allocation18], 4294963200  ;;  %p859_p3 = scmp.lt.s32.totalorder %s6245_s30, 1  ;;  %v6117_v0 = vmov 0.0   ;;  %s6754_s0 = sld [smem:[#allocation27_spill]]  ;;  %v5570_v2 = vld [vmem:[#allocation3 + $0x78] sm:$0xff]  }
  0xa6   : > { %869 = vst [vmem:[#allocation2] sm:$0xff] %v6117_v0  ;;  %870 = vst [vmem:[#allocation2 + $0x8] sm:$0xff] %v6117_v0  ;;  %v5571_v3 = vld [vmem:[#allocation3 + $0x38] sm:$0xff]   ;;  %4907 = vmatprep.subr.bf16.mxu0 %v5570_v2  ;;  %v5572_v4 = vld [vmem:[#allocation3 + $0x70] sm:$0xff]   ;;  %vm910_vm0 = vcmask 31744   ;;  %s6755_s27 = sld [smem:[#allocation29_spill]] }
  0xa7   : > { %871 = vst [vmem:[#allocation2 + $0x10] sm:$0xff] %v6117_v0  ;;  %872 = vst [vmem:[#allocation2 + $0x18] sm:$0xff] %v6117_v0  ;;  %s6760_s30 = smov (!%p859_p3, %s6245_s30), 1  ;;  %4927 = vmatprep.subr.bf16.mxu1 %v5571_v3  ;;  %4908 = vmatpush3.bf16.msra.mxu0 %v5570_v2  ;;  %v5573_v5 = vld [vmem:[#allocation3 + $0x30] sm:$0xff]   ;;  %v5574_v6 = vld [vmem:[#allocation3 + $0x68] sm:$0xff]   ;;  %s6756_s5 = sld [smem:[#allocation31_spill]] }
  0xa8   : > { %873 = vst [vmem:[#allocation2 + $0x20] sm:$0xff] %v6117_v0  ;;  %874 = vst [vmem:[#allocation2 + $0x28] sm:$0xff] %v6117_v0  ;;  %s4419_s24 = sshll.u32 %s6760_s30, 2  ;;  %4928 = vmatpush3.bf16.msra.mxu1 %v5571_v3  ;;  %4909 = vmatprep.subr.bf16.mxu0 %v5572_v4  ;;  %v5575_v7 = vld [vmem:[#allocation3 + $0x28] sm:$0xff]   ;;  %v5576_v8 = vld [vmem:[#allocation3 + $0x60] sm:$0xff]   ;;  %s6757_s3 = sld [smem:[#allocation33_spill]] }
  0xa9   : > { %875 = vst [vmem:[#allocation2 + $0x30] sm:$0xff] %v6117_v0  ;;  %876 = vst [vmem:[#allocation2 + $0x38] sm:$0xff] %v6117_v0  ;;  %4929 = vmatprep.subr.bf16.mxu1 %v5573_v5  ;;  %v5577_v9 = vld [vmem:[#allocation3 + $0x20] sm:$0xff]   ;;  %v5578_v10 = vld [vmem:[#allocation3 + $0x58] sm:$0xff]   ;;  %vm6118_vm1 = vmmov 0   ;;  %vm4225_vm2 = vcmask 130048  }
  0xaa   : > { %928 = vst [vmem:[#allocation2 + $0x41] sm:$0x1] %v6117_v0  ;;  %v5579_v11 = vld [vmem:[#allocation3 + $0x18] sm:$0xff]   ;;  %v5580_v12 = vld [vmem:[#allocation3 + $0x50] sm:$0xff]   ;;  %v5582_v14 = vld [vmem:[#allocation3 + $0x48] sm:$0xff]  }
  0xab   : > { %s862_s25 = scalar_lea.vmem %s6754_s0, %s4419_s24  ;;  %4910 = vmatpush3.bf16.msra.mxu0 %v5572_v4  ;;  %v5581_v13 = vld [vmem:[#allocation3 + $0x10] sm:$0xff]   ;;  %v5583_v15 = vld [vmem:[#allocation3 + $0x8] sm:$0xff]   ;;  %v5584_v16 = vld [vmem:[#allocation3 + $0x40] sm:$0xff]   ;;  %s4651_s24 = sshll.u32 %s6760_s30, 5 }
  0xac   : > { %v877_v1 = vld [vmem:[%s862_s25] sm:$0xf]  ;;  %4930 = vmatpush3.bf16.msra.mxu1 %v5573_v5  ;;  %4911 = vmatprep.subr.bf16.mxu0 %v5574_v6  ;;  %v5585_v17 = vld [vmem:[#allocation3] sm:$0xff]   ;;  %v5588_v50 = vld [vmem:[#allocation3 + $0xb0] sm:$0xff]   ;;  %s867_s0 = scalar_lea.vmem %s6734_s23, %s4651_s24 }
  0xad   : > { %878 = vxpose.xlu0.b32.start.end [1/1] (short) (narrow) %v877_v1, 64  ;;  %4931 = vmatprep.subr.bf16.mxu1 %v5575_v7  ;;  %v6438_v18 = vld [vmem:[#allocation3 + $0xb8] sm:$0xff]   ;;  %v5589_v55 = vld [vmem:[#allocation3 + $0xf0] sm:$0xff]   ;;  %v5590_v58 = vld [vmem:[#allocation3 + $0xa8] sm:$0xff]  }
  0xae   : > { %v6440_v19 = vld [vmem:[#allocation3 + $0xf8] sm:$0xff]   ;;  %v5591_v59 = vld [vmem:[#allocation3 + $0xe8] sm:$0xff]   ;;  %v5592_v60 = vld [vmem:[#allocation3 + $0xa0] sm:$0xff]  }
  0xaf   : > { %4912 = vmatpush3.bf16.msra.mxu0 %v5574_v6  ;;  %v5593_v61 = vld [vmem:[#allocation3 + $0xe0] sm:$0xff]   ;;  %v5594_v62 = vld [vmem:[#allocation3 + $0x98] sm:$0xff]   ;;  %v5596_v1 = vld [vmem:[#allocation3 + $0x90] sm:$0xff]  }
  0xb0   : > { %4932 = vmatpush3.bf16.msra.mxu1 %v5575_v7  ;;  %4913 = vmatprep.subr.bf16.mxu0 %v5576_v8  ;;  %v5595_v63 = vld [vmem:[#allocation3 + $0xd8] sm:$0xff]   ;;  %v5597_v2 = vld [vmem:[#allocation3 + $0xd0] sm:$0xff]   ;;  %v5598_v3 = vld [vmem:[#allocation3 + $0x88] sm:$0xff]  }
  0xb1   : > { %4933 = vmatprep.subr.bf16.mxu1 %v5577_v9  ;;  %v5599_v4 = vld [vmem:[#allocation3 + $0xc8] sm:$0xff]   ;;  %v5600_v5 = vld [vmem:[#allocation3 + $0x80] sm:$0xff]  }
  0xb2   : > { %v5601_v6 = vld [vmem:[#allocation3 + $0xc0] sm:$0xff]  }
  0xb3   : > { %4914 = vmatpush3.bf16.msra.mxu0 %v5576_v8 }
  0xb4   : > { %4934 = vmatpush3.bf16.msra.mxu1 %v5577_v9  ;;  %4915 = vmatprep.subr.bf16.mxu0 %v5578_v10 }
  0xb5   : > { %4935 = vmatprep.subr.bf16.mxu1 %v5579_v11 }
  0xb7   : > { %4916 = vmatpush3.bf16.msra.mxu0 %v5578_v10 }
  0xb8   : > { %4936 = vmatpush3.bf16.msra.mxu1 %v5579_v11  ;;  %4917 = vmatprep.subr.bf16.mxu0 %v5580_v12  ;;  %v5602_v11 = vld [vmem:[#allocation5 + $0x78] sm:$0xff]  }
  0xb9   : > { %4937 = vmatprep.subr.bf16.mxu1 %v5581_v13 }
  0xbb   : > { %4918 = vmatpush3.bf16.msra.mxu0 %v5580_v12  ;;  %v5603_v12 = vld [vmem:[#allocation5 + $0x38] sm:$0xff]  }
  0xbc   : > { %4938 = vmatpush3.bf16.msra.mxu1 %v5581_v13  ;;  %4919 = vmatprep.subr.bf16.mxu0 %v5582_v14  ;;  %v5604_v13 = vld [vmem:[#allocation5 + $0x70] sm:$0xff]  }
  0xbd   : > { %4939 = vmatprep.subr.bf16.mxu1 %v5583_v15 }
  0xbf   : > { %4920 = vmatpush3.bf16.msra.mxu0 %v5582_v14  ;;  %v5605_v14 = vld [vmem:[#allocation5 + $0x30] sm:$0xff]  }
  0xc0   : > { %4940 = vmatpush3.bf16.msra.mxu1 %v5583_v15  ;;  %4921 = vmatprep.subr.bf16.mxu0 %v5584_v16  ;;  %v5606_v15 = vld [vmem:[#allocation5 + $0x68] sm:$0xff]  }
  0xc1   : > { %4941 = vmatprep.subr.bf16.mxu1 %v5585_v17 }
  0xc3   : > { %4922 = vmatpush3.bf16.msra.mxu0 %v5584_v16  ;;  %v5608_v16 = vld [vmem:[#allocation5 + $0x60] sm:$0xff]  }
  0xc4   : > { %4942 = vmatpush3.bf16.msra.mxu1 %v5585_v17  ;;  %4947 = vmatprep.subr.bf16.mxu0 %v6438_v18  ;;  %v5610_v17 = vld [vmem:[#allocation5 + $0x58] sm:$0xff]  }
  0xc5   : > { %4967 = vmatprep.subr.bf16.mxu1 %v6440_v19 }
 0x129   : > { %v894_v20 = vpop.trf.xlu0 }
 0x12a   : > { %911 = vst.msk [vmem:[#allocation2] sm:$0xff] %vm910_vm0, %v894_v20  ;;  %v5609_v20 = vld [vmem:[#allocation5 + $0x20] sm:$0xff]  }
 0x12d   : > { %v895_v21 = vpop.trf.xlu0 }
 0x12e   : > { %912 = vst.msk [vmem:[#allocation2 + $0x8] sm:$0xff] %vm910_vm0, %v895_v21  ;;  %v5614_v21 = vld [vmem:[#allocation5 + $0x48] sm:$0xff]  }
 0x131   : > { %v919_v22 = vld [vmem:[#allocation2] sm:$0xff]  ;;  %v896_v23 = vpop.trf.xlu0 }
 0x132   : > { %927 = vst [vmem:[#allocation2] sm:$0x1] %v6117_v0  ;;  %913 = vst.msk [vmem:[#allocation2 + $0x10] sm:$0xff] %vm910_vm0, %v896_v23  ;;  %v5616_v23 = vld [vmem:[#allocation5 + $0x40] sm:$0xff]  }
 0x135   : > { %v920_v24 = vld [vmem:[#allocation2 + $0x8] sm:$0xff]  ;;  %v897_v25 = vpop.trf.xlu0 }
 0x136   : > { %929 = vst [vmem:[#allocation2 + $0x1] sm:$0xff] %v919_v22  ;;  %914 = vst.msk [vmem:[#allocation2 + $0x18] sm:$0xff] %vm910_vm0, %v897_v25  ;;  %v5611_v22 = vld [vmem:[#allocation5 + $0x18] sm:$0xff]   ;;  %v5615_v25 = vld [vmem:[#allocation5 + $0x8] sm:$0xff]  }
 0x139   : > { %v921_v26 = vld [vmem:[#allocation2 + $0x10] sm:$0xff]  ;;  %v898_v27 = vpop.trf.xlu0 }
 0x13a   : > { %930 = vst [vmem:[#allocation2 + $0x9] sm:$0xff] %v920_v24  ;;  %915 = vst.msk [vmem:[#allocation2 + $0x20] sm:$0xff] %vm910_vm0, %v898_v27  ;;  %v5613_v24 = vld [vmem:[#allocation5 + $0x10] sm:$0xff]   ;;  %v5617_v27 = vld [vmem:[#allocation5] sm:$0xff]  }
 0x13d   : > { %v922_v28 = vld [vmem:[#allocation2 + $0x18] sm:$0xff]  ;;  %v899_v29 = vpop.trf.xlu0 }
 0x13e   : > { %931 = vst [vmem:[#allocation2 + $0x11] sm:$0xff] %v921_v26  ;;  %916 = vst.msk [vmem:[#allocation2 + $0x28] sm:$0xff] %vm910_vm0, %v899_v29  ;;  %v5618_v26 = vld [vmem:[#allocation5 + $0xb8] sm:$0xff]  }
 0x141   : > { %v937_v30 = vld [vmem:[#allocation2] ss:$2 sm:$0xff]  ;;  %v900_v31 = vpop.trf.xlu0  ;;  %v963_v36 = vld [vmem:[#allocation2 + $0x1] ss:$2 sm:$0xff] }
 0x142   : > { %1454 = vst [vmem:[#allocation2] sm:$0x1] %v6117_v0  ;;  %v923_v32 = vld [vmem:[#allocation2 + $0x20] sm:$0xff]  ;;  %917 = vst.msk [vmem:[#allocation2 + $0x30] sm:$0xff] %vm910_vm0, %v900_v31 }
 0x143   : > { %932 = vst [vmem:[#allocation2 + $0x19] sm:$0xff] %v922_v28  ;;  %v1184_v53 = vld [vmem:[#allocation2 + $0x2] ss:$2 sm:$0xff] }
 0x145   : > { %v924_v33 = vld [vmem:[#allocation2 + $0x28] sm:$0xff]  ;;  %v901_v34 = vpop.trf.xlu0 }
 0x146   : > { %933 = vst [vmem:[#allocation2 + $0x21] sm:$0xff] %v923_v32  ;;  %918 = vst.msk [vmem:[#allocation2 + $0x38] sm:$0xff] %vm910_vm0, %v901_v34  ;;  %v1312_v54 = vld [vmem:[#allocation2 + $0x3] ss:$2 sm:$0xff] }
 0x149   : > { %v925_v35 = vld [vmem:[#allocation2 + $0x30] sm:$0xff] }
 0x14a   : > { %v939_v37 = vld [vmem:[#allocation2 + $0x10] ss:$2 sm:$0xff]  ;;  %934 = vst [vmem:[#allocation2 + $0x29] sm:$0xff] %v924_v33  ;;  %v965_v38 = vld [vmem:[#allocation2 + $0x11] ss:$2 sm:$0xff] }
 0x14b   : > { %v970_v39 = vpack.c.bf16 %v965_v38, %v963_v36  ;;  %v944_v40 = vpack.c.bf16 %v939_v37, %v937_v30  ;;  %v1186_v44 = vld [vmem:[#allocation2 + $0x12] ss:$2 sm:$0xff] }
 0x14c   : > { %v1191_v56 = vpack.c.bf16 %v1186_v44, %v1184_v53 }
 0x14d   : > { %v926_v41 = vld [vmem:[#allocation2 + $0x38] sm:$0xff]  ;;  %4923 = vmatprep.mubr.bf16.mxu0 %v970_v39  ;;  %4943 = vmatprep.mubr.bf16.mxu1 %v944_v40 }
 0x14e   : > { %935 = vst [vmem:[#allocation2 + $0x31] sm:$0xff] %v925_v35  ;;  %936 = vst [vmem:[#allocation2 + $0x39] sm:$0xff] %v926_v41  ;;  %v1314_v42 = vld [vmem:[#allocation2 + $0x13] ss:$2 sm:$0xff]  ;;  %v4454_v41 = vld [vmem:[%s6755_s27] ss:$0 sm:$0xff] }
 0x14f   : > { %v1319_v57 = vpack.c.bf16 %v1314_v42, %v1312_v54 }
 0x151   : > { %v967_v43 = vld [vmem:[#allocation2 + $0x21] ss:$2 sm:$0xff]  ;;  %v941_v46 = vld [vmem:[#allocation2 + $0x20] ss:$2 sm:$0xff] }
 0x152   : > { %1455 = vst [vmem:[#allocation2 + $0x21] sm:$0x1] %v6117_v0  ;;  %v1188_v51 = vld [vmem:[#allocation2 + $0x22] ss:$2 sm:$0xff] }
 0x155   : > { %v969_v45 = vld [vmem:[#allocation2 + $0x31] ss:$2 sm:$0xff]  ;;  %v943_v47 = vld [vmem:[#allocation2 + $0x30] ss:$2 sm:$0xff] }
 0x156   : > { %v971_v48 = vpack.c.bf16 %v969_v45, %v967_v43  ;;  %v945_v49 = vpack.c.bf16 %v943_v47, %v941_v46  ;;  %v1316_v52 = vld [vmem:[#allocation2 + $0x23] ss:$2 sm:$0xff]  ;;  %v1190_v7 = vld [vmem:[#allocation2 + $0x32] ss:$2 sm:$0xff]  ;;  %v1318_v8 = vld [vmem:[#allocation2 + $0x33] ss:$2 sm:$0xff] }
 0x157   : > { %1969 = vst [vmem:[#allocation2 + $0x22] sm:$0x3] %v6117_v0  ;;  %v1192_v9 = vpack.c.bf16 %v1190_v7, %v1188_v51  ;;  %v1320_v10 = vpack.c.bf16 %v1318_v8, %v1316_v52 }
 0x158   : > { %4924 = vmatmul.mubr.bf16.vlgmr.msra.gmra.mxu0 %v971_v48  ;;  %4944 = vmatmul.mubr.bf16.vlgmr.msra.gmra.mxu1 %v945_v49 }
 0x159   : > { %4948 = vmatpush3.bf16.msra.mxu0 %v6438_v18  ;;  %4968 = vmatpush3.bf16.msra.mxu1 %v6440_v19  ;;  %v5607_v18 = vld [vmem:[#allocation5 + $0x28] sm:$0xff]   ;;  %v5612_v19 = vld [vmem:[#allocation5 + $0x50] sm:$0xff]  }
 0x15a   : > { %4963 = vmatprep.mubr.bf16.mxu0 %v1191_v56  ;;  %4983 = vmatprep.mubr.bf16.mxu1 %v1319_v57 }
 0x15b   : > { %4949 = vmatprep.subr.bf16.mxu0 %v5588_v50  ;;  %4969 = vmatprep.subr.bf16.mxu1 %v5589_v55 }
 0x15d   : > { %4950 = vmatpush3.bf16.msra.mxu0 %v5588_v50  ;;  %4970 = vmatpush3.bf16.msra.mxu1 %v5589_v55 }
 0x15e   : > { %4951 = vmatprep.subr.bf16.mxu0 %v5590_v58  ;;  %4971 = vmatprep.subr.bf16.mxu1 %v5591_v59 }
 0x161   : > { %4952 = vmatpush3.bf16.msra.mxu0 %v5590_v58  ;;  %4972 = vmatpush3.bf16.msra.mxu1 %v5591_v59 }
 0x162   : > { %4953 = vmatprep.subr.bf16.mxu0 %v5592_v60  ;;  %4973 = vmatprep.subr.bf16.mxu1 %v5593_v61 }
 0x165   : > { %4954 = vmatpush3.bf16.msra.mxu0 %v5592_v60  ;;  %4974 = vmatpush3.bf16.msra.mxu1 %v5593_v61 }
 0x166   : > { %4955 = vmatprep.subr.bf16.mxu0 %v5594_v62  ;;  %4975 = vmatprep.subr.bf16.mxu1 %v5595_v63 }
 0x169   : > { %4956 = vmatpush3.bf16.msra.mxu0 %v5594_v62  ;;  %4976 = vmatpush3.bf16.msra.mxu1 %v5595_v63 }
 0x16a   : > { %4957 = vmatprep.subr.bf16.mxu0 %v5596_v1  ;;  %4977 = vmatprep.subr.bf16.mxu1 %v5597_v2 }
 0x16d   : > { %4958 = vmatpush3.bf16.msra.mxu0 %v5596_v1  ;;  %4978 = vmatpush3.bf16.msra.mxu1 %v5597_v2 }
 0x16e   : > { %4959 = vmatprep.subr.bf16.mxu0 %v5598_v3  ;;  %4979 = vmatprep.subr.bf16.mxu1 %v5599_v4 }
 0x171   : > { %4960 = vmatpush3.bf16.msra.mxu0 %v5598_v3  ;;  %4980 = vmatpush3.bf16.msra.mxu1 %v5599_v4  ;;  %v5619_v4 = vld [vmem:[#allocation5 + $0xb0] sm:$0xff]  }
 0x172   : > { %4961 = vmatprep.subr.bf16.mxu0 %v5600_v5  ;;  %4981 = vmatprep.subr.bf16.mxu1 %v5601_v6 }
 0x175   : > { %4962 = vmatpush3.bf16.msra.mxu0 %v5600_v5  ;;  %4982 = vmatpush3.bf16.msra.mxu1 %v5601_v6  ;;  %v5620_v6 = vld [vmem:[#allocation5 + $0xa8] sm:$0xff]  }
 0x176   : > { %4987 = vmatprep.subr.bf16.mxu0 %v5602_v11  ;;  %5007 = vmatprep.subr.bf16.mxu1 %v5603_v12 }
 0x178   : > { %4964 = vmatmul.mubr.bf16.vlgmr.msra.gmra.mxu0 %v1192_v9  ;;  %4984 = vmatmul.mubr.bf16.vlgmr.msra.gmra.mxu1 %v1320_v10 }
 0x179   : > { %4988 = vmatpush3.bf16.msra.mxu0 %v5602_v11  ;;  %5008 = vmatpush3.bf16.msra.mxu1 %v5603_v12 }
 0x17a   : > { %4989 = vmatprep.subr.bf16.mxu0 %v5604_v13  ;;  %5009 = vmatprep.subr.bf16.mxu1 %v5605_v14 }
 0x17d   : > { %4990 = vmatpush3.bf16.msra.mxu0 %v5604_v13  ;;  %5010 = vmatpush3.bf16.msra.mxu1 %v5605_v14 }
 0x17e   : > { %4991 = vmatprep.subr.bf16.mxu0 %v5606_v15  ;;  %5011 = vmatprep.subr.bf16.mxu1 %v5607_v18 }
 0x181   : > { %4992 = vmatpush3.bf16.msra.mxu0 %v5606_v15  ;;  %5012 = vmatpush3.bf16.msra.mxu1 %v5607_v18  ;;  %v5621_v15 = vld [vmem:[#allocation5 + $0xa0] sm:$0xff]   ;;  %v5624_v18 = vld [vmem:[#allocation5 + $0x88] sm:$0xff]  }
 0x182   : > { %4993 = vmatprep.subr.bf16.mxu0 %v5608_v16  ;;  %5013 = vmatprep.subr.bf16.mxu1 %v5609_v20 }
 0x185   : > { %4994 = vmatpush3.bf16.msra.mxu0 %v5608_v16  ;;  %5014 = vmatpush3.bf16.msra.mxu1 %v5609_v20  ;;  %v5622_v16 = vld [vmem:[#allocation5 + $0x98] sm:$0xff]  }
 0x186   : > { %4995 = vmatprep.subr.bf16.mxu0 %v5610_v17  ;;  %5015 = vmatprep.subr.bf16.mxu1 %v5611_v22 }
 0x189   : > { %4996 = vmatpush3.bf16.msra.mxu0 %v5610_v17  ;;  %5016 = vmatpush3.bf16.msra.mxu1 %v5611_v22  ;;  %v5623_v17 = vld [vmem:[#allocation5 + $0x90] sm:$0xff]  }
 0x18a   : > { %4997 = vmatprep.subr.bf16.mxu0 %v5612_v19  ;;  %5017 = vmatprep.subr.bf16.mxu1 %v5613_v24 }
 0x18d   : > { %4998 = vmatpush3.bf16.msra.mxu0 %v5612_v19  ;;  %5018 = vmatpush3.bf16.msra.mxu1 %v5613_v24  ;;  %v5625_v19 = vld [vmem:[#allocation5 + $0x80] sm:$0xff]   ;;  %v5627_v24 = vld [vmem:[#allocation7 + $0x30] sm:$0xff]  }
 0x18e   : > { %4999 = vmatprep.subr.bf16.mxu0 %v5614_v21  ;;  %5019 = vmatprep.subr.bf16.mxu1 %v5615_v25 }
 0x191   : > { %5000 = vmatpush3.bf16.msra.mxu0 %v5614_v21  ;;  %5020 = vmatpush3.bf16.msra.mxu1 %v5615_v25  ;;  %v5628_v25 = vld [vmem:[#allocation7 + $0x28] sm:$0xff]  }
 0x192   : > { %5001 = vmatprep.subr.bf16.mxu0 %v5616_v23  ;;  %5021 = vmatprep.subr.bf16.mxu1 %v5617_v27 }
 0x195   : > { %5002 = vmatpush3.bf16.msra.mxu0 %v5616_v23  ;;  %5022 = vmatpush3.bf16.msra.mxu1 %v5617_v27  ;;  %v5626_v23 = vld [vmem:[#allocation7 + $0x38] sm:$0xff]  }
 0x196   : > { %5027 = vmatprep.subr.bf16.mxu0 %v5618_v26  ;;  %5047 = vmatprep.subr.bf16.mxu1 %v5626_v23  ;;  %v5630_v27 = vld [vmem:[#allocation7 + $0x18] sm:$0xff]  }
 0x218   : > { %v4925_v28 = vpop.f32.mrf.mxu0  ;;  %v4945_v29 = vpop.f32.mrf.mxu1 }
 0x219   : > { %v1177_v36 = vadd.f32 %v4945_v29, %v4925_v28  ;;  %v5631_v28 = vld [vmem:[#allocation7 + $0x10] sm:$0xff]   ;;  %v5632_v29 = vld [vmem:[#allocation7 + $0x8] sm:$0xff]  }
 0x21a   : > { %v1071_v30 = vpop.f32.mrf.mxu0  ;;  %v1168_v31 = vpop.f32.mrf.mxu1 }
 0x21b   : > { %v1169_v39 = vadd.f32 %v1168_v31, %v1071_v30  ;;  %v5633_v30 = vld [vmem:[#allocation7] sm:$0xff]   ;;  %v5634_v31 = vld [vmem:[#allocation8 + $0x78] sm:$0xff]  }
 0x21c   : > { %v4926_v32 = vpop.f32.mrf.mxu0  ;;  %v4946_v33 = vpop.f32.mrf.mxu1 }
 0x21d   : > { %v1180_v44 = vadd.f32 %v4946_v33, %v4926_v32  ;;  %v5635_v32 = vld [vmem:[#allocation8 + $0x38] sm:$0xff]   ;;  %v5636_v33 = vld [vmem:[#allocation8 + $0x70] sm:$0xff]  }
 0x21e   : > { %v1074_v34 = vpop.f32.mrf.mxu0  ;;  %v1171_v35 = vpop.f32.mrf.mxu1 }
 0x21f   : > { %v1172_v49 = vadd.f32 %v1171_v35, %v1074_v34  ;;  %v5638_v34 = vld [vmem:[#allocation8 + $0x68] sm:$0xff]  }
 0x238   : > { %v4965_v37 = vpop.f32.mrf.mxu0  ;;  %v4985_v38 = vpop.f32.mrf.mxu1 }
 0x239   : > { %v1309_v40 = vadd.f32 %v4965_v37, %v1177_v36 }
 0x23a   : > { %v1292_v42 = vpop.f32.mrf.mxu0  ;;  %v1420_v43 = vpop.f32.mrf.mxu1 }
 0x23b   : > { %v1437_v45 = vadd.f32 %v4985_v38, %v1309_v40  ;;  %v1307_v46 = vadd.f32 %v1292_v42, %v1169_v39 }
 0x23c   : > { %v4966_v47 = vpop.f32.mrf.mxu0  ;;  %v4986_v48 = vpop.f32.mrf.mxu1 }
 0x23d   : > { %v6461_v50 = vadd.f32 %v4454_v41, %v1437_v45  ;;  %v1435_v51 = vadd.f32 %v1420_v43, %v1307_v46  ;;  %v1310_v52 = vadd.f32 %v4966_v47, %v1180_v44 }
 0x23e   : > { %v1295_v53 = vpop.f32.mrf.mxu0  ;;  %v1423_v58 = vpop.f32.mrf.mxu1 }
 0x23f   : > { %v1452_v54 = vmax.f32 %v6461_v50, 0.0  ;;  %v6464_v55 = vadd.f32 %v4454_v41, %v1435_v51  ;;  %v1438_v56 = vadd.f32 %v4986_v48, %v1310_v52  ;;  %v1308_v57 = vadd.f32 %v1295_v53, %v1172_v49  ;;  %v4479_v53 = vld [vmem:[%s6756_s5] ss:$0 sm:$0xff] }
 0x241   : > { %1458 = vst [vmem:[#allocation2 + $0x11] sm:$0xff] %v1452_v54  ;;  %v1450_v59 = vmax.f32 %v6464_v55, 0.0  ;;  %v6467_v60 = vadd.f32 %v4454_v41, %v1438_v56  ;;  %v1436_v61 = vadd.f32 %v1423_v58, %v1308_v57 }
 0x243   : > { %1456 = vst [vmem:[#allocation2 + $0x1] sm:$0xff] %v1450_v59  ;;  %v1453_v62 = vmax.f32 %v6467_v60, 0.0  ;;  %v6470_v63 = vadd.f32 %v4454_v41, %v1436_v61 }
 0x245   : > { %1459 = vst [vmem:[#allocation2 + $0x19] sm:$0xff] %v1453_v62  ;;  %v1451_v1 = vmax.f32 %v6470_v63, 0.0  ;;  %v1487_v3 = vpack.c.bf16 %v1453_v62, %v1452_v54 }
 0x247   : > { %1457 = vst [vmem:[#allocation2 + $0x9] sm:$0xff] %v1451_v1  ;;  %v1486_v2 = vpack.c.bf16 %v1451_v1, %v1450_v59 }
 0x249   : > { %5003 = vmatprep.mubr.bf16.mxu0 %v1486_v2 }
 0x24a   : > { %v1460_v5 = vld [vmem:[#allocation2] sm:$0xff]  ;;  %5004 = vmatmul.mubr.bf16.vlgmr.msra.gmra.mxu0 %v1487_v3 }
 0x24b   : > { %1968 = vst [vmem:[#allocation2] sm:$0x3] %v6117_v0  ;;  %5028 = vmatpush3.bf16.msra.mxu0 %v5618_v26  ;;  %v5629_v26 = vld [vmem:[#allocation7 + $0x20] sm:$0xff]  }
 0x24c   : > { %5029 = vmatprep.subr.bf16.mxu0 %v5619_v4  ;;  %v1463_v7 = vld [vmem:[#allocation2 + $0x18] sm:$0xff] }
 0x24d   : > { %v1701_v20 = vld [vmem:[#allocation2 + $0x12] sm:$0xff]  ;;  %v1702_v21 = vld [vmem:[#allocation2 + $0x1a] sm:$0xff] }
 0x24e   : > { %v1461_v8 = vld [vmem:[#allocation2 + $0x8] sm:$0xff]  ;;  %v1462_v9 = vld [vmem:[#allocation2 + $0x10] sm:$0xff]  ;;  %v1704_v22 = vpack.c.bf16 %v1702_v21, %v1701_v20  ;;  %v4480_v20 = vld [vmem:[%s6757_s3] ss:$0 sm:$0xff] }
 0x24f   : > { %v1699_v10 = vld [vmem:[#allocation2 + $0x2] sm:$0xff]  ;;  %v1464_v11 = vpack.c.bf16 %v1461_v8, %v1460_v5  ;;  %v1465_v12 = vpack.c.bf16 %v1463_v7, %v1462_v9  ;;  %v1700_v13 = vld [vmem:[#allocation2 + $0xa] sm:$0xff]  ;;  %5030 = vmatpush3.bf16.msra.mxu0 %v5619_v4  ;;  %v5637_v7 = vld [vmem:[#allocation8 + $0x30] sm:$0xff]  }
 0x250   : > { %v1703_v14 = vpack.c.bf16 %v1700_v13, %v1699_v10  ;;  %5031 = vmatprep.subr.bf16.mxu0 %v5620_v6  ;;  %v5640_v8 = vld [vmem:[#allocation8 + $0x60] sm:$0xff]   ;;  %v5642_v9 = vld [vmem:[#allocation8 + $0x58] sm:$0xff]   ;;  %v5639_v10 = vld [vmem:[#allocation8 + $0x28] sm:$0xff]  }
 0x251   : > { %5023 = vmatprep.mubr.bf16.mxu1 %v1464_v11  ;;  %v5644_v11 = vld [vmem:[#allocation8 + $0x50] sm:$0xff]   ;;  %v5646_v13 = vld [vmem:[#allocation8 + $0x48] sm:$0xff]  }
 0x252   : > { %5024 = vmatmul.mubr.bf16.vlgmr.msra.gmra.mxu1 %v1465_v12  ;;  %5043 = vmatprep.mubr.bf16.mxu0 %v1703_v14  ;;  %v5641_v12 = vld [vmem:[#allocation8 + $0x20] sm:$0xff]   ;;  %v5643_v14 = vld [vmem:[#allocation8 + $0x18] sm:$0xff]  }
 0x253   : > { %5032 = vmatpush3.bf16.msra.mxu0 %v5620_v6  ;;  %5048 = vmatpush3.bf16.msra.mxu1 %v5626_v23 }
 0x254   : > { %5033 = vmatprep.subr.bf16.mxu0 %v5621_v15  ;;  %5049 = vmatprep.subr.bf16.mxu1 %v5627_v24 }
 0x257   : > { %5034 = vmatpush3.bf16.msra.mxu0 %v5621_v15  ;;  %5050 = vmatpush3.bf16.msra.mxu1 %v5627_v24  ;;  %v5648_v15 = vld [vmem:[#allocation8 + $0x40] sm:$0xff]  }
 0x258   : > { %5035 = vmatprep.subr.bf16.mxu0 %v5622_v16  ;;  %5051 = vmatprep.subr.bf16.mxu1 %v5628_v25 }
 0x25b   : > { %5036 = vmatpush3.bf16.msra.mxu0 %v5622_v16  ;;  %5052 = vmatpush3.bf16.msra.mxu1 %v5628_v25  ;;  %v5645_v16 = vld [vmem:[#allocation8 + $0x10] sm:$0xff]  }
 0x25c   : > { %5037 = vmatprep.subr.bf16.mxu0 %v5623_v17  ;;  %5053 = vmatprep.subr.bf16.mxu1 %v5629_v26 }
 0x25f   : > { %5038 = vmatpush3.bf16.msra.mxu0 %v5623_v17  ;;  %5054 = vmatpush3.bf16.msra.mxu1 %v5629_v26  ;;  %v5647_v17 = vld [vmem:[#allocation8 + $0x8] sm:$0xff]  }
 0x260   : > { %5039 = vmatprep.subr.bf16.mxu0 %v5624_v18  ;;  %5055 = vmatprep.subr.bf16.mxu1 %v5630_v27 }
 0x263   : > { %5040 = vmatpush3.bf16.msra.mxu0 %v5624_v18  ;;  %5056 = vmatpush3.bf16.msra.mxu1 %v5630_v27  ;;  %v5650_v18 = vld [vmem:[#allocation8 + $0xb8] sm:$0xff]  }
 0x264   : > { %5041 = vmatprep.subr.bf16.mxu0 %v5625_v19  ;;  %5057 = vmatprep.subr.bf16.mxu1 %v5631_v28 }
 0x267   : > { %5042 = vmatpush3.bf16.msra.mxu0 %v5625_v19  ;;  %5058 = vmatpush3.bf16.msra.mxu1 %v5631_v28  ;;  %v5649_v19 = vld [vmem:[#allocation8] sm:$0xff]  }
 0x268   : > { %5059 = vmatprep.subr.bf16.mxu1 %v5632_v29  ;;  %5067 = vmatprep.subr.bf16.mxu0 %v5634_v31 }
 0x26a   : > { %5044 = vmatmul.mubr.bf16.vlgmr.msra.gmra.mxu0 %v1704_v22 }
 0x26b   : > { %5060 = vmatpush3.bf16.msra.mxu1 %v5632_v29  ;;  %5068 = vmatpush3.bf16.msra.mxu0 %v5634_v31 }
 0x26c   : > { %5061 = vmatprep.subr.bf16.mxu1 %v5633_v30  ;;  %5069 = vmatprep.subr.bf16.mxu0 %v5636_v33 }
 0x26f   : > { %5062 = vmatpush3.bf16.msra.mxu1 %v5633_v30  ;;  %5070 = vmatpush3.bf16.msra.mxu0 %v5636_v33 }
 0x270   : > { %5087 = vmatprep.subr.bf16.mxu1 %v5635_v32  ;;  %5071 = vmatprep.subr.bf16.mxu0 %v5638_v34 }
 0x273   : > { %5072 = vmatpush3.bf16.msra.mxu0 %v5638_v34 }
 0x274   : > { %5073 = vmatprep.subr.bf16.mxu0 %v5640_v8 }
 0x277   : > { %5074 = vmatpush3.bf16.msra.mxu0 %v5640_v8 }
 0x278   : > { %5075 = vmatprep.subr.bf16.mxu0 %v5642_v9 }
 0x27b   : > { %5076 = vmatpush3.bf16.msra.mxu0 %v5642_v9 }
 0x27c   : > { %5077 = vmatprep.subr.bf16.mxu0 %v5644_v11 }
 0x27f   : > { %5078 = vmatpush3.bf16.msra.mxu0 %v5644_v11 }
 0x280   : > { %5079 = vmatprep.subr.bf16.mxu0 %v5646_v13 }
 0x283   : > { %5080 = vmatpush3.bf16.msra.mxu0 %v5646_v13 }
 0x284   : > { %5081 = vmatprep.subr.bf16.mxu0 %v5648_v15 }
 0x287   : > { %5082 = vmatpush3.bf16.msra.mxu0 %v5648_v15 }
 0x288   : > { %5107 = vmatprep.subr.bf16.mxu0 %v5650_v18 }
 0x30a   : > { %v5005_v35 = vpop.f32.mrf.mxu0 }
 0x30c   : > { %v1587_v37 = vpop.f32.mrf.mxu0 }
 0x30e   : > { %v5006_v39 = vpop.f32.mrf.mxu0 }
 0x310   : > { %v1590_v41 = vpop.f32.mrf.mxu0 }
 0x312   : > { %v5025_v36 = vpop.f32.mrf.mxu1 }
 0x313   : > { %v1693_v44 = vadd.f32 %v5025_v36, %v5005_v35 }
 0x314   : > { %v1684_v38 = vpop.f32.mrf.mxu1 }
 0x315   : > { %v1685_v43 = vadd.f32 %v1684_v38, %v1587_v37  ;;  %v5651_v37 = vld [vmem:[#allocation8 + $0xb0] sm:$0xff]  }
 0x316   : > { %v5026_v40 = vpop.f32.mrf.mxu1 }
 0x317   : > { %v1696_v47 = vadd.f32 %v5026_v40, %v5006_v39 }
 0x318   : > { %v1687_v45 = vpop.f32.mrf.mxu1 }
 0x319   : > { %v1688_v52 = vadd.f32 %v1687_v45, %v1590_v41 }
 0x32a   : > { %v5045_v42 = vpop.f32.mrf.mxu0 }
 0x32b   : > { %v1821_v49 = vadd.f32 %v5045_v42, %v1693_v44 }
 0x32c   : > { %v1804_v46 = vpop.f32.mrf.mxu0 }
 0x32d   : > { %v1819_v48 = vadd.f32 %v1804_v46, %v1685_v43  ;;  %v1832_v61 = vadd.f32 %v4479_v53, %v1821_v49  ;;  %v5655_v49 = vld [vmem:[#allocation8 + $0x90] sm:$0xff]  }
 0x32e   : > { %v5046_v51 = vpop.f32.mrf.mxu0 }
 0x32f   : > { %v1822_v54 = vadd.f32 %v5046_v51, %v1696_v47  ;;  %v1830_v57 = vadd.f32 %v4479_v53, %v1819_v48  ;;  %v1836_v4 = vmax.f32 %v1832_v61, 0.0  ;;  %v5653_v47 = vld [vmem:[#allocation8 + $0xa0] sm:$0xff]   ;;  %v5654_v48 = vld [vmem:[#allocation8 + $0x98] sm:$0xff]   ;;  %v5656_v51 = vld [vmem:[#allocation8 + $0x88] sm:$0xff]  }
 0x330   : > { %v1807_v56 = vpop.f32.mrf.mxu0  ;;  %v5662_v61 = vld [vmem:[#allocation10 + $0x18] sm:$0xff]  }
 0x331   : > { %v1833_v58 = vadd.f32 %v4479_v53, %v1822_v54  ;;  %v1820_v59 = vadd.f32 %v1807_v56, %v1688_v52  ;;  %v1834_v2 = vmax.f32 %v1830_v57, 0.0  ;;  %v5657_v52 = vld [vmem:[#allocation8 + $0x80] sm:$0xff]   ;;  %v5658_v56 = vld [vmem:[#allocation10 + $0x38] sm:$0xff]   ;;  %v5659_v57 = vld [vmem:[#allocation10 + $0x30] sm:$0xff]  }
 0x333   : > { %v1831_v62 = vadd.f32 %v4479_v53, %v1820_v59  ;;  %v1837_v1 = vmax.f32 %v1833_v58, 0.0  ;;  %v5660_v58 = vld [vmem:[#allocation10 + $0x28] sm:$0xff]   ;;  %v5661_v59 = vld [vmem:[#allocation10 + $0x20] sm:$0xff]  }
 0x335   : > { %v1835_v3 = vmax.f32 %v1831_v62, 0.0  ;;  %v1839_v6 = vpack.c.bf16 %v1837_v1, %v1836_v4  ;;  %v5663_v62 = vld [vmem:[#allocation10 + $0x10] sm:$0xff]   ;;  %v5664_v1 = vld [vmem:[#allocation10 + $0x8] sm:$0xff]  }
 0x336   : > { %v5668_v4 = vld [vmem:[#allocation11 + $0x70] sm:$0xff]  }
 0x337   : > { %v1838_v5 = vpack.c.bf16 %v1835_v3, %v1834_v2  ;;  %v5665_v2 = vld [vmem:[#allocation10] sm:$0xff]   ;;  %v5666_v3 = vld [vmem:[#allocation11 + $0x78] sm:$0xff]  }
 0x339   : > { %5063 = vmatprep.mubr.bf16.mxu1 %v1838_v5  ;;  %v5670_v5 = vld [vmem:[#allocation11 + $0x68] sm:$0xff]  }
 0x33a   : > { %5064 = vmatmul.mubr.bf16.vlgmr.msra.gmra.mxu1 %v1839_v6 }
 0x33b   : > { %5088 = vmatpush3.bf16.msra.mxu1 %v5635_v32 }
 0x33c   : > { %5089 = vmatprep.subr.bf16.mxu1 %v5637_v7 }
 0x33f   : > { %5090 = vmatpush3.bf16.msra.mxu1 %v5637_v7 }
 0x340   : > { %5091 = vmatprep.subr.bf16.mxu1 %v5639_v10 }
 0x343   : > { %5092 = vmatpush3.bf16.msra.mxu1 %v5639_v10 }
 0x344   : > { %5093 = vmatprep.subr.bf16.mxu1 %v5641_v12 }
 0x347   : > { %5094 = vmatpush3.bf16.msra.mxu1 %v5641_v12 }
 0x348   : > { %5095 = vmatprep.subr.bf16.mxu1 %v5643_v14 }
 0x34b   : > { %5096 = vmatpush3.bf16.msra.mxu1 %v5643_v14 }
 0x34c   : > { %5097 = vmatprep.subr.bf16.mxu1 %v5645_v16 }
 0x34f   : > { %5098 = vmatpush3.bf16.msra.mxu1 %v5645_v16 }
 0x350   : > { %5099 = vmatprep.subr.bf16.mxu1 %v5647_v17 }
 0x353   : > { %5100 = vmatpush3.bf16.msra.mxu1 %v5647_v17 }
 0x354   : > { %5101 = vmatprep.subr.bf16.mxu1 %v5649_v19 }
 0x357   : > { %5102 = vmatpush3.bf16.msra.mxu1 %v5649_v19 }
 0x358   : > { %5127 = vmatprep.subr.bf16.mxu1 %v5658_v56 }
 0x3fa   : > { %v5065_v21 = vpop.f32.mrf.mxu1 }
 0x3fb   : > { %v1954_v22 = vadd.f32 %v5065_v21, %v4480_v20 }
 0x3fc   : > { %v1945_v23 = vpop.f32.mrf.mxu1 }
 0x3fd   : > { %v6481_v24 = vadd.f32 %v1954_v22, %v6461_v50  ;;  %v1946_v25 = vadd.f32 %v4480_v20, %v1945_v23  ;;  %v4513_v23 = vld [vmem:[%s6719_s8] ss:$0 sm:$0xff] }
 0x3fe   : > { %v5066_v26 = vpop.f32.mrf.mxu1 }
 0x3ff   : > { %v1966_v27 = vmax.f32 %v6481_v24, 0.0  ;;  %v6485_v28 = vadd.f32 %v1946_v25, %v6464_v55  ;;  %v1957_v29 = vadd.f32 %v5066_v26, %v4480_v20 }
 0x400   : > { %v1948_v30 = vpop.f32.mrf.mxu1 }
 0x401   : > { %1972 = vst [vmem:[#allocation2 + $0x12] sm:$0xff] %v1966_v27  ;;  %v1964_v31 = vmax.f32 %v6485_v28, 0.0  ;;  %v6489_v32 = vadd.f32 %v1957_v29, %v6467_v60  ;;  %v1949_v33 = vadd.f32 %v4480_v20, %v1948_v30  ;;  %v5652_v60 = vld [vmem:[#allocation8 + $0xa8] sm:$0xff]  }
 0x403   : > { %1970 = vst [vmem:[#allocation2 + $0x2] sm:$0xff] %v1964_v31  ;;  %v1967_v50 = vmax.f32 %v6489_v32, 0.0  ;;  %v6493_v34 = vadd.f32 %v1949_v33, %v6470_v63 }
 0x405   : > { %1973 = vst [vmem:[#allocation2 + $0x1a] sm:$0xff] %v1967_v50  ;;  %v1965_v35 = vmax.f32 %v6493_v34, 0.0  ;;  %v2001_v36 = vpack.c.bf16 %v1967_v50, %v1966_v27 }
 0x407   : > { %1971 = vst [vmem:[#allocation2 + $0xa] sm:$0xff] %v1965_v35  ;;  %v2000_v55 = vpack.c.bf16 %v1965_v35, %v1964_v31 }
 0x409   : > { %5083 = vmatprep.mubr.bf16.mxu0 %v2000_v55 }
 0x40a   : > { %v1974_v38 = vld [vmem:[#allocation2] sm:$0xff]  ;;  %5084 = vmatmul.mubr.bf16.vlgmr.msra.gmra.mxu0 %v2001_v36 }
 0x40b   : > { %2478 = vst [vmem:[#allocation2] sm:$0x1] %v6117_v0  ;;  %5108 = vmatpush3.bf16.msra.mxu0 %v5650_v18 }
 0x40c   : > { %5109 = vmatprep.subr.bf16.mxu0 %v5651_v37  ;;  %v2216_v39 = vld [vmem:[#allocation2 + $0x1c] sm:$0xff]  ;;  %v2215_v53 = vld [vmem:[#allocation2 + $0x14] sm:$0xff] }
 0x40d   : > { %v1977_v40 = vld [vmem:[#allocation2 + $0x18] sm:$0xff]  ;;  %2479 = vst [vmem:[#allocation2 + $0x21] sm:$0x1] %v6117_v0  ;;  %v2218_v54 = vpack.c.bf16 %v2216_v39, %v2215_v53 }
 0x40e   : > { %v1975_v63 = vld [vmem:[#allocation2 + $0x8] sm:$0xff]  ;;  %v1976_v41 = vld [vmem:[#allocation2 + $0x10] sm:$0xff]  ;;  %v5669_v39 = vld [vmem:[#allocation11 + $0x30] sm:$0xff]  }
 0x40f   : > { %v2213_v42 = vld [vmem:[#allocation2 + $0x4] sm:$0xff]  ;;  %v1978_v43 = vpack.c.bf16 %v1975_v63, %v1974_v38  ;;  %v1979_v44 = vpack.c.bf16 %v1977_v40, %v1976_v41  ;;  %v2214_v45 = vld [vmem:[#allocation2 + $0xc] sm:$0xff]  ;;  %5110 = vmatpush3.bf16.msra.mxu0 %v5651_v37 }
 0x410   : > { %v2217_v46 = vpack.c.bf16 %v2214_v45, %v2213_v42  ;;  %5111 = vmatprep.subr.bf16.mxu0 %v5652_v60  ;;  %v5667_v38 = vld [vmem:[#allocation11 + $0x38] sm:$0xff]   ;;  %v5671_v40 = vld [vmem:[#allocation11 + $0x28] sm:$0xff]   ;;  %v5672_v63 = vld [vmem:[#allocation11 + $0x60] sm:$0xff]  }
 0x411   : > { %5103 = vmatprep.mubr.bf16.mxu1 %v1978_v43  ;;  %v5673_v41 = vld [vmem:[#allocation11 + $0x20] sm:$0xff]   ;;  %v5674_v42 = vld [vmem:[#allocation11 + $0x58] sm:$0xff]   ;;  %v5677_v45 = vld [vmem:[#allocation11 + $0x10] sm:$0xff]  }
 0x412   : > { %5104 = vmatmul.mubr.bf16.vlgmr.msra.gmra.mxu1 %v1979_v44  ;;  %5123 = vmatprep.mubr.bf16.mxu0 %v2217_v46  ;;  %v5675_v43 = vld [vmem:[#allocation11 + $0x18] sm:$0xff]   ;;  %v5676_v44 = vld [vmem:[#allocation11 + $0x50] sm:$0xff]   ;;  %v5678_v46 = vld [vmem:[#allocation11 + $0x48] sm:$0xff]  }
 0x413   : > { %5112 = vmatpush3.bf16.msra.mxu0 %v5652_v60  ;;  %5128 = vmatpush3.bf16.msra.mxu1 %v5658_v56 }
 0x414   : > { %5113 = vmatprep.subr.bf16.mxu0 %v5653_v47  ;;  %5129 = vmatprep.subr.bf16.mxu1 %v5659_v57 }
 0x417   : > { %5114 = vmatpush3.bf16.msra.mxu0 %v5653_v47  ;;  %5130 = vmatpush3.bf16.msra.mxu1 %v5659_v57  ;;  %v5679_v47 = vld [vmem:[#allocation11 + $0x8] sm:$0xff]  }
 0x418   : > { %5115 = vmatprep.subr.bf16.mxu0 %v5654_v48  ;;  %5131 = vmatprep.subr.bf16.mxu1 %v5660_v58 }
 0x41b   : > { %5116 = vmatpush3.bf16.msra.mxu0 %v5654_v48  ;;  %5132 = vmatpush3.bf16.msra.mxu1 %v5660_v58  ;;  %v5680_v48 = vld [vmem:[#allocation11 + $0x40] sm:$0xff]  }
 0x41c   : > { %5117 = vmatprep.subr.bf16.mxu0 %v5655_v49  ;;  %5133 = vmatprep.subr.bf16.mxu1 %v5661_v59 }
 0x41f   : > { %5118 = vmatpush3.bf16.msra.mxu0 %v5655_v49  ;;  %5134 = vmatpush3.bf16.msra.mxu1 %v5661_v59  ;;  %v5681_v49 = vld [vmem:[#allocation11] sm:$0xff]  }
 0x420   : > { %5119 = vmatprep.subr.bf16.mxu0 %v5656_v51  ;;  %5135 = vmatprep.subr.bf16.mxu1 %v5662_v61 }
 0x423   : > { %5120 = vmatpush3.bf16.msra.mxu0 %v5656_v51  ;;  %5136 = vmatpush3.bf16.msra.mxu1 %v5662_v61  ;;  %v4514_v51 = vld [vmem:[%s6721_s10] ss:$0 sm:$0xff] }
 0x424   : > { %5121 = vmatprep.subr.bf16.mxu0 %v5657_v52  ;;  %5137 = vmatprep.subr.bf16.mxu1 %v5663_v62 }
 0x427   : > { %5122 = vmatpush3.bf16.msra.mxu0 %v5657_v52  ;;  %5138 = vmatpush3.bf16.msra.mxu1 %v5663_v62 }
 0x428   : > { %5147 = vmatprep.subr.bf16.mxu0 %v6117_v0  ;;  %5139 = vmatprep.subr.bf16.mxu1 %v5664_v1 }
 0x42a   : > { %5124 = vmatmul.mubr.bf16.vlgmr.msra.gmra.mxu0 %v2218_v54 }
 0x42b   : > { %5140 = vmatpush3.bf16.msra.mxu1 %v5664_v1  ;;  %5148 = vmatpush3.bf16.msra.mxu0 %v5666_v3 }
 0x42c   : > { %5141 = vmatprep.subr.bf16.mxu1 %v5665_v2  ;;  %5149 = vmatprep.subr.bf16.mxu0 %v6117_v0 }
 0x42d   : > { %5163 = vmatprep.mubr.msk.bf16.mxu0 %vm6118_vm1, %v6117_v0 }
 0x42f   : > { %5142 = vmatpush3.bf16.msra.mxu1 %v5665_v2  ;;  %5150 = vmatpush3.bf16.msra.mxu0 %v5668_v4  ;;  %v5682_v4 = vld [vmem:[#allocation11 + $0xb8] sm:$0xff]  }
 0x430   : > { %5167 = vmatprep.subr.bf16.mxu1 %v6117_v0  ;;  %5151 = vmatprep.subr.bf16.mxu0 %v6117_v0 }
 0x433   : > { %5152 = vmatpush3.bf16.msra.mxu0 %v5670_v5  ;;  %v5683_v5 = vld [vmem:[#allocation11 + $0xf8] sm:$0xff]  }
 0x434   : > { %5153 = vmatprep.subr.bf16.mxu0 %v6117_v0 }
 0x437   : > { %5154 = vmatpush3.bf16.msra.mxu0 %v5672_v63  ;;  %v5712_v63 = vld [vmem:[#allocation13 + $0x40] sm:$0xff]  }
 0x438   : > { %5155 = vmatprep.subr.bf16.mxu0 %v6117_v0 }
 0x43b   : > { %5156 = vmatpush3.bf16.msra.mxu0 %v5674_v42  ;;  %v5711_v42 = vld [vmem:[#allocation13 + $0x8] sm:$0xff]  }
 0x43c   : > { %5157 = vmatprep.subr.bf16.mxu0 %v6117_v0 }
 0x43f   : > { %5158 = vmatpush3.bf16.msra.mxu0 %v5676_v44 }
 0x440   : > { %5159 = vmatprep.subr.bf16.mxu0 %v6117_v0 }
 0x443   : > { %5160 = vmatpush3.bf16.msra.mxu0 %v5678_v46 }
 0x444   : > { %5161 = vmatprep.subr.bf16.mxu0 %v6117_v0 }
 0x447   : > { %5162 = vmatpush3.bf16.msra.mxu0 %v5680_v48 }
 0x448   : > { %5187 = vmatprep.subr.bf16.mxu0 %v6117_v0 }
 0x4ca   : > { %v5085_v6 = vpop.f32.mrf.mxu0 }
 0x4cc   : > { %v2101_v8 = vpop.f32.mrf.mxu0 }
 0x4ce   : > { %v5086_v10 = vpop.f32.mrf.mxu0 }
 0x4d0   : > { %v2104_v12 = vpop.f32.mrf.mxu0 }
 0x4d2   : > { %v5105_v7 = vpop.f32.mrf.mxu1 }
 0x4d3   : > { %v2207_v15 = vadd.f32 %v5105_v7, %v5085_v6 }
 0x4d4   : > { %v2198_v9 = vpop.f32.mrf.mxu1 }
 0x4d5   : > { %v2199_v14 = vadd.f32 %v2198_v9, %v2101_v8 }
 0x4d6   : > { %v5106_v11 = vpop.f32.mrf.mxu1 }
 0x4d7   : > { %v2210_v18 = vadd.f32 %v5106_v11, %v5086_v10 }
 0x4d8   : > { %v2201_v16 = vpop.f32.mrf.mxu1 }
 0x4d9   : > { %v2202_v22 = vadd.f32 %v2201_v16, %v2104_v12  ;;  %v5685_v12 = vld [vmem:[#allocation11 + $0xf0] sm:$0xff]   ;;  %v5689_v16 = vld [vmem:[#allocation11 + $0xe0] sm:$0xff]  }
 0x4ea   : > { %v5125_v13 = vpop.f32.mrf.mxu0 }
 0x4eb   : > { %v2335_v20 = vadd.f32 %v5125_v13, %v2207_v15  ;;  %v5686_v13 = vld [vmem:[#allocation11 + $0xa8] sm:$0xff]   ;;  %v5688_v15 = vld [vmem:[#allocation11 + $0xa0] sm:$0xff]  }
 0x4ec   : > { %v2318_v17 = vpop.f32.mrf.mxu0 }
 0x4ed   : > { %v2333_v19 = vadd.f32 %v2318_v17, %v2199_v14  ;;  %v2346_v31 = vadd.f32 %v4513_v23, %v2335_v20  ;;  %v5687_v14 = vld [vmem:[#allocation11 + $0xe8] sm:$0xff]   ;;  %v5690_v17 = vld [vmem:[#allocation11 + $0x98] sm:$0xff]   ;;  %v5693_v20 = vld [vmem:[#allocation11 + $0xd0] sm:$0xff]  }
 0x4ee   : > { %v5126_v21 = vpop.f32.mrf.mxu0 }
 0x4ef   : > { %v2336_v25 = vadd.f32 %v5126_v21, %v2210_v18  ;;  %v2344_v27 = vadd.f32 %v4513_v23, %v2333_v19  ;;  %v2350_v36 = vmax.f32 %v2346_v31, 0.0  ;;  %v5691_v18 = vld [vmem:[#allocation11 + $0xd8] sm:$0xff]   ;;  %v5692_v19 = vld [vmem:[#allocation11 + $0x90] sm:$0xff]   ;;  %v5694_v21 = vld [vmem:[#allocation11 + $0x88] sm:$0xff]  }
 0x4f0   : > { %v2321_v26 = vpop.f32.mrf.mxu0  ;;  %v5699_v31 = vld [vmem:[#allocation13 + $0x38] sm:$0xff]  }
 0x4f1   : > { %v2347_v29 = vadd.f32 %v4513_v23, %v2336_v25  ;;  %v2334_v30 = vadd.f32 %v2321_v26, %v2202_v22  ;;  %v2348_v35 = vmax.f32 %v2344_v27, 0.0  ;;  %v5695_v22 = vld [vmem:[#allocation11 + $0xc8] sm:$0xff]   ;;  %v5697_v25 = vld [vmem:[#allocation11 + $0xc0] sm:$0xff]  }
 0x4f3   : > { %v2345_v33 = vadd.f32 %v4513_v23, %v2334_v30  ;;  %v2351_v50 = vmax.f32 %v2347_v29, 0.0  ;;  %v5696_v23 = vld [vmem:[#allocation11 + $0x80] sm:$0xff]   ;;  %v5698_v30 = vld [vmem:[#allocation13 + $0x78] sm:$0xff]  }
 0x4f5   : > { %v2349_v55 = vmax.f32 %v2345_v33, 0.0  ;;  %v2353_v60 = vpack.c.bf16 %v2351_v50, %v2350_v36  ;;  %v5700_v33 = vld [vmem:[#allocation13 + $0x70] sm:$0xff]   ;;  %v5706_v36 = vld [vmem:[#allocation13 + $0x58] sm:$0xff]  }
 0x4f6   : > { %v5701_v50 = vld [vmem:[#allocation13 + $0x30] sm:$0xff]  }
 0x4f7   : > { %v2352_v37 = vpack.c.bf16 %v2349_v55, %v2348_v35  ;;  %v5702_v35 = vld [vmem:[#allocation13 + $0x68] sm:$0xff]   ;;  %v5704_v55 = vld [vmem:[#allocation13 + $0x60] sm:$0xff]  }
 0x4f9   : > { %5143 = vmatprep.mubr.bf16.mxu1 %v2352_v37  ;;  %v5703_v37 = vld [vmem:[#allocation13 + $0x28] sm:$0xff]  }
 0x4fa   : > { %5144 = vmatmul.mubr.bf16.vlgmr.msra.gmra.mxu1 %v2353_v60  ;;  %v5705_v60 = vld [vmem:[#allocation13 + $0x20] sm:$0xff]  }
 0x4fb   : > { %5168 = vmatpush3.bf16.msra.mxu1 %v5667_v38  ;;  %5183 = vmatprep.mubr.msk.bf16.mxu1 %vm6118_vm1, %v6117_v0  ;;  %v5708_v38 = vld [vmem:[#allocation13 + $0x50] sm:$0xff]  }
 0x4fc   : > { %5169 = vmatprep.subr.bf16.mxu1 %v6117_v0 }
 0x4ff   : > { %5170 = vmatpush3.bf16.msra.mxu1 %v5669_v39  ;;  %v5710_v39 = vld [vmem:[#allocation13 + $0x48] sm:$0xff]  }
 0x500   : > { %5171 = vmatprep.subr.bf16.mxu1 %v6117_v0 }
 0x503   : > { %5172 = vmatpush3.bf16.msra.mxu1 %v5671_v40  ;;  %v5707_v40 = vld [vmem:[#allocation13 + $0x18] sm:$0xff]  }
 0x504   : > { %5173 = vmatprep.subr.bf16.mxu1 %v6117_v0 }
 0x507   : > { %5174 = vmatpush3.bf16.msra.mxu1 %v5673_v41  ;;  %v5709_v41 = vld [vmem:[#allocation13 + $0x10] sm:$0xff]  }
 0x508   : > { %5175 = vmatprep.subr.bf16.mxu1 %v6117_v0 }
 0x50b   : > { %5176 = vmatpush3.bf16.msra.mxu1 %v5675_v43  ;;  %v5713_v43 = vld [vmem:[#allocation13] sm:$0xff]  }
 0x50c   : > { %5177 = vmatprep.subr.bf16.mxu1 %v6117_v0 }
 0x50f   : > { %5178 = vmatpush3.bf16.msra.mxu1 %v5677_v45 }
 0x510   : > { %5179 = vmatprep.subr.bf16.mxu1 %v6117_v0 }
 0x513   : > { %5180 = vmatpush3.bf16.msra.mxu1 %v5679_v47 }
 0x514   : > { %5181 = vmatprep.subr.bf16.mxu1 %v6117_v0 }
 0x517   : > { %5182 = vmatpush3.bf16.msra.mxu1 %v5681_v49 }
 0x518   : > { %5207 = vmatprep.subr.bf16.mxu1 %v6117_v0 }
 0x5ba   : > { %v5145_v52 = vpop.f32.mrf.mxu1 }
 0x5bb   : > { %v2468_v53 = vadd.f32 %v5145_v52, %v4514_v51 }
 0x5bc   : > { %v2459_v54 = vpop.f32.mrf.mxu1 }
 0x5bd   : > { %v2476_v56 = vadd.f32 %v2468_v53, %v6481_v24  ;;  %v2460_v57 = vadd.f32 %v4514_v51, %v2459_v54 }
 0x5be   : > { %v5146_v58 = vpop.f32.mrf.mxu1 }
 0x5bf   : > { %2482 = vst [vmem:[#allocation2 + $0x11] sm:$0xff] %v2476_v56  ;;  %v2474_v59 = vadd.f32 %v2460_v57, %v6485_v28  ;;  %v2471_v61 = vadd.f32 %v5146_v58, %v4514_v51  ;;  %v4555_v58 = vld [vmem:[%s6723_s12] ss:$0 sm:$0xff] }
 0x5c0   : > { %v2462_v62 = vpop.f32.mrf.mxu1 }
 0x5c1   : > { %2480 = vst [vmem:[#allocation2 + $0x1] sm:$0xff] %v2474_v59  ;;  %v2477_v1 = vadd.f32 %v2471_v61, %v6489_v32  ;;  %v2463_v2 = vadd.f32 %v4514_v51, %v2462_v62 }
 0x5c3   : > { %2483 = vst [vmem:[#allocation2 + $0x19] sm:$0xff] %v2477_v1  ;;  %v2475_v3 = vadd.f32 %v2463_v2, %v6493_v34  ;;  %v5684_v34 = vld [vmem:[#allocation11 + $0xb0] sm:$0xff]  }
 0x5c5   : > { %2481 = vst [vmem:[#allocation2 + $0x9] sm:$0xff] %v2475_v3 }
 0x5ca   : > { %v2504_v6 = vld [vmem:[#allocation2 + $0x11] ss:$2 sm:$0xff]  ;;  %v6530_v7 = vld [vmem:[#allocation2 + $0x12] ss:$2 sm:$0xff] }
 0x5cb   : > { %v6532_v24 = vld [vmem:[#allocation2 + $0x13] ss:$2 sm:$0xff] }
 0x5cc   : > { %v2503_v8 = vld [vmem:[#allocation2 + $0x1] ss:$2 sm:$0xff]  ;;  %v2484_v9 = vld [vmem:[#allocation2] ss:$2 sm:$0xff]  ;;  %v2485_v28 = vld [vmem:[#allocation2 + $0x10] ss:$2 sm:$0xff] }
 0x5cd   : > { %v2505_v10 = vpack.c.bf16 %v2504_v6, %v2503_v8  ;;  %v2486_v11 = vpack.c.bf16 %v2485_v28, %v2484_v9  ;;  %2934 = vst [vmem:[#allocation2] sm:$0x1] %v6117_v0  ;;  %v2812_v32 = vld [vmem:[#allocation2 + $0x3] ss:$2 sm:$0xff]  ;;  %3395 = vst [vmem:[#allocation2 + $0x12] sm:$0x3] %v6117_v0 }
 0x5ce   : > { %2935 = vst [vmem:[#allocation2 + $0x11] sm:$0x1] %v6117_v0  ;;  %v2701_v26 = vld [vmem:[#allocation2 + $0x2] ss:$2 sm:$0xff]  ;;  %v2814_v29 = vpack.c.bf16 %v6532_v24, %v2812_v32 }
 0x5cf   : > { %5164 = vmatmul.mubr.bf16.vlgmr.msra.gmra.mxu0 %v2505_v10  ;;  %5184 = vmatmul.mubr.bf16.vlgmr.msra.gmra.mxu1 %v2486_v11  ;;  %v2703_v27 = vpack.c.bf16 %v6530_v7, %v2701_v26  ;;  %v5714_v10 = vld [vmem:[#allocation13 + $0xb8] sm:$0xff]   ;;  %v5724_v26 = vld [vmem:[#allocation14 + $0x28] sm:$0xff]  }
 0x5d0   : > { %5188 = vmatpush3.bf16.msra.mxu0 %v5682_v4  ;;  %5208 = vmatpush3.bf16.msra.mxu1 %v5683_v5 }
 0x5d1   : > { %5189 = vmatprep.subr.bf16.mxu0 %v6117_v0  ;;  %5209 = vmatprep.subr.bf16.mxu1 %v6117_v0 }
 0x5d2   : > { %5203 = vmatprep.mubr.msk.bf16.mxu0 %vm6118_vm1, %v6117_v0  ;;  %5223 = vmatprep.mubr.msk.bf16.mxu1 %vm6118_vm1, %v6117_v0 }
 0x5d4   : > { %5190 = vmatpush3.bf16.msra.mxu0 %v5684_v34  ;;  %5210 = vmatpush3.bf16.msra.mxu1 %v5685_v12  ;;  %v5715_v34 = vld [vmem:[#allocation13 + $0xb0] sm:$0xff]  }
 0x5d5   : > { %5191 = vmatprep.subr.bf16.mxu0 %v6117_v0  ;;  %5211 = vmatprep.subr.bf16.mxu1 %v6117_v0 }
 0x5d8   : > { %5192 = vmatpush3.bf16.msra.mxu0 %v5686_v13  ;;  %5212 = vmatpush3.bf16.msra.mxu1 %v5687_v14  ;;  %v5716_v13 = vld [vmem:[#allocation13 + $0xa8] sm:$0xff]  }
 0x5d9   : > { %5193 = vmatprep.subr.bf16.mxu0 %v6117_v0  ;;  %5213 = vmatprep.subr.bf16.mxu1 %v6117_v0 }
 0x5dc   : > { %5194 = vmatpush3.bf16.msra.mxu0 %v5688_v15  ;;  %5214 = vmatpush3.bf16.msra.mxu1 %v5689_v16  ;;  %v5717_v15 = vld [vmem:[#allocation13 + $0xa0] sm:$0xff]   ;;  %v5718_v16 = vld [vmem:[#allocation13 + $0x98] sm:$0xff]  }
 0x5dd   : > { %5195 = vmatprep.subr.bf16.mxu0 %v6117_v0  ;;  %5215 = vmatprep.subr.bf16.mxu1 %v6117_v0 }
 0x5e0   : > { %5196 = vmatpush3.bf16.msra.mxu0 %v5690_v17  ;;  %5216 = vmatpush3.bf16.msra.mxu1 %v5691_v18  ;;  %v5719_v17 = vld [vmem:[#allocation13 + $0x90] sm:$0xff]   ;;  %v5720_v18 = vld [vmem:[#allocation13 + $0x88] sm:$0xff]  }
 0x5e1   : > { %5197 = vmatprep.subr.bf16.mxu0 %v6117_v0  ;;  %5217 = vmatprep.subr.bf16.mxu1 %v6117_v0 }
 0x5e4   : > { %5198 = vmatpush3.bf16.msra.mxu0 %v5692_v19  ;;  %5218 = vmatpush3.bf16.msra.mxu1 %v5693_v20  ;;  %v5721_v19 = vld [vmem:[#allocation13 + $0x80] sm:$0xff]  }
 0x5e5   : > { %5199 = vmatprep.subr.bf16.mxu0 %v6117_v0  ;;  %5219 = vmatprep.subr.bf16.mxu1 %v6117_v0 }
 0x5e8   : > { %5200 = vmatpush3.bf16.msra.mxu0 %v5694_v21  ;;  %5220 = vmatpush3.bf16.msra.mxu1 %v5695_v22 }
 0x5e9   : > { %5201 = vmatprep.subr.bf16.mxu0 %v6117_v0  ;;  %5221 = vmatprep.subr.bf16.mxu1 %v6117_v0 }
 0x5ec   : > { %5202 = vmatpush3.bf16.msra.mxu0 %v5696_v23  ;;  %5222 = vmatpush3.bf16.msra.mxu1 %v5697_v25  ;;  %v5722_v23 = vld [vmem:[#allocation14 + $0x38] sm:$0xff]   ;;  %v5723_v25 = vld [vmem:[#allocation14 + $0x30] sm:$0xff]  }
 0x5ed   : > { %5227 = vmatprep.subr.bf16.mxu0 %v6117_v0  ;;  %5247 = vmatprep.subr.bf16.mxu1 %v6117_v0 }
 0x5ef   : > { %5204 = vmatmul.mubr.bf16.vlgmr.msra.gmra.mxu0 %v2703_v27  ;;  %5224 = vmatmul.mubr.bf16.vlgmr.msra.gmra.mxu1 %v2814_v29  ;;  %v5725_v27 = vld [vmem:[#allocation14 + $0x20] sm:$0xff]   ;;  %v5726_v29 = vld [vmem:[#allocation14 + $0x18] sm:$0xff]  }
 0x5f0   : > { %5243 = vmatprep.mubr.msk.bf16.mxu0 %vm6118_vm1, %v6117_v0  ;;  %5263 = vmatprep.mubr.msk.bf16.mxu1 %vm6118_vm1, %v6117_v0 }
 0x5f1   : > { %5228 = vmatpush3.bf16.msra.mxu0 %v5698_v30  ;;  %5248 = vmatpush3.bf16.msra.mxu1 %v5699_v31  ;;  %v5727_v30 = vld [vmem:[#allocation14 + $0x10] sm:$0xff]   ;;  %v5728_v31 = vld [vmem:[#allocation14 + $0x8] sm:$0xff]  }
 0x5f2   : > { %5229 = vmatprep.subr.bf16.mxu0 %v6117_v0  ;;  %5249 = vmatprep.subr.bf16.mxu1 %v6117_v0 }
 0x5f5   : > { %5230 = vmatpush3.bf16.msra.mxu0 %v5700_v33  ;;  %5250 = vmatpush3.bf16.msra.mxu1 %v5701_v50  ;;  %v5729_v33 = vld [vmem:[#allocation14] sm:$0xff]   ;;  %v5730_v50 = vld [vmem:[#allocation16 + $0x78] sm:$0xff]  }
 0x5f6   : > { %5231 = vmatprep.subr.bf16.mxu0 %v6117_v0  ;;  %5251 = vmatprep.subr.bf16.mxu1 %v6117_v0 }
 0x5f9   : > { %5232 = vmatpush3.bf16.msra.mxu0 %v5702_v35  ;;  %5252 = vmatpush3.bf16.msra.mxu1 %v5703_v37  ;;  %v5732_v35 = vld [vmem:[#allocation16 + $0x70] sm:$0xff]  }
 0x5fa   : > { %5233 = vmatprep.subr.bf16.mxu0 %v6117_v0  ;;  %5253 = vmatprep.subr.bf16.mxu1 %v6117_v0 }
 0x5fd   : > { %5234 = vmatpush3.bf16.msra.mxu0 %v5704_v55  ;;  %5254 = vmatpush3.bf16.msra.mxu1 %v5705_v60  ;;  %v5734_v55 = vld [vmem:[#allocation16 + $0x68] sm:$0xff]  }
 0x5fe   : > { %5235 = vmatprep.subr.bf16.mxu0 %v6117_v0  ;;  %5255 = vmatprep.subr.bf16.mxu1 %v6117_v0 }
 0x601   : > { %5236 = vmatpush3.bf16.msra.mxu0 %v5706_v36  ;;  %5256 = vmatpush3.bf16.msra.mxu1 %v5707_v40 }
 0x602   : > { %5237 = vmatprep.subr.bf16.mxu0 %v6117_v0  ;;  %5257 = vmatprep.subr.bf16.mxu1 %v6117_v0 }
 0x605   : > { %5238 = vmatpush3.bf16.msra.mxu0 %v5708_v38  ;;  %5258 = vmatpush3.bf16.msra.mxu1 %v5709_v41 }
 0x606   : > { %5239 = vmatprep.subr.bf16.mxu0 %v6117_v0  ;;  %5259 = vmatprep.subr.bf16.mxu1 %v6117_v0 }
 0x609   : > { %5240 = vmatpush3.bf16.msra.mxu0 %v5710_v39  ;;  %5260 = vmatpush3.bf16.msra.mxu1 %v5711_v42 }
 0x60a   : > { %5241 = vmatprep.subr.bf16.mxu0 %v6117_v0  ;;  %5261 = vmatprep.subr.bf16.mxu1 %v6117_v0 }
 0x60d   : > { %5242 = vmatpush3.bf16.msra.mxu0 %v5712_v63  ;;  %5262 = vmatpush3.bf16.msra.mxu1 %v5713_v43 }
 0x60e   : > { %5267 = vmatprep.subr.bf16.mxu0 %v6117_v0  ;;  %5287 = vmatprep.subr.bf16.mxu1 %v6117_v0 }
 0x68f   : > { %v2605_v44 = vpop.f32.mrf.mxu0  ;;  %v2694_v45 = vpop.f32.mrf.mxu1 }
 0x690   : > { %v2695_v53 = vadd.f32 %v2694_v45, %v2605_v44  ;;  %v4580_v45 = vld [vmem:[%s6725_s14] ss:$0 sm:$0xff] }
 0x691   : > { %v5165_v46 = vpop.f32.mrf.mxu0  ;;  %v5185_v47 = vpop.f32.mrf.mxu1 }
 0x693   : > { %v2608_v48 = vpop.f32.mrf.mxu0  ;;  %v2697_v49 = vpop.f32.mrf.mxu1 }
 0x694   : > { %v2698_v62 = vadd.f32 %v2697_v49, %v2608_v48 }
 0x695   : > { %v5166_v51 = vpop.f32.mrf.mxu0  ;;  %v5186_v52 = vpop.f32.mrf.mxu1 }
 0x6af   : > { %v2803_v54 = vpop.f32.mrf.mxu0  ;;  %v2914_v56 = vpop.f32.mrf.mxu1 }
 0x6b0   : > { %v2810_v57 = vadd.f32 %v2803_v54, %v2695_v53 }
 0x6b1   : > { %v5205_v59 = vpop.f32.mrf.mxu0  ;;  %v5225_v61 = vpop.f32.mrf.mxu1 }
 0x6b2   : > { %v2921_v1 = vadd.f32 %v2914_v56, %v2810_v57  ;;  %v5731_v57 = vld [vmem:[#allocation16 + $0x38] sm:$0xff]   ;;  %v5733_v59 = vld [vmem:[#allocation16 + $0x30] sm:$0xff]   ;;  %v5735_v61 = vld [vmem:[#allocation16 + $0x28] sm:$0xff]  }
 0x6b3   : > { %v2806_v2 = vpop.f32.mrf.mxu0  ;;  %v2917_v3 = vpop.f32.mrf.mxu1 }
 0x6b4   : > { %v6582_v4 = vadd.f32 %v4555_v58, %v2921_v1  ;;  %v2811_v5 = vadd.f32 %v2806_v2, %v2698_v62  ;;  %v5736_v62 = vld [vmem:[#allocation16 + $0x60] sm:$0xff]   ;;  %v5738_v1 = vld [vmem:[#allocation16 + $0x58] sm:$0xff]   ;;  %v5740_v2 = vld [vmem:[#allocation16 + $0x50] sm:$0xff]  }
 0x6b5   : > { %v5206_v6 = vpop.f32.mrf.mxu0  ;;  %v5226_v7 = vpop.f32.mrf.mxu1 }
 0x6b6   : > { %v2932_v24 = vmax.f32 %v6582_v4, 0.0  ;;  %v2922_v8 = vadd.f32 %v2917_v3, %v2811_v5  ;;  %v5737_v3 = vld [vmem:[#allocation16 + $0x20] sm:$0xff]   ;;  %v5742_v5 = vld [vmem:[#allocation16 + $0x48] sm:$0xff]   ;;  %v5739_v6 = vld [vmem:[#allocation16 + $0x18] sm:$0xff]  }
 0x6b7   : > { %v5744_v7 = vld [vmem:[#allocation16 + $0x40] sm:$0xff]  }
 0x6b8   : > { %2936 = vst [vmem:[#allocation2 + $0x1] sm:$0xff] %v2932_v24  ;;  %v6585_v9 = vadd.f32 %v4555_v58, %v2922_v8  ;;  %v5743_v8 = vld [vmem:[#allocation16 + $0x8] sm:$0xff]  }
 0x6ba   : > { %v2933_v28 = vmax.f32 %v6585_v9, 0.0 }
 0x6bc   : > { %2937 = vst [vmem:[#allocation2 + $0x9] sm:$0xff] %v2933_v28  ;;  %v2959_v11 = vpack.c.bf16 %v2933_v28, %v2932_v24  ;;  %v5741_v24 = vld [vmem:[#allocation16 + $0x10] sm:$0xff]   ;;  %v5745_v28 = vld [vmem:[#allocation16] sm:$0xff]  }
 0x6be   : > { %5244 = vmatmul.mubr.bf16.vlgmr.msra.gmra.mxu0 %v2959_v11 }
 0x6bf   : > { %v2938_v32 = vld [vmem:[#allocation2] sm:$0xff]  ;;  %5268 = vmatpush3.bf16.msra.mxu0 %v5714_v10  ;;  %5283 = vmatprep.mubr.msk.bf16.mxu0 %vm6118_vm1, %v6117_v0 }
 0x6c0   : > { %3394 = vst [vmem:[#allocation2] sm:$0x3] %v6117_v0  ;;  %5269 = vmatprep.subr.bf16.mxu0 %v6117_v0  ;;  %v4581_v10 = vld [vmem:[%s6727_s16] ss:$0 sm:$0xff] }
 0x6c3   : > { %v2939_v12 = vld [vmem:[#allocation2 + $0x8] sm:$0xff]  ;;  %5270 = vmatpush3.bf16.msra.mxu0 %v5715_v34 }
 0x6c4   : > { %v2940_v14 = vpack.c.bf16 %v2939_v12, %v2938_v32  ;;  %5271 = vmatprep.subr.bf16.mxu0 %v6117_v0  ;;  %v3155_v20 = vld [vmem:[#allocation2 + $0x2] sm:$0xff]  ;;  %v3156_v21 = vld [vmem:[#allocation2 + $0xa] sm:$0xff] }
 0x6c5   : > { %v3157_v22 = vpack.c.bf16 %v3156_v21, %v3155_v20 }
 0x6c6   : > { %5264 = vmatmul.mubr.bf16.vlgmr.msra.gmra.mxu1 %v2940_v14 }
 0x6c7   : > { %5272 = vmatpush3.bf16.msra.mxu0 %v5716_v13  ;;  %5303 = vmatprep.mubr.msk.bf16.mxu1 %vm6118_vm1, %v6117_v0 }
 0x6c8   : > { %5273 = vmatprep.subr.bf16.mxu0 %v6117_v0  ;;  %5288 = vmatpush3.bf16.msra.mxu1 %v5722_v23 }
 0x6c9   : > { %5289 = vmatprep.subr.bf16.mxu1 %v6117_v0 }
 0x6cb   : > { %5274 = vmatpush3.bf16.msra.mxu0 %v5717_v15 }
 0x6cc   : > { %5275 = vmatprep.subr.bf16.mxu0 %v6117_v0  ;;  %5290 = vmatpush3.bf16.msra.mxu1 %v5723_v25 }
 0x6cd   : > { %5291 = vmatprep.subr.bf16.mxu1 %v6117_v0 }
 0x6cf   : > { %5276 = vmatpush3.bf16.msra.mxu0 %v5718_v16 }
 0x6d0   : > { %5277 = vmatprep.subr.bf16.mxu0 %v6117_v0  ;;  %5292 = vmatpush3.bf16.msra.mxu1 %v5724_v26  ;;  %v5749_v26 = vld [vmem:[#allocation16 + $0xa0] sm:$0xff]  }
 0x6d1   : > { %5293 = vmatprep.subr.bf16.mxu1 %v6117_v0 }
 0x6d3   : > { %5278 = vmatpush3.bf16.msra.mxu0 %v5719_v17 }
 0x6d4   : > { %5279 = vmatprep.subr.bf16.mxu0 %v6117_v0  ;;  %5294 = vmatpush3.bf16.msra.mxu1 %v5725_v27  ;;  %v5750_v27 = vld [vmem:[#allocation16 + $0x98] sm:$0xff]  }
 0x6d5   : > { %5295 = vmatprep.subr.bf16.mxu1 %v6117_v0 }
 0x6d7   : > { %5280 = vmatpush3.bf16.msra.mxu0 %v5720_v18 }
 0x6d8   : > { %5281 = vmatprep.subr.bf16.mxu0 %v6117_v0  ;;  %5296 = vmatpush3.bf16.msra.mxu1 %v5726_v29  ;;  %v5751_v29 = vld [vmem:[#allocation16 + $0x90] sm:$0xff]  }
 0x6d9   : > { %5297 = vmatprep.subr.bf16.mxu1 %v6117_v0 }
 0x6db   : > { %5282 = vmatpush3.bf16.msra.mxu0 %v5721_v19  ;;  %v5746_v19 = vld [vmem:[#allocation16 + $0xb8] sm:$0xff]  }
 0x6dc   : > { %5307 = vmatprep.subr.bf16.mxu0 %v6117_v0  ;;  %5298 = vmatpush3.bf16.msra.mxu1 %v5727_v30  ;;  %v5752_v30 = vld [vmem:[#allocation16 + $0x88] sm:$0xff]  }
 0x6dd   : > { %5299 = vmatprep.subr.bf16.mxu1 %v6117_v0 }
 0x6de   : > { %5284 = vmatmul.mubr.bf16.vlgmr.msra.gmra.mxu0 %v3157_v22  ;;  %v5747_v22 = vld [vmem:[#allocation16 + $0xb0] sm:$0xff]  }
 0x6df   : > { %5323 = vmatprep.mubr.msk.bf16.mxu0 %vm6118_vm1, %v6117_v0  ;;  %5308 = vmatpush3.bf16.msra.mxu0 %v5730_v50 }
 0x6e0   : > { %5300 = vmatpush3.bf16.msra.mxu1 %v5728_v31  ;;  %5309 = vmatprep.subr.bf16.mxu0 %v6117_v0  ;;  %v5753_v31 = vld [vmem:[#allocation16 + $0x80] sm:$0xff]  }
 0x6e1   : > { %5301 = vmatprep.subr.bf16.mxu1 %v6117_v0 }
 0x6e3   : > { %5310 = vmatpush3.bf16.msra.mxu0 %v5732_v35  ;;  %v5754_v35 = vld [vmem:[#allocation17 + $0x38] sm:$0xff]  }
 0x6e4   : > { %5302 = vmatpush3.bf16.msra.mxu1 %v5729_v33  ;;  %5311 = vmatprep.subr.bf16.mxu0 %v6117_v0 }
 0x6e5   : > { %5327 = vmatprep.subr.bf16.mxu1 %v6117_v0 }
 0x6e7   : > { %5312 = vmatpush3.bf16.msra.mxu0 %v5734_v55  ;;  %v5755_v55 = vld [vmem:[#allocation17 + $0x30] sm:$0xff]  }
 0x6e8   : > { %5313 = vmatprep.subr.bf16.mxu0 %v6117_v0 }
 0x6eb   : > { %5314 = vmatpush3.bf16.msra.mxu0 %v5736_v62 }
 0x6ec   : > { %5315 = vmatprep.subr.bf16.mxu0 %v6117_v0 }
 0x6ef   : > { %5316 = vmatpush3.bf16.msra.mxu0 %v5738_v1 }
 0x6f0   : > { %5317 = vmatprep.subr.bf16.mxu0 %v6117_v0 }
 0x6f3   : > { %5318 = vmatpush3.bf16.msra.mxu0 %v5740_v2 }
 0x6f4   : > { %5319 = vmatprep.subr.bf16.mxu0 %v6117_v0 }
 0x6f7   : > { %5320 = vmatpush3.bf16.msra.mxu0 %v5742_v5 }
 0x6f8   : > { %5321 = vmatprep.subr.bf16.mxu0 %v6117_v0 }
 0x6fb   : > { %5322 = vmatpush3.bf16.msra.mxu0 %v5744_v7  ;;  %v5763_v7 = vld [vmem:[#allocation19 + $0x38] sm:$0xff]  }
 0x6fc   : > { %5347 = vmatprep.subr.bf16.mxu0 %v6117_v0 }
 0x77e   : > { %v3059_v36 = vpop.f32.mrf.mxu0 }
 0x780   : > { %v5245_v37 = vpop.f32.mrf.mxu0 }
 0x781   : > { %v5757_v37 = vld [vmem:[#allocation17 + $0x20] sm:$0xff]  }
 0x782   : > { %v3062_v38 = vpop.f32.mrf.mxu0 }
 0x784   : > { %v5246_v60 = vpop.f32.mrf.mxu0 }
 0x785   : > { %v5759_v60 = vld [vmem:[#allocation17 + $0x10] sm:$0xff]  }
 0x786   : > { %v3148_v39 = vpop.f32.mrf.mxu1 }
 0x787   : > { %v3149_v42 = vadd.f32 %v3148_v39, %v3059_v36  ;;  %v5756_v36 = vld [vmem:[#allocation17 + $0x28] sm:$0xff]  }
 0x788   : > { %v5265_v40 = vpop.f32.mrf.mxu1  ;;  %v5760_v39 = vld [vmem:[#allocation17 + $0x8] sm:$0xff]  }
 0x789   : > { %v5761_v40 = vld [vmem:[#allocation17] sm:$0xff]  }
 0x78a   : > { %v3151_v63 = vpop.f32.mrf.mxu1 }
 0x78b   : > { %v3152_v47 = vadd.f32 %v3151_v63, %v3062_v38  ;;  %v5758_v38 = vld [vmem:[#allocation17 + $0x18] sm:$0xff]  }
 0x78c   : > { %v5266_v41 = vpop.f32.mrf.mxu1  ;;  %v5762_v63 = vld [vmem:[#allocation19 + $0x78] sm:$0xff]  }
 0x78d   : > { %v5764_v41 = vld [vmem:[#allocation19 + $0x70] sm:$0xff]  }
 0x79e   : > { %v3257_v43 = vpop.f32.mrf.mxu0 }
 0x79f   : > { %v3264_v44 = vadd.f32 %v3257_v43, %v3149_v42  ;;  %v5766_v42 = vld [vmem:[#allocation19 + $0x68] sm:$0xff]   ;;  %v5768_v43 = vld [vmem:[#allocation19 + $0x60] sm:$0xff]  }
 0x7a0   : > { %v5285_v46 = vpop.f32.mrf.mxu0 }
 0x7a1   : > { %v3273_v49 = vadd.f32 %v4580_v45, %v3264_v44 }
 0x7a2   : > { %v3260_v48 = vpop.f32.mrf.mxu0 }
 0x7a3   : > { %v3265_v51 = vadd.f32 %v3260_v48, %v3152_v47  ;;  %v3275_v54 = vmax.f32 %v3273_v49, 0.0 }
 0x7a4   : > { %v5286_v52 = vpop.f32.mrf.mxu0 }
 0x7a5   : > { %v3274_v53 = vadd.f32 %v4580_v45, %v3265_v51 }
 0x7a7   : > { %v3276_v56 = vmax.f32 %v3274_v53, 0.0 }
 0x7a9   : > { %v3277_v58 = vpack.c.bf16 %v3276_v56, %v3275_v54 }
 0x7ab   : > { %5304 = vmatmul.mubr.bf16.vlgmr.msra.gmra.mxu1 %v3277_v58 }
 0x7ac   : > { %5328 = vmatpush3.bf16.msra.mxu1 %v5731_v57  ;;  %5343 = vmatprep.mubr.msk.bf16.mxu1 %vm6118_vm1, %v6117_v0  ;;  %v4614_v57 = vld [vmem:[%s6729_s18] ss:$0 sm:$0xff] }
 0x7ad   : > { %5329 = vmatprep.subr.bf16.mxu1 %v6117_v0 }
 0x7b0   : > { %5330 = vmatpush3.bf16.msra.mxu1 %v5733_v59 }
 0x7b1   : > { %5331 = vmatprep.subr.bf16.mxu1 %v6117_v0 }
 0x7b4   : > { %5332 = vmatpush3.bf16.msra.mxu1 %v5735_v61 }
 0x7b5   : > { %5333 = vmatprep.subr.bf16.mxu1 %v6117_v0 }
 0x7b8   : > { %5334 = vmatpush3.bf16.msra.mxu1 %v5737_v3 }
 0x7b9   : > { %5335 = vmatprep.subr.bf16.mxu1 %v6117_v0 }
 0x7bc   : > { %5336 = vmatpush3.bf16.msra.mxu1 %v5739_v6 }
 0x7bd   : > { %5337 = vmatprep.subr.bf16.mxu1 %v6117_v0 }
 0x7c0   : > { %5338 = vmatpush3.bf16.msra.mxu1 %v5741_v24 }
 0x7c1   : > { %5339 = vmatprep.subr.bf16.mxu1 %v6117_v0 }
 0x7c4   : > { %5340 = vmatpush3.bf16.msra.mxu1 %v5743_v8  ;;  %v5765_v8 = vld [vmem:[#allocation19 + $0x30] sm:$0xff]  }
 0x7c5   : > { %5341 = vmatprep.subr.bf16.mxu1 %v6117_v0 }
 0x7c8   : > { %5342 = vmatpush3.bf16.msra.mxu1 %v5745_v28  ;;  %v5767_v28 = vld [vmem:[#allocation19 + $0x28] sm:$0xff]  }
 0x7c9   : > { %5367 = vmatprep.subr.bf16.mxu1 %v6117_v0 }
 0x86b   : > { %v3383_v11 = vpop.f32.mrf.mxu1 }
 0x86c   : > { %v3384_v32 = vadd.f32 %v4581_v10, %v3383_v11  ;;  %v5772_v11 = vld [vmem:[#allocation19 + $0x50] sm:$0xff]  }
 0x86d   : > { %v5305_v34 = vpop.f32.mrf.mxu1 }
 0x86e   : > { %v6636_v12 = vadd.f32 %v3384_v32, %v6582_v4  ;;  %v5769_v32 = vld [vmem:[#allocation19 + $0x20] sm:$0xff]   ;;  %v5774_v34 = vld [vmem:[#allocation19 + $0x48] sm:$0xff]  }
 0x86f   : > { %v3386_v13 = vpop.f32.mrf.mxu1 }
 0x870   : > { %v3392_v14 = vmax.f32 %v6636_v12, 0.0  ;;  %v3387_v15 = vadd.f32 %v4581_v10, %v3386_v13  ;;  %v5770_v10 = vld [vmem:[#allocation19 + $0x58] sm:$0xff]  }
 0x871   : > { %v5306_v16 = vpop.f32.mrf.mxu1  ;;  %v5771_v13 = vld [vmem:[#allocation19 + $0x18] sm:$0xff]  }
 0x872   : > { %3396 = vst [vmem:[#allocation2 + $0x2] sm:$0xff] %v3392_v14  ;;  %v6640_v17 = vadd.f32 %v3387_v15, %v6585_v9  ;;  %v5748_v9 = vld [vmem:[#allocation16 + $0xa8] sm:$0xff]   ;;  %v5773_v15 = vld [vmem:[#allocation19 + $0x10] sm:$0xff]  }
 0x873   : > { %v5775_v16 = vld [vmem:[#allocation19 + $0x8] sm:$0xff]  }
 0x874   : > { %v3393_v18 = vmax.f32 %v6640_v17, 0.0 }
 0x876   : > { %3397 = vst [vmem:[#allocation2 + $0xa] sm:$0xff] %v3393_v18  ;;  %v3419_v20 = vpack.c.bf16 %v3393_v18, %v3392_v14  ;;  %v5776_v14 = vld [vmem:[#allocation19 + $0x40] sm:$0xff]  }
 0x877   : > { %v5777_v18 = vld [vmem:[#allocation19] sm:$0xff]  }
 0x878   : > { %5324 = vmatmul.mubr.bf16.vlgmr.msra.gmra.mxu0 %v3419_v20 }
 0x879   : > { %v3398_v21 = vld [vmem:[#allocation2] sm:$0xff]  ;;  %5348 = vmatpush3.bf16.msra.mxu0 %v5746_v19  ;;  %5363 = vmatprep.mubr.msk.bf16.mxu0 %vm6118_vm1, %v6117_v0 }
 0x87a   : > { %3852 = vst [vmem:[#allocation2] sm:$0x1] %v6117_v0  ;;  %5349 = vmatprep.subr.bf16.mxu0 %v6117_v0  ;;  %v4615_v19 = vld [vmem:[%s6731_s20] ss:$0 sm:$0xff] }
 0x87d   : > { %v3399_v4 = vld [vmem:[#allocation2 + $0x8] sm:$0xff]  ;;  %5350 = vmatpush3.bf16.msra.mxu0 %v5747_v22 }
 0x87e   : > { %v3616_v23 = vld [vmem:[#allocation2 + $0xc] sm:$0xff]  ;;  %v3400_v25 = vpack.c.bf16 %v3399_v4, %v3398_v21  ;;  %5351 = vmatprep.subr.bf16.mxu0 %v6117_v0  ;;  %v3615_v33 = vld [vmem:[#allocation2 + $0x4] sm:$0xff] }
 0x87f   : > { %3853 = vst [vmem:[#allocation2 + $0x11] sm:$0x1] %v6117_v0  ;;  %v3617_v50 = vpack.c.bf16 %v3616_v23, %v3615_v33 }
 0x880   : > { %5344 = vmatmul.mubr.bf16.vlgmr.msra.gmra.mxu1 %v3400_v25 }
 0x881   : > { %5352 = vmatpush3.bf16.msra.mxu0 %v5748_v9  ;;  %5383 = vmatprep.mubr.msk.bf16.mxu1 %vm6118_vm1, %v6117_v0 }
 0x882   : > { %5353 = vmatprep.subr.bf16.mxu0 %v6117_v0  ;;  %5368 = vmatpush3.bf16.msra.mxu1 %v5754_v35  ;;  %v5782_v35 = vld [vmem:[#allocation19 + $0x98] sm:$0xff]  }
 0x883   : > { %5369 = vmatprep.subr.bf16.mxu1 %v6117_v0 }
 0x885   : > { %5354 = vmatpush3.bf16.msra.mxu0 %v5749_v26 }
 0x886   : > { %5355 = vmatprep.subr.bf16.mxu0 %v6117_v0  ;;  %5370 = vmatpush3.bf16.msra.mxu1 %v5755_v55  ;;  %v5783_v55 = vld [vmem:[#allocation19 + $0x90] sm:$0xff]  }
 0x887   : > { %5371 = vmatprep.subr.bf16.mxu1 %v6117_v0 }
 0x889   : > { %5356 = vmatpush3.bf16.msra.mxu0 %v5750_v27  ;;  %v5778_v27 = vld [vmem:[#allocation19 + $0xb8] sm:$0xff]  }
 0x88a   : > { %5357 = vmatprep.subr.bf16.mxu0 %v6117_v0  ;;  %5372 = vmatpush3.bf16.msra.mxu1 %v5756_v36  ;;  %v5784_v36 = vld [vmem:[#allocation19 + $0x88] sm:$0xff]  }
 0x88b   : > { %5373 = vmatprep.subr.bf16.mxu1 %v6117_v0 }
 0x88d   : > { %5358 = vmatpush3.bf16.msra.mxu0 %v5751_v29 }
 0x88e   : > { %5359 = vmatprep.subr.bf16.mxu0 %v6117_v0  ;;  %5374 = vmatpush3.bf16.msra.mxu1 %v5757_v37  ;;  %v5785_v37 = vld [vmem:[#allocation19 + $0x80] sm:$0xff]  }
 0x88f   : > { %5375 = vmatprep.subr.bf16.mxu1 %v6117_v0 }
 0x891   : > { %5360 = vmatpush3.bf16.msra.mxu0 %v5752_v30  ;;  %v5779_v30 = vld [vmem:[#allocation19 + $0xb0] sm:$0xff]  }
 0x892   : > { %5361 = vmatprep.subr.bf16.mxu0 %v6117_v0  ;;  %5376 = vmatpush3.bf16.msra.mxu1 %v5758_v38 }
 0x893   : > { %5377 = vmatprep.subr.bf16.mxu1 %v6117_v0 }
 0x895   : > { %5362 = vmatpush3.bf16.msra.mxu0 %v5753_v31 }
 0x896   : > { %5387 = vmatprep.subr.bf16.mxu0 %v6117_v0  ;;  %5378 = vmatpush3.bf16.msra.mxu1 %v5759_v60 }
 0x897   : > { %5379 = vmatprep.subr.bf16.mxu1 %v6117_v0 }
 0x898   : > { %5364 = vmatmul.mubr.bf16.vlgmr.msra.gmra.mxu0 %v3617_v50 }
 0x899   : > { %5403 = vmatprep.mubr.msk.bf16.mxu0 %vm6118_vm1, %v6117_v0  ;;  %5388 = vmatpush3.bf16.msra.mxu0 %v5762_v63 }
 0x89a   : > { %5380 = vmatpush3.bf16.msra.mxu1 %v5760_v39  ;;  %5389 = vmatprep.subr.bf16.mxu0 %v6117_v0 }
 0x89b   : > { %5381 = vmatprep.subr.bf16.mxu1 %v6117_v0 }
 0x89d   : > { %5390 = vmatpush3.bf16.msra.mxu0 %v5764_v41 }
 0x89e   : > { %5382 = vmatpush3.bf16.msra.mxu1 %v5761_v40  ;;  %5391 = vmatprep.subr.bf16.mxu0 %v6117_v0 }
 0x89f   : > { %5407 = vmatprep.subr.bf16.mxu1 %v6117_v0 }
 0x8a1   : > { %5392 = vmatpush3.bf16.msra.mxu0 %v5766_v42 }
 0x8a2   : > { %5393 = vmatprep.subr.bf16.mxu0 %v6117_v0 }
 0x8a5   : > { %5394 = vmatpush3.bf16.msra.mxu0 %v5768_v43 }
 0x8a6   : > { %5395 = vmatprep.subr.bf16.mxu0 %v6117_v0 }
 0x8a9   : > { %5396 = vmatpush3.bf16.msra.mxu0 %v5770_v10 }
 0x8aa   : > { %5397 = vmatprep.subr.bf16.mxu0 %v6117_v0 }
 0x8ad   : > { %5398 = vmatpush3.bf16.msra.mxu0 %v5772_v11 }
 0x8ae   : > { %5399 = vmatprep.subr.bf16.mxu0 %v6117_v0 }
 0x8b1   : > { %5400 = vmatpush3.bf16.msra.mxu0 %v5774_v34 }
 0x8b2   : > { %5401 = vmatprep.subr.bf16.mxu0 %v6117_v0 }
 0x8b5   : > { %5402 = vmatpush3.bf16.msra.mxu0 %v5776_v14 }
 0x8b6   : > { %5427 = vmatprep.subr.bf16.mxu0 %v6117_v0 }
 0x938   : > { %v3519_v44 = vpop.f32.mrf.mxu0 }
 0x93a   : > { %v5325_v45 = vpop.f32.mrf.mxu0 }
 0x93c   : > { %v3522_v46 = vpop.f32.mrf.mxu0 }
 0x93e   : > { %v5326_v47 = vpop.f32.mrf.mxu0 }
 0x940   : > { %v3608_v48 = vpop.f32.mrf.mxu1 }
 0x941   : > { %v3609_v53 = vadd.f32 %v3608_v48, %v3519_v44 }
 0x942   : > { %v5345_v49 = vpop.f32.mrf.mxu1 }
 0x944   : > { %v3611_v51 = vpop.f32.mrf.mxu1 }
 0x945   : > { %v3612_v59 = vadd.f32 %v3611_v51, %v3522_v46 }
 0x946   : > { %v5346_v52 = vpop.f32.mrf.mxu1 }
 0x958   : > { %v3717_v54 = vpop.f32.mrf.mxu0 }
 0x959   : > { %v3724_v56 = vadd.f32 %v3717_v54, %v3609_v53 }
 0x95a   : > { %v5365_v58 = vpop.f32.mrf.mxu0 }
 0x95b   : > { %v3733_v62 = vadd.f32 %v4614_v57, %v3724_v56 }
 0x95c   : > { %v3720_v61 = vpop.f32.mrf.mxu0 }
 0x95d   : > { %v3725_v1 = vadd.f32 %v3720_v61, %v3612_v59  ;;  %v3735_v5 = vmax.f32 %v3733_v62, 0.0 }
 0x95e   : > { %v5366_v2 = vpop.f32.mrf.mxu0 }
 0x95f   : > { %v3734_v3 = vadd.f32 %v4614_v57, %v3725_v1 }
 0x961   : > { %v3736_v6 = vmax.f32 %v3734_v3, 0.0 }
 0x963   : > { %v3737_v24 = vpack.c.bf16 %v3736_v6, %v3735_v5 }
 0x965   : > { %5384 = vmatmul.mubr.bf16.vlgmr.msra.gmra.mxu1 %v3737_v24 }
 0x966   : > { %5408 = vmatpush3.bf16.msra.mxu1 %v5763_v7  ;;  %5423 = vmatprep.mubr.msk.bf16.mxu1 %vm6118_vm1, %v6117_v0 }
 0x967   : > { %5409 = vmatprep.subr.bf16.mxu1 %v6117_v0 }
 0x96a   : > { %5410 = vmatpush3.bf16.msra.mxu1 %v5765_v8 }
 0x96b   : > { %5411 = vmatprep.subr.bf16.mxu1 %v6117_v0 }
 0x96e   : > { %5412 = vmatpush3.bf16.msra.mxu1 %v5767_v28 }
 0x96f   : > { %5413 = vmatprep.subr.bf16.mxu1 %v6117_v0 }
 0x972   : > { %5414 = vmatpush3.bf16.msra.mxu1 %v5769_v32 }
 0x973   : > { %5415 = vmatprep.subr.bf16.mxu1 %v6117_v0 }
 0x976   : > { %5416 = vmatpush3.bf16.msra.mxu1 %v5771_v13 }
 0x977   : > { %5417 = vmatprep.subr.bf16.mxu1 %v6117_v0 }
 0x97a   : > { %5418 = vmatpush3.bf16.msra.mxu1 %v5773_v15 }
 0x97b   : > { %5419 = vmatprep.subr.bf16.mxu1 %v6117_v0 }
 0x97e   : > { %5420 = vmatpush3.bf16.msra.mxu1 %v5775_v16 }
 0x97f   : > { %5421 = vmatprep.subr.bf16.mxu1 %v6117_v0 }
 0x982   : > { %5422 = vmatpush3.bf16.msra.mxu1 %v5777_v18 }
 0xa25   : > { %v3843_v20 = vpop.f32.mrf.mxu1 }
 0xa26   : > { %v3844_v21 = vadd.f32 %v4615_v19, %v3843_v20 }
 0xa27   : > { %v5385_v22 = vpop.f32.mrf.mxu1 }
 0xa28   : > { %v3850_v4 = vadd.f32 %v3844_v21, %v6636_v12  ;;  %v5780_v12 = vld [vmem:[#allocation19 + $0xa8] sm:$0xff]  }
 0xa29   : > { %v3846_v9 = vpop.f32.mrf.mxu1 }
 0xa2a   : > { %3854 = vst [vmem:[#allocation2 + $0x1] sm:$0xff] %v3850_v4  ;;  %v3847_v23 = vadd.f32 %v4615_v19, %v3846_v9 }
 0xa2b   : > { %v5386_v25 = vpop.f32.mrf.mxu1 }
 0xa2c   : > { %v3851_v26 = vadd.f32 %v3847_v23, %v6640_v17  ;;  %v5781_v17 = vld [vmem:[#allocation19 + $0xa0] sm:$0xff]  }
 0xa2e   : > { %3855 = vst [vmem:[#allocation2 + $0x9] sm:$0xff] %v3851_v26  ;;  %v3877_v29 = vpack.c.bf16 %v3851_v26, %v3850_v4 }
 0xa30   : > { %5404 = vmatmul.mubr.bf16.vlgmr.msra.gmra.mxu0 %v3877_v29 }
 0xa31   : > { %5428 = vmatpush3.bf16.msra.mxu0 %v5778_v27  ;;  %5443 = vmatprep.mubr.msk.bf16.mxu0 %vm6118_vm1, %v6117_v0  ;;  %v3856_v31 = vld [vmem:[#allocation2] sm:$0xff] }
 0xa32   : > { %5429 = vmatprep.subr.bf16.mxu0 %v6117_v0 }
 0xa35   : > { %v3857_v33 = vld [vmem:[#allocation2 + $0x8] sm:$0xff]  ;;  %5430 = vmatpush3.bf16.msra.mxu0 %v5779_v30 }
 0xa36   : > { %v3858_v50 = vpack.c.bf16 %v3857_v33, %v3856_v31  ;;  %5431 = vmatprep.subr.bf16.mxu0 %v6117_v0  ;;  %v4073_v38 = vld [vmem:[#allocation2 + $0x2] sm:$0xff]  ;;  %v4074_v60 = vld [vmem:[#allocation2 + $0xa] sm:$0xff] }
 0xa37   : > { %v4075_v39 = vpack.c.bf16 %v4074_v60, %v4073_v38 }
 0xa38   : > { %5424 = vmatmul.mubr.bf16.vlgmr.msra.gmra.mxu1 %v3858_v50 }
 0xa39   : > { %5432 = vmatpush3.bf16.msra.mxu0 %v5780_v12 }
 0xa3a   : > { %5433 = vmatprep.subr.bf16.mxu0 %v6117_v0 }
 0xa3d   : > { %5434 = vmatpush3.bf16.msra.mxu0 %v5781_v17 }
 0xa3e   : > { %5435 = vmatprep.subr.bf16.mxu0 %v6117_v0 }
 0xa41   : > { %5436 = vmatpush3.bf16.msra.mxu0 %v5782_v35 }
 0xa42   : > { %5437 = vmatprep.subr.bf16.mxu0 %v6117_v0 }
 0xa45   : > { %5438 = vmatpush3.bf16.msra.mxu0 %v5783_v55 }
 0xa46   : > { %5439 = vmatprep.subr.bf16.mxu0 %v6117_v0 }
 0xa49   : > { %5440 = vmatpush3.bf16.msra.mxu0 %v5784_v36 }
 0xa4a   : > { %5441 = vmatprep.subr.bf16.mxu0 %v6117_v0  ;;  %v4648_v0 = vld [vmem:[%s6733_s22] ss:$0 sm:$0xff] }
 0xa4d   : > { %5442 = vmatpush3.bf16.msra.mxu0 %v5785_v37 }
 0xa50   : > { %5444 = vmatmul.mubr.bf16.vlgmr.msra.gmra.mxu0 %v4075_v39 }
 0xaf0   : > { %v3977_v40 = vpop.f32.mrf.mxu0 }
 0xaf2   : > { %v5405_v63 = vpop.f32.mrf.mxu0 }
 0xaf4   : > { %v3980_v41 = vpop.f32.mrf.mxu0 }
 0xaf6   : > { %v5406_v42 = vpop.f32.mrf.mxu0 }
 0xaf8   : > { %v4066_v43 = vpop.f32.mrf.mxu1 }
 0xaf9   : > { %v4067_v47 = vadd.f32 %v4066_v43, %v3977_v40 }
 0xafa   : > { %v5425_v44 = vpop.f32.mrf.mxu1 }
 0xafc   : > { %v4069_v45 = vpop.f32.mrf.mxu1 }
 0xafd   : > { %v4070_v52 = vadd.f32 %v4069_v45, %v3980_v41 }
 0xafe   : > { %v5426_v46 = vpop.f32.mrf.mxu1 }
 0xb10   : > { %v4175_v48 = vpop.f32.mrf.mxu0 }
 0xb11   : > { %v4182_v49 = vadd.f32 %v4175_v48, %v4067_v47 }
 0xb12   : > { %v5445_v51 = vpop.f32.mrf.mxu0 }
 0xb13   : > { %v4191_v53 = vadd.f32 %v4648_v0, %v4182_v49 }
 0xb14   : > { %v4178_v54 = vpop.f32.mrf.mxu0 }
 0xb15   : > { %v4183_v56 = vadd.f32 %v4178_v54, %v4070_v52  ;;  %4193 = vxpose.xlu0.b32.start [1/2] (short) (narrow) %v4191_v53, 32 }
 0xb16   : > { %v5446_v57 = vpop.f32.mrf.mxu0 }
 0xb17   : > { %v4192_v58 = vadd.f32 %v4648_v0, %v4183_v56 }
 0xb19   : > { %4194 = vxpose.xlu0.b32.end [2/2] (short) (narrow) %v4192_v58, 32 }
 0xb91   : > { %v4209_v59 = vpop.trf.xlu0 }
 0xb92   : > { %4226 = vst.msk [vmem:[%s867_s0] sm:$0xff] %vm4225_vm2, %v4209_v59 }
 0xb95   : > { %v4210_v61 = vpop.trf.xlu0 }
 0xb96   : > { %4227 = vst.msk [vmem:[%s867_s0 + $0x8] sm:$0xff] %vm4225_vm2, %v4210_v61 }
 0xb99   : > { %v4211_v62 = vpop.trf.xlu0 }
 0xb9a   : > { %4228 = vst.msk [vmem:[%s867_s0 + $0x10] sm:$0xff] %vm4225_vm2, %v4211_v62 }
 0xb9d   : > { %v4212_v1 = vpop.trf.xlu0 }
 0xb9e   : > { %4229 = vst.msk [vmem:[%s867_s0 + $0x18] sm:$0xff] %vm4225_vm2, %v4212_v1 }
 0xb9f PF: > { %s6758_s25 = sld [smem:[#allocation26_spill]] }
 0xba5   : > { %s39_s4 = sadd.s32 1, %s6758_s25  }
 0xba6   : > { %p36_p2 = scmp.ge.s32.totalorder %s39_s4, 4  }
 0xba8   :  { %38 = sbr.rel (!%p36_p2) target bundleno = 16 (0x10), region = 218 }
 0xbad   :  { %4251 = vsyncpa [#allocation4], 1 }
 0xbae   :  { %4253 = vsyncpa [#allocation4 + $0x1], 1 }
 0xbaf   :  { %4254 = vsyncpa [#allocation6], 1 }
 0xbb0   :  { %4255 = vsyncpa [#allocation9], 1 }
 0xbb1   :  { %4256 = vsyncpa [#allocation12], 1 }
 0xbb2   :  { %4257 = vsyncpa [#allocation15], 1 }
 0xbb3   :  { %4258 = vsyncpa [#allocation18], 1 }

</bundles_post_ra>
